<compile_context>
chip_gen: v7x
topology: tpu7x:2x2x1
jax: 0.10.0
libtpu: 0.0.40
codegen_flags: <defaults>
</compile_context>

<pallas_src>
import math
from functools import partial

import jax
import jax.numpy as jnp
from jax.experimental import pallas as pl
from jax.experimental.pallas import tpu as pltpu

LANE = 128


def _default_vmem_limit():
    """Generation-aware VMEM budget: ~half of physical, 32..96 MiB."""
    cap = None
    try:
        info = pltpu.get_tpu_info()
        cap = getattr(info, "vmem_capacity_bytes", None)
    except Exception:
        cap = None
    if not cap:
        cap = 64 * 1024 * 1024          # conservative fallback (v7x-sized)
    return int(min(max(cap // 2, 32 * 1024 * 1024), 96 * 1024 * 1024))


VMEM_LIMIT_BYTES = _default_vmem_limit()


# ----------------------------------------------------------------------------
# small helpers
# ----------------------------------------------------------------------------
def _round_up(x, m):
    return (x + m - 1) // m * m


def _m_tile(m):
    """Pick an M tile: >=2 grid steps when M >= 64 (v7x megacore), small pad."""
    if m >= 1024:
        return 512
    if m >= 64:
        return min(512, _round_up(-(-m // 2), 16))
    return _round_up(max(m, 16), 16)


def _k_tile(kp):
    for t in (512, 384, 256, 128):
        if kp % t == 0:
            return t
    return kp


def _act(y, act):
    if act == "leaky_relu":
        return jnp.where(y >= 0, y, 0.01 * y)       # nn.LeakyReLU default slope
    if act == "relu":
        return jnp.maximum(y, 0.0)
    if act == "tanh":
        return jnp.tanh(y)
    return y                                        # 'none'


# ----------------------------------------------------------------------------
# Pallas kernels
# ----------------------------------------------------------------------------
def _gemm_kernel(x_ref, w_ref, b_ref, o_ref, acc_ref, *, act, nk):
    """Tiled GEMM: bf16 operands, resident weight, f32 acc, fused bias+act."""
    k = pl.program_id(1)
    tk = x_ref.shape[1]

    @pl.when(k == 0)
    def _():
        acc_ref[...] = jnp.zeros_like(acc_ref)

    if nk == 1:
        w = w_ref[...]
    else:
        koff = pl.multiple_of(k * tk, tk)
        w = w_ref[pl.ds(koff, tk), :]
    acc_ref[...] += jnp.dot(x_ref[...], w, preferred_element_type=jnp.float32)

    @pl.when(k == pl.num_programs(1) - 1)
    def _():
        y = acc_ref[...] + b_ref[...]               # f32 epilogue
        o_ref[...] = _act(y, act).astype(o_ref.dtype)


def _resblock_kernel(col_ref, w3_ref, w1_ref, r_ref, o_ref, acc_ref, *,
                     post_act, nk):
    """Fused ResidualLayer: 3x3 conv -> ReLU -> 1x1 conv -> +residual -> act.

    3x3 partial sums accumulate in VMEM scratch; the 1x1 GEMM, residual add
    and optional LeakyReLU run in the same kernel at the last K step.  Both
    weight matrices are VMEM-resident (constant-index BlockSpecs).
    """
    k = pl.program_id(1)
    tk = col_ref.shape[1]

    @pl.when(k == 0)
    def _():
        acc_ref[...] = jnp.zeros_like(acc_ref)

    if nk == 1:
        w3 = w3_ref[...]
    else:
        koff = pl.multiple_of(k * tk, tk)
        w3 = w3_ref[pl.ds(koff, tk), :]
    acc_ref[...] += jnp.dot(col_ref[...], w3, preferred_element_type=jnp.float32)

    @pl.when(k == pl.num_programs(1) - 1)
    def _():
        h = jnp.maximum(acc_ref[...], 0.0)                       # ReLU (f32)
        y = jnp.dot(h.astype(w1_ref.dtype), w1_ref[...],
                    preferred_element_type=jnp.float32)
        y = y + r_ref[...].astype(jnp.float32)                   # residual
        o_ref[...] = _act(y, post_act).astype(o_ref.dtype)


def _vq_kernel(lat_ref, embt_ref, emb_ref, e2_ref, q_ref, loss_ref, *,
               n_true, k_true, scale):
    """Row-tiled vector quantizer; codebook pre-transposed / pre-reduced."""
    i = pl.program_id(0)
    lat = lat_ref[...]                              # (tm, Dp) f32
    tm = lat.shape[0]
    kp = embt_ref.shape[1]

    x2 = jnp.sum(lat * lat, axis=1, keepdims=True)               # (tm, 1)
    cross = jnp.dot(lat, embt_ref[...],
                    preferred_element_type=jnp.float32)          # f32 matmul
    dist = x2 + e2_ref[...] - 2.0 * cross                        # (tm, Kp)

    col = jax.lax.broadcasted_iota(jnp.int32, dist.shape, 1)
    big = jnp.finfo(jnp.float32).max
    dist = jnp.where(col < k_true, dist, big)                    # mask padded codes
    dmin = jnp.min(dist, axis=1, keepdims=True)
    # first index achieving the minimum (matches torch.argmin tie-breaking)
    idx = jnp.min(jnp.where(dist <= dmin, col, kp), axis=1, keepdims=True)
    one_hot = (col == idx).astype(jnp.float32)

    q = jnp.dot(one_hot, emb_ref[...], preferred_element_type=jnp.float32)
    q_ref[...] = q

    row = jax.lax.broadcasted_iota(jnp.int32, (tm, 1), 0) + i * tm
    valid = (row < n_true).astype(jnp.float32)
    diff = (q - lat) * valid
    sq = jnp.sum(diff * diff)

    @pl.when(i == 0)
    def _():
        loss_ref[...] = jnp.zeros_like(loss_ref)

    # commitment_loss * beta + embedding_loss == mse * (1 + beta)   (scale)
    loss_ref[...] += jnp.reshape(sq, (1, 1)) * scale
    # TODO(synk): for large M, emit per-tile partial losses instead so the row
    # axis can be marked "parallel" on v7x; with one tile here it is moot.


# ----------------------------------------------------------------------------
# Pallas wrappers
# ----------------------------------------------------------------------------
def pallas_gemm(x_bf16, w_bf16, bias_f32, act, out_dtype=jnp.bfloat16):
    """x:(M,Kp) bf16, w:(Kp,Np) bf16 (resident), bias:(1,Np) f32 -> (M,Np)."""
    m, kdim = x_bf16.shape
    kp, np_ = w_bf16.shape
    assert kdim == kp, (kdim, kp)

    tm = _m_tile(m)
    mp = _round_up(m, tm)
    if mp != m:
        x_bf16 = jnp.pad(x_bf16, ((0, mp - m), (0, 0)))
    tk = _k_tile(kp)
    grid = (mp // tm, kp // tk)

    out = pl.pallas_call(
        partial(_gemm_kernel, act=act, nk=grid[1]),
        out_shape=jax.ShapeDtypeStruct((mp, np_), out_dtype),
        grid_spec=pltpu.PrefetchScalarGridSpec(
            num_scalar_prefetch=0,
            grid=grid,
            in_specs=[
                pl.BlockSpec((tm, tk), lambda i, k: (i, k)),
                pl.BlockSpec((kp, np_), lambda i, k: (0, 0)),   # resident weight
                pl.BlockSpec((1, np_), lambda i, k: (0, 0)),    # resident bias
            ],
            out_specs=pl.BlockSpec((tm, np_), lambda i, k: (i, 0)),
            scratch_shapes=[pltpu.VMEM((tm, np_), jnp.float32)],
        ),
        compiler_params=pltpu.CompilerParams(
            dimension_semantics=("parallel", "arbitrary"),
            vmem_limit_bytes=VMEM_LIMIT_BYTES,
        ),
    )(x_bf16, w_bf16, bias_f32)
    return out[:m] if mp != m else out


def pallas_residual_block(x, w3m, w1m, post_act):
    """Fused ResidualLayer on channel-padded bf16 NHWC activations."""
    n, h, w_sp, cp = x.shape                        # cp is a 128-multiple
    col, ho, wo = im2col(x, 3, 3, 1, (1, 1, 1, 1))  # bf16 col
    kdim = w3m.shape[0]                             # 9 * cp

    m = n * ho * wo
    tm = _m_tile(m)
    mp = _round_up(m, tm)
    colp = col if mp == m else jnp.pad(col, ((0, mp - m), (0, 0)))
    res = x.reshape(m, cp)
    resp = res if mp == m else jnp.pad(res, ((0, mp - m), (0, 0)))

    tk = _k_tile(kdim)
    grid = (mp // tm, kdim // tk)

    out = pl.pallas_call(
        partial(_resblock_kernel, post_act=post_act, nk=grid[1]),
        out_shape=jax.ShapeDtypeStruct((mp, cp), jnp.bfloat16),
        grid_spec=pltpu.PrefetchScalarGridSpec(
            num_scalar_prefetch=0,
            grid=grid,
            in_specs=[
                pl.BlockSpec((tm, tk), lambda i, k: (i, k)),
                pl.BlockSpec((kdim, cp), lambda i, k: (0, 0)),  # resident w3
                pl.BlockSpec((cp, cp), lambda i, k: (0, 0)),    # resident w1
                pl.BlockSpec((tm, cp), lambda i, k: (i, 0)),    # residual input
            ],
            out_specs=pl.BlockSpec((tm, cp), lambda i, k: (i, 0)),
            scratch_shapes=[pltpu.VMEM((tm, cp), jnp.float32)],
        ),
        compiler_params=pltpu.CompilerParams(
            dimension_semantics=("parallel", "arbitrary"),
            vmem_limit_bytes=VMEM_LIMIT_BYTES,
        ),
    )(colp, w3m, w1m, resp)
    return out[:m].reshape(n, ho, wo, cp)


def pallas_vq(lat, codebook, beta, k_true, d_true):
    """lat: (M, Dp) f32 channel-padded latents; codebook pre-packed."""
    emb, emb_t, e2 = codebook                       # (Kp,Dp), (Dp,Kp), (1,Kp)
    m, dp = lat.shape
    kp = emb.shape[0]

    tm = _m_tile(m)
    mp = _round_up(m, tm)
    latp = lat if mp == m else jnp.pad(lat, ((0, mp - m), (0, 0)))

    q, loss = pl.pallas_call(
        partial(_vq_kernel, n_true=m, k_true=k_true,
                scale=(1.0 + beta) / float(m * d_true)),
        out_shape=(jax.ShapeDtypeStruct((mp, dp), jnp.float32),
                   jax.ShapeDtypeStruct((1, 1), jnp.float32)),
        grid_spec=pltpu.PrefetchScalarGridSpec(
            num_scalar_prefetch=0,
            grid=(mp // tm,),
            in_specs=[pl.BlockSpec((tm, dp), lambda i: (i, 0)),
                      pl.BlockSpec((dp, kp), lambda i: (0, 0)),
                      pl.BlockSpec((kp, dp), lambda i: (0, 0)),
                      pl.BlockSpec((1, kp), lambda i: (0, 0))],
            out_specs=(pl.BlockSpec((tm, dp), lambda i: (i, 0)),
                       pl.BlockSpec((1, 1), lambda i: (0, 0))),
        ),
        compiler_params=pltpu.CompilerParams(
            dimension_semantics=("arbitrary",),
            vmem_limit_bytes=VMEM_LIMIT_BYTES,
        ),
    )(latp, emb_t, emb, e2)
    return q[:m], loss[0, 0]


# ----------------------------------------------------------------------------
# Conv glue (im2col in plain JAX, GEMM + epilogue in Pallas)
# ----------------------------------------------------------------------------
def im2col(x, kh, kw, stride, pads):
    # x: (N, H, W, C) bf16; pads = (top, bottom, left, right)
    # TODO(synk): replace with implicit-GEMM window reads to avoid the
    # materialized kh*kw-expanded HBM buffer.
    n, h, w, c = x.shape
    pt, pb, p_l, p_r = pads
    xp = jnp.pad(x, ((0, 0), (pt, pb), (p_l, p_r), (0, 0)))
    ho = (h + pt + pb - kh) // stride + 1
    wo = (w + p_l + p_r - kw) // stride + 1
    cols = []
    for i in range(kh):
        for j in range(kw):
            cols.append(xp[:, i:i + stride * ho:stride, j:j + stride * wo:stride, :])
    col = jnp.stack(cols, axis=3)                   # (N, Ho, Wo, kh*kw, C)
    return col.reshape(n * ho * wo, kh * kw * c), ho, wo


def conv2d(x, wm, bias, *, kh, kw, stride, pad, act, out_dtype=jnp.bfloat16):
    n, h, w_sp, c_act = x.shape
    kp, np_ = wm.shape

    if kh == 1 and kw == 1 and stride == 1 and pad == 0:
        col, ho, wo = x.reshape(n * h * w_sp, c_act), h, w_sp   # 1x1: no im2col
    else:
        col, ho, wo = im2col(x, kh, kw, stride, (pad, pad, pad, pad))

    kdim = kh * kw * c_act
    if kp != kdim:
        col = jnp.pad(col, ((0, 0), (0, kp - kdim)))

    y = pallas_gemm(col.astype(jnp.bfloat16), wm, bias, act, out_dtype=out_dtype)
    return y.reshape(n, ho, wo, np_)


def conv_transpose2d(x, wm, bias, act):
    """ConvTranspose2d(k=4, s=2, p=1) via subpixel decomposition (no dilation).

    A single 2x2 im2col over the 1-padded input feeds one GEMM whose 512-wide
    output columns hold all 4 output phases; phases are interleaved in bf16.
    """
    n, h, w_sp, c_act = x.shape
    col, ho, wo = im2col(x, 2, 2, 1, (1, 1, 1, 1))              # ho=h+1, wo=w+1
    kdim = 4 * c_act
    kp = wm.shape[0]
    if kp != kdim:
        col = jnp.pad(col, ((0, 0), (0, kp - kdim)))
    np_ = wm.shape[1] // 4

    y = pallas_gemm(col.astype(jnp.bfloat16), wm, bias, act,
                    out_dtype=jnp.bfloat16)
    y = y.reshape(n, ho, wo, 4, np_)

    p00 = y[:, 0:h, 0:w_sp, 0, :]
    p01 = y[:, 0:h, 1:w_sp + 1, 1, :]
    p10 = y[:, 1:h + 1, 0:w_sp, 2, :]
    p11 = y[:, 1:h + 1, 1:w_sp + 1, 3, :]
    row0 = jnp.stack([p00, p01], axis=3)            # (n, h, w, 2, Np)
    row1 = jnp.stack([p10, p11], axis=3)
    full = jnp.stack([row0, row1], axis=2)          # (n, h, 2, w, 2, Np)
    return full.reshape(n, 2 * h, 2 * w_sp, np_)


# ----------------------------------------------------------------------------
# One-time weight packing (runs once, outside the jitted forward)
# ----------------------------------------------------------------------------
def _pack_conv(w_oihw, b, c_act):
    cout, cin, kh, kw = w_oihw.shape
    np_ = _round_up(cout, LANE)
    kdim = kh * kw * c_act
    kp = _round_up(kdim, LANE)
    wm = jnp.transpose(w_oihw, (2, 3, 1, 0))                    # (kh,kw,cin,cout)
    wm = jnp.pad(wm, ((0, 0), (0, 0), (0, c_act - cin), (0, np_ - cout)))
    wm = wm.reshape(kdim, np_)
    if kp != kdim:
        wm = jnp.pad(wm, ((0, kp - kdim), (0, 0)))
    bias = jnp.zeros((cout,), jnp.float32) if b is None else b.astype(jnp.float32)
    bias = jnp.pad(bias, (0, np_ - cout)).reshape(1, np_)
    return (wm.astype(jnp.bfloat16), bias)


def _pack_resblock(w3_oihw, w1_oihw, cp):
    cout = w3_oihw.shape[0]
    kdim = 9 * cp
    w3 = jnp.transpose(w3_oihw, (2, 3, 1, 0))
    w3 = jnp.pad(w3, ((0, 0), (0, 0),
                      (0, cp - w3_oihw.shape[1]), (0, cp - cout)))
    w3 = w3.reshape(kdim, cp).astype(jnp.bfloat16)
    w1 = jnp.transpose(w1_oihw, (2, 3, 1, 0)).reshape(w1_oihw.shape[1], cout)
    w1 = jnp.pad(w1, ((0, cp - w1_oihw.shape[1]),
                      (0, cp - cout))).astype(jnp.bfloat16)
    return (w3, w1)


def _pack_convT(w_iohw, b, c_act):
    cin, cout, kh, kw = w_iohw.shape
    assert (kh, kw) == (4, 4)
    np_ = _round_up(cout, LANE)
    kdim = 4 * c_act
    kp = _round_up(kdim, LANE)
    taps = ((3, 1), (2, 0))                         # kernel taps per output phase
    cols = []
    for a in (0, 1):
        for bp in (0, 1):
            wp = jnp.take(jnp.take(w_iohw, jnp.array(taps[a]), axis=2),
                          jnp.array(taps[bp]), axis=3)          # (cin,cout,2,2)
            wp = jnp.transpose(wp, (2, 3, 0, 1))                # (2,2,cin,cout)
            wp = jnp.pad(wp, ((0, 0), (0, 0),
                              (0, c_act - cin), (0, np_ - cout)))
            wp = wp.reshape(kdim, np_)
            if kp != kdim:
                wp = jnp.pad(wp, ((0, kp - kdim), (0, 0)))
            cols.append(wp)
    wm = jnp.concatenate(cols, axis=1).astype(jnp.bfloat16)     # (Kp, 4*Np)
    bias = jnp.pad(b.astype(jnp.float32), (0, np_ - cout))
    bias = jnp.tile(bias, 4).reshape(1, 4 * np_)
    return (wm, bias)


def _pack_codebook(embedding, dp):
    k_true, d = embedding.shape
    kp = _round_up(k_true, LANE)
    emb = jnp.pad(embedding.astype(jnp.float32), ((0, kp - k_true), (0, dp - d)))
    emb_t = jnp.asarray(emb.T)                      # (Dp, Kp) contiguous
    e2 = jnp.sum(emb * emb, axis=1).reshape(1, kp)  # (1, Kp)
    return (emb, emb_t, e2)


def prepare_params(raw, in_channels):
    """Transpose / pad / cast all weights once; returns an array-only pytree."""
    p = {}
    c = in_channels                                 # raw image channels (unpadded)
    w, b = raw["enc0"]; p["enc0"] = _pack_conv(w, b, c); c = _round_up(w.shape[0], LANE)
    w, b = raw["enc1"]; p["enc1"] = _pack_conv(w, b, c); c = _round_up(w.shape[0], LANE)
    w, b = raw["enc2"]; p["enc2"] = _pack_conv(w, b, c); c = _round_up(w.shape[0], LANE)
    for i in range(6):
        w3, w1 = raw[f"enc_res{i}"]
        p[f"enc_res{i}"] = _pack_resblock(w3, w1, c)
    w, b = raw["enc3"]; p["enc3"] = _pack_conv(w, b, c); c = _round_up(w.shape[0], LANE)
    p["vq"] = _pack_codebook(raw["embedding"], c)
    w, b = raw["dec0"]; p["dec0"] = _pack_conv(w, b, c); c = _round_up(w.shape[0], LANE)
    for i in range(6):
        w3, w1 = raw[f"dec_res{i}"]
        p[f"dec_res{i}"] = _pack_resblock(w3, w1, c)
    w, b = raw["dect0"]; p["dect0"] = _pack_convT(w, b, c); c = _round_up(w.shape[1], LANE)
    w, b = raw["dect1"]; p["dect1"] = _pack_convT(w, b, c); c = _round_up(w.shape[1], LANE)
    return p


# ----------------------------------------------------------------------------
# VQVAE forward
# ----------------------------------------------------------------------------
def vqvae_forward(packed, x_nchw, *, beta, num_embeddings, embedding_dim):
    x = jnp.transpose(x_nchw, (0, 2, 3, 1)).astype(jnp.bfloat16)   # NCHW -> NHWC

    # ----- encoder -----
    h = conv2d(x, *packed["enc0"], kh=4, kw=4, stride=2, pad=1, act="leaky_relu")
    h = conv2d(h, *packed["enc1"], kh=4, kw=4, stride=2, pad=1, act="leaky_relu")
    h = conv2d(h, *packed["enc2"], kh=3, kw=3, stride=1, pad=1, act="leaky_relu")
    for i in range(6):
        post = "leaky_relu" if i == 5 else "none"   # standalone LeakyReLU after block 6
        h = pallas_residual_block(h, *packed[f"enc_res{i}"], post)
    # latents in f32 so the VQ nearest-neighbour matches the torch f32 distance
    h = conv2d(h, *packed["enc3"], kh=1, kw=1, stride=1, pad=0,
               act="leaky_relu", out_dtype=jnp.float32)

    # ----- vector quantizer -----
    # TODO(synk): forward value only; no straight-through gradient path.
    n, hh, ww, dp = h.shape
    q_flat, vq_loss = pallas_vq(h.reshape(-1, dp), packed["vq"], beta,
                                num_embeddings, embedding_dim)
    q = q_flat.reshape(n, hh, ww, dp).astype(jnp.bfloat16)

    # ----- decoder -----
    y = conv2d(q, *packed["dec0"], kh=3, kw=3, stride=1, pad=1, act="leaky_relu")
    for i in range(6):
        post = "leaky_relu" if i == 5 else "none"
        y = pallas_residual_block(y, *packed[f"dec_res{i}"], post)
    y = conv_transpose2d(y, *packed["dect0"], act="leaky_relu")
    y = conv_transpose2d(y, *packed["dect1"], act="tanh")

    recon = jnp.transpose(y[..., :16], (0, 3, 1, 2)).astype(jnp.float32)
    return recon, x_nchw, vq_loss


# ----------------------------------------------------------------------------
# Deterministic parameter construction (shapes match the PyTorch __init__)
# ----------------------------------------------------------------------------
def init_params(key, in_channels, hidden_dims, embedding_dim, num_embeddings):
    keys = iter(jax.random.split(key, 64))

    def conv_p(cout, cin, k, bias=True):
        bound = 1.0 / math.sqrt(cin * k * k)
        w = jax.random.uniform(next(keys), (cout, cin, k, k), jnp.float32, -bound, bound)
        b = (jax.random.uniform(next(keys), (cout,), jnp.float32, -bound, bound)
             if bias else None)
        return (w, b)

    def convT_p(cin, cout, k):
        bound = 1.0 / math.sqrt(cout * k * k)
        w = jax.random.uniform(next(keys), (cin, cout, k, k), jnp.float32, -bound, bound)
        b = jax.random.uniform(next(keys), (cout,), jnp.float32, -bound, bound)
        return (w, b)

    h0, h1 = hidden_dims
    p = {}
    p["enc0"] = conv_p(h0, in_channels, 4)
    p["enc1"] = conv_p(h1, h0, 4)
    p["enc2"] = conv_p(h1, h1, 3)
    for i in range(6):
        w3, _ = conv_p(h1, h1, 3, bias=False)
        w1, _ = conv_p(h1, h1, 1, bias=False)
        p[f"enc_res{i}"] = (w3, w1)
    p["enc3"] = conv_p(embedding_dim, h1, 1)
    p["embedding"] = jax.random.uniform(
        next(keys), (num_embeddings, embedding_dim), jnp.float32,
        -1.0 / num_embeddings, 1.0 / num_embeddings)
    p["dec0"] = conv_p(h1, embedding_dim, 3)
    for i in range(6):
        w3, _ = conv_p(h1, h1, 3, bias=False)
        w1, _ = conv_p(h1, h1, 1, bias=False)
        p[f"dec_res{i}"] = (w3, w1)
    p["dect0"] = convT_p(h1, h0, 4)
    p["dect1"] = convT_p(h0, 16, 4)                 # final decoder always outputs 16 ch
    return p


# ----------------------------------------------------------------------------
if __name__ == "__main__":
    B, C, IMG = 2, 4, 16
    hidden_dims = [16, 32]
    embedding_dim, num_embeddings = 8, 16
    beta = 0.25

    key = jax.random.PRNGKey(0)
    raw_params = init_params(key, C, hidden_dims, embedding_dim, num_embeddings)
    packed_params = prepare_params(raw_params, C)   # one-time pack, outside jit
    x = jax.random.normal(jax.random.PRNGKey(0), (B, C, IMG, IMG), jnp.float32)

    fwd = jax.jit(partial(vqvae_forward, beta=beta,
                          num_embeddings=num_embeddings,
                          embedding_dim=embedding_dim))
    recon, inp, vq_loss = fwd(packed_params, x)
    jax.block_until_ready((recon, inp, vq_loss))

    assert recon.shape == (B, 16, IMG, IMG), recon.shape
    assert inp.shape == (B, C, IMG, IMG), inp.shape
    assert vq_loss.shape == (), vq_loss.shape
    assert bool(jnp.isfinite(vq_loss)), vq_loss
    assert bool(jnp.all(jnp.isfinite(recon)))
    print("KERNEL_OK")
</pallas_src>

<mosaic_0001>
module attributes {stable_mosaic.version = 11 : i64} {
  func.func @_gemm_kernel(%arg0: i32, %arg1: i32, %arg2: memref<64x128xbf16, #tpu.memory_space<vmem>>, %arg3: memref<128x128xbf16, #tpu.memory_space<vmem>>, %arg4: memref<1x128xf32, #tpu.memory_space<vmem>>, %arg5: memref<64x128xbf16, #tpu.memory_space<vmem>>, %arg6: memref<64x128xf32, #tpu.memory_space<vmem>>) attributes {dimension_semantics = [#tpu.dimension_semantics<parallel>, #tpu.dimension_semantics<arbitrary>], iteration_bounds = array<i64: 2, 1>, scalar_prefetch = 0 : i64, scratch_operands = 1 : i64, tpu.core_type = #tpu.core_type<tc>, window_params = [{transform_indices = @transform_0, window_bounds = array<i64: 64, 128>}, {pipeline_mode = #tpu.pipeline_mode<synchronous>, transform_indices = @transform_1, window_bounds = array<i64: 128, 128>}, {pipeline_mode = #tpu.pipeline_mode<synchronous>, transform_indices = @transform_2, window_bounds = array<i64: 1, 128>}, {transform_indices = @transform_3, window_bounds = array<i64: 64, 128>}]} {
    %c0_i32 = arith.constant 0 : i32
    %0 = arith.cmpi eq, %arg1, %c0_i32 : i32
    %1 = arith.extui %0 : i1 to i32
    %c0_i32_0 = arith.constant 0 : i32
    %2 = arith.cmpi ne, %1, %c0_i32_0 : i32
    scf.if %2 {
      %cst_10 = arith.constant 0.000000e+00 : f32
      %12 = vector.broadcast %cst_10 : f32 to vector<64x128xf32>
      %c0_11 = arith.constant 0 : index
      %c0_12 = arith.constant 0 : index
      %13 = vector.load %arg6[%c0_11, %c0_12] : memref<64x128xf32, #tpu.memory_space<vmem>>, vector<64x128xf32>
      tpu.vector_store %arg6[%c0_11, %c0_12], %12 {strides = array<i32>} : memref<64x128xf32, #tpu.memory_space<vmem>>, vector<64x128xf32>,
    } else {
    }
    %c0 = arith.constant 0 : index
    %c0_1 = arith.constant 0 : index
    %3 = vector.load %arg3[%c0, %c0_1] : memref<128x128xbf16, #tpu.memory_space<vmem>>, vector<128x128xbf16>
    %c0_2 = arith.constant 0 : index
    %c0_3 = arith.constant 0 : index
    %4 = vector.load %arg6[%c0_2, %c0_3] : memref<64x128xf32, #tpu.memory_space<vmem>>, vector<64x128xf32>
    %c0_4 = arith.constant 0 : index
    %c0_5 = arith.constant 0 : index
    %5 = vector.load %arg2[%c0_4, %c0_5] : memref<64x128xbf16, #tpu.memory_space<vmem>>, vector<64x128xbf16>
    %cst = arith.constant dense<0.000000e+00> : vector<64x128xf32>
    %6 = tpu.matmul %5, %3, %cst {dimension_numbers = #tpu.dot_dimension_numbers<[1], [0], [0], [1], [0, 0, 1, 1], [], []>} : vector<64x128xbf16>, vector<128x128xbf16>, vector<64x128xf32> -> vector<64x128xf32>
    %7 = arith.addf %4, %6 : vector<64x128xf32>
    %c0_6 = arith.constant 0 : index
    %c0_7 = arith.constant 0 : index
    %8 = vector.load %arg6[%c0_6, %c0_7] : memref<64x128xf32, #tpu.memory_space<vmem>>, vector<64x128xf32>
    tpu.vector_store %arg6[%c0_6, %c0_7], %7 {strides = array<i32>} : memref<64x128xf32, #tpu.memory_space<vmem>>, vector<64x128xf32>,
    %c0_i32_8 = arith.constant 0 : i32
    %9 = arith.cmpi eq, %arg1, %c0_i32_8 : i32
    %10 = arith.extui %9 : i1 to i32
    %c0_i32_9 = arith.constant 0 : i32
    %11 = arith.cmpi ne, %10, %c0_i32_9 : i32
    scf.if %11 {
      %c0_10 = arith.constant 0 : index
      %c0_11 = arith.constant 0 : index
      %12 = vector.load %arg6[%c0_10, %c0_11] : memref<64x128xf32, #tpu.memory_space<vmem>>, vector<64x128xf32>
      %c0_12 = arith.constant 0 : index
      %c0_13 = arith.constant 0 : index
      %13 = vector.load %arg4[%c0_12, %c0_13] : memref<1x128xf32, #tpu.memory_space<vmem>>, vector<1x128xf32>
      %14 = vector.broadcast %13 : vector<1x128xf32> to vector<64x128xf32>
      %15 = arith.addf %12, %14 : vector<64x128xf32>
      %cst_14 = arith.constant 0.000000e+00 : f32
      %16 = vector.broadcast %cst_14 : f32 to vector<64x128xf32>
      %17 = arith.cmpf oge, %15, %16 : vector<64x128xf32>
      %cst_15 = arith.constant 0.00999999977 : f32
      %18 = vector.broadcast %cst_15 : f32 to vector<64x128xf32>
      %19 = arith.mulf %18, %15 : vector<64x128xf32>
      %20 = arith.select %17, %15, %19 : vector<64x128xi1>, vector<64x128xf32>
      %21 = arith.truncf %20 : vector<64x128xf32> to vector<64x128xbf16>
      %c0_16 = arith.constant 0 : index
      %c0_17 = arith.constant 0 : index
      %22 = vector.load %arg5[%c0_16, %c0_17] : memref<64x128xbf16, #tpu.memory_space<vmem>>, vector<64x128xbf16>
      tpu.vector_store %arg5[%c0_16, %c0_17], %21 {strides = array<i32>} : memref<64x128xbf16, #tpu.memory_space<vmem>>, vector<64x128xbf16>,
    } else {
    }
    return
  }
  func.func @transform_0(%arg0: i32, %arg1: i32) -> (i32, i32) {
    %c0_i32 = arith.constant 0 : i32
    return %arg0, %arg1 : i32, i32
  }
  func.func @transform_1(%arg0: i32, %arg1: i32) -> (i32, i32) {
    %c0_i32 = arith.constant 0 : i32
    %c0_i32_0 = arith.constant 0 : i32
    %c0_i32_1 = arith.constant 0 : i32
    return %c0_i32, %c0_i32_0 : i32, i32
  }
  func.func @transform_2(%arg0: i32, %arg1: i32) -> (i32, i32) {
    %c0_i32 = arith.constant 0 : i32
    %c0_i32_0 = arith.constant 0 : i32
    %c0_i32_1 = arith.constant 0 : i32
    return %c0_i32, %c0_i32_0 : i32, i32
  }
  func.func @transform_3(%arg0: i32, %arg1: i32) -> (i32, i32) {
    %c0_i32 = arith.constant 0 : i32
    %c0_i32_0 = arith.constant 0 : i32
    return %arg0, %c0_i32 : i32, i32
  }
}

module attributes {stable_mosaic.version = 11 : i64} {
  func.func @_gemm_kernel(%arg0: i32, %arg1: i32, %arg2: memref<32x512xbf16, #tpu.memory_space<vmem>>, %arg3: memref<2048x128xbf16, #tpu.memory_space<vmem>>, %arg4: memref<1x128xf32, #tpu.memory_space<vmem>>, %arg5: memref<32x128xbf16, #tpu.memory_space<vmem>>, %arg6: memref<32x128xf32, #tpu.memory_space<vmem>>) attributes {dimension_semantics = [#tpu.dimension_semantics<parallel>, #tpu.dimension_semantics<arbitrary>], iteration_bounds = array<i64: 1, 4>, scalar_prefetch = 0 : i64, scratch_operands = 1 : i64, tpu.core_type = #tpu.core_type<tc>, window_params = [{transform_indices = @transform_0, window_bounds = array<i64: 32, 512>}, {pipeline_mode = #tpu.pipeline_mode<synchronous>, transform_indices = @transform_1, window_bounds = array<i64: 2048, 128>}, {pipeline_mode = #tpu.pipeline_mode<synchronous>, transform_indices = @transform_2, window_bounds = array<i64: 1, 128>}, {transform_indices = @transform_3, window_bounds = array<i64: 32, 128>}]} {
    %c0_i32 = arith.constant 0 : i32
    %0 = arith.cmpi eq, %arg1, %c0_i32 : i32
    %1 = arith.extui %0 : i1 to i32
    %c0_i32_0 = arith.constant 0 : i32
    %2 = arith.cmpi ne, %1, %c0_i32_0 : i32
    scf.if %2 {
      %cst_8 = arith.constant 0.000000e+00 : f32
      %15 = vector.broadcast %cst_8 : f32 to vector<32x128xf32>
      %c0_9 = arith.constant 0 : index
      %c0_10 = arith.constant 0 : index
      %16 = vector.load %arg6[%c0_9, %c0_10] : memref<32x128xf32, #tpu.memory_space<vmem>>, vector<32x128xf32>
      tpu.vector_store %arg6[%c0_9, %c0_10], %15 {strides = array<i32>} : memref<32x128xf32, #tpu.memory_space<vmem>>, vector<32x128xf32>,
    } else {
    }
    %c512_i32 = arith.constant 512 : i32
    %3 = arith.muli %arg1, %c512_i32 : i32
    %4 = tpu.assume_multiple %3, 512 : i32
    %5 = arith.index_cast %4 : i32 to index
    %c0 = arith.constant 0 : index
    %6 = vector.load %arg3[%5, %c0] : memref<2048x128xbf16, #tpu.memory_space<vmem>>, vector<512x128xbf16>
    %c0_1 = arith.constant 0 : index
    %c0_2 = arith.constant 0 : index
    %7 = vector.load %arg6[%c0_1, %c0_2] : memref<32x128xf32, #tpu.memory_space<vmem>>, vector<32x128xf32>
    %c0_3 = arith.constant 0 : index
    %c0_4 = arith.constant 0 : index
    %8 = vector.load %arg2[%c0_3, %c0_4] : memref<32x512xbf16, #tpu.memory_space<vmem>>, vector<32x512xbf16>
    %cst = arith.constant dense<0.000000e+00> : vector<32x128xf32>
    %9 = tpu.matmul %8, %6, %cst {dimension_numbers = #tpu.dot_dimension_numbers<[1], [0], [0], [1], [0, 0, 1, 1], [], []>} : vector<32x512xbf16>, vector<512x128xbf16>, vector<32x128xf32> -> vector<32x128xf32>
    %10 = arith.addf %7, %9 : vector<32x128xf32>
    %c0_5 = arith.constant 0 : index
    %c0_6 = arith.constant 0 : index
    %11 = vector.load %arg6[%c0_5, %c0_6] : memref<32x128xf32, #tpu.memory_space<vmem>>, vector<32x128xf32>
    tpu.vector_store %arg6[%c0_5, %c0_6], %10 {strides = array<i32>} : memref<32x128xf32, #tpu.memory_space<vmem>>, vector<32x128xf32>,
    %c3_i32 = arith.constant 3 : i32
    %12 = arith.cmpi eq, %arg1, %c3_i32 : i32
    %13 = arith.extui %12 : i1 to i32
    %c0_i32_7 = arith.constant 0 : i32
    %14 = arith.cmpi ne, %13, %c0_i32_7 : i32
    scf.if %14 {
      %c0_8 = arith.constant 0 : index
      %c0_9 = arith.constant 0 : index
      %15 = vector.load %arg6[%c0_8, %c0_9] : memref<32x128xf32, #tpu.memory_space<vmem>>, vector<32x128xf32>
      %c0_10 = arith.constant 0 : index
      %c0_11 = arith.constant 0 : index
      %16 = vector.load %arg4[%c0_10, %c0_11] : memref<1x128xf32, #tpu.memory_space<vmem>>, vector<1x128xf32>
      %17 = vector.broadcast %16 : vector<1x128xf32> to vector<32x128xf32>
      %18 = arith.addf %15, %17 : vector<32x128xf32>
      %cst_12 = arith.constant 0.000000e+00 : f32
      %19 = vector.broadcast %cst_12 : f32 to vector<32x128xf32>
      %20 = arith.cmpf oge, %18, %19 : vector<32x128xf32>
      %cst_13 = arith.constant 0.00999999977 : f32
      %21 = vector.broadcast %cst_13 : f32 to vector<32x128xf32>
      %22 = arith.mulf %21, %18 : vector<32x128xf32>
      %23 = arith.select %20, %18, %22 : vector<32x128xi1>, vector<32x128xf32>
      %24 = arith.truncf %23 : vector<32x128xf32> to vector<32x128xbf16>
      %c0_14 = arith.constant 0 : index
      %c0_15 = arith.constant 0 : index
      %25 = vector.load %arg5[%c0_14, %c0_15] : memref<32x128xbf16, #tpu.memory_space<vmem>>, vector<32x128xbf16>
      tpu.vector_store %arg5[%c0_14, %c0_15], %24 {strides = array<i32>} : memref<32x128xbf16, #tpu.memory_space<vmem>>, vector<32x128xbf16>,
    } else {
    }
    return
  }
  func.func @transform_0(%arg0: i32, %arg1: i32) -> (i32, i32) {
    %c0_i32 = arith.constant 0 : i32
    return %arg0, %arg1 : i32, i32
  }
  func.func @transform_1(%arg0: i32, %arg1: i32) -> (i32, i32) {
    %c0_i32 = arith.constant 0 : i32
    %c0_i32_0 = arith.constant 0 : i32
    %c0_i32_1 = arith.constant 0 : i32
    return %c0_i32, %c0_i32_0 : i32, i32
  }
  func.func @transform_2(%arg0: i32, %arg1: i32) -> (i32, i32) {
    %c0_i32 = arith.constant 0 : i32
    %c0_i32_0 = arith.constant 0 : i32
    %c0_i32_1 = arith.constant 0 : i32
    return %c0_i32, %c0_i32_0 : i32, i32
  }
  func.func @transform_3(%arg0: i32, %arg1: i32) -> (i32, i32) {
    %c0_i32 = arith.constant 0 : i32
    %c0_i32_0 = arith.constant 0 : i32
    return %arg0, %c0_i32 : i32, i32
  }
}

module attributes {stable_mosaic.version = 11 : i64} {
  func.func @_gemm_kernel(%arg0: i32, %arg1: i32, %arg2: memref<32x384xbf16, #tpu.memory_space<vmem>>, %arg3: memref<1152x128xbf16, #tpu.memory_space<vmem>>, %arg4: memref<1x128xf32, #tpu.memory_space<vmem>>, %arg5: memref<32x128xbf16, #tpu.memory_space<vmem>>, %arg6: memref<32x128xf32, #tpu.memory_space<vmem>>) attributes {dimension_semantics = [#tpu.dimension_semantics<parallel>, #tpu.dimension_semantics<arbitrary>], iteration_bounds = array<i64: 1, 3>, scalar_prefetch = 0 : i64, scratch_operands = 1 : i64, tpu.core_type = #tpu.core_type<tc>, window_params = [{transform_indices = @transform_0, window_bounds = array<i64: 32, 384>}, {pipeline_mode = #tpu.pipeline_mode<synchronous>, transform_indices = @transform_1, window_bounds = array<i64: 1152, 128>}, {pipeline_mode = #tpu.pipeline_mode<synchronous>, transform_indices = @transform_2, window_bounds = array<i64: 1, 128>}, {transform_indices = @transform_3, window_bounds = array<i64: 32, 128>}]} {
    %c0_i32 = arith.constant 0 : i32
    %0 = arith.cmpi eq, %arg1, %c0_i32 : i32
    %1 = arith.extui %0 : i1 to i32
    %c0_i32_0 = arith.constant 0 : i32
    %2 = arith.cmpi ne, %1, %c0_i32_0 : i32
    scf.if %2 {
      %cst_8 = arith.constant 0.000000e+00 : f32
      %15 = vector.broadcast %cst_8 : f32 to vector<32x128xf32>
      %c0_9 = arith.constant 0 : index
      %c0_10 = arith.constant 0 : index
      %16 = vector.load %arg6[%c0_9, %c0_10] : memref<32x128xf32, #tpu.memory_space<vmem>>, vector<32x128xf32>
      tpu.vector_store %arg6[%c0_9, %c0_10], %15 {strides = array<i32>} : memref<32x128xf32, #tpu.memory_space<vmem>>, vector<32x128xf32>,
    } else {
    }
    %c384_i32 = arith.constant 384 : i32
    %3 = arith.muli %arg1, %c384_i32 : i32
    %4 = tpu.assume_multiple %3, 384 : i32
    %5 = arith.index_cast %4 : i32 to index
    %c0 = arith.constant 0 : index
    %6 = vector.load %arg3[%5, %c0] : memref<1152x128xbf16, #tpu.memory_space<vmem>>, vector<384x128xbf16>
    %c0_1 = arith.constant 0 : index
    %c0_2 = arith.constant 0 : index
    %7 = vector.load %arg6[%c0_1, %c0_2] : memref<32x128xf32, #tpu.memory_space<vmem>>, vector<32x128xf32>
    %c0_3 = arith.constant 0 : index
    %c0_4 = arith.constant 0 : index
    %8 = vector.load %arg2[%c0_3, %c0_4] : memref<32x384xbf16, #tpu.memory_space<vmem>>, vector<32x384xbf16>
    %cst = arith.constant dense<0.000000e+00> : vector<32x128xf32>
    %9 = tpu.matmul %8, %6, %cst {dimension_numbers = #tpu.dot_dimension_numbers<[1], [0], [0], [1], [0, 0, 1, 1], [], []>} : vector<32x384xbf16>, vector<384x128xbf16>, vector<32x128xf32> -> vector<32x128xf32>
    %10 = arith.addf %7, %9 : vector<32x128xf32>
    %c0_5 = arith.constant 0 : index
    %c0_6 = arith.constant 0 : index
    %11 = vector.load %arg6[%c0_5, %c0_6] : memref<32x128xf32, #tpu.memory_space<vmem>>, vector<32x128xf32>
    tpu.vector_store %arg6[%c0_5, %c0_6], %10 {strides = array<i32>} : memref<32x128xf32, #tpu.memory_space<vmem>>, vector<32x128xf32>,
    %c2_i32 = arith.constant 2 : i32
    %12 = arith.cmpi eq, %arg1, %c2_i32 : i32
    %13 = arith.extui %12 : i1 to i32
    %c0_i32_7 = arith.constant 0 : i32
    %14 = arith.cmpi ne, %13, %c0_i32_7 : i32
    scf.if %14 {
      %c0_8 = arith.constant 0 : index
      %c0_9 = arith.constant 0 : index
      %15 = vector.load %arg6[%c0_8, %c0_9] : memref<32x128xf32, #tpu.memory_space<vmem>>, vector<32x128xf32>
      %c0_10 = arith.constant 0 : index
      %c0_11 = arith.constant 0 : index
      %16 = vector.load %arg4[%c0_10, %c0_11] : memref<1x128xf32, #tpu.memory_space<vmem>>, vector<1x128xf32>
      %17 = vector.broadcast %16 : vector<1x128xf32> to vector<32x128xf32>
      %18 = arith.addf %15, %17 : vector<32x128xf32>
      %cst_12 = arith.constant 0.000000e+00 : f32
      %19 = vector.broadcast %cst_12 : f32 to vector<32x128xf32>
      %20 = arith.cmpf oge, %18, %19 : vector<32x128xf32>
      %cst_13 = arith.constant 0.00999999977 : f32
      %21 = vector.broadcast %cst_13 : f32 to vector<32x128xf32>
      %22 = arith.mulf %21, %18 : vector<32x128xf32>
      %23 = arith.select %20, %18, %22 : vector<32x128xi1>, vector<32x128xf32>
      %24 = arith.truncf %23 : vector<32x128xf32> to vector<32x128xbf16>
      %c0_14 = arith.constant 0 : index
      %c0_15 = arith.constant 0 : index
      %25 = vector.load %arg5[%c0_14, %c0_15] : memref<32x128xbf16, #tpu.memory_space<vmem>>, vector<32x128xbf16>
      tpu.vector_store %arg5[%c0_14, %c0_15], %24 {strides = array<i32>} : memref<32x128xbf16, #tpu.memory_space<vmem>>, vector<32x128xbf16>,
    } else {
    }
    return
  }
  func.func @transform_0(%arg0: i32, %arg1: i32) -> (i32, i32) {
    %c0_i32 = arith.constant 0 : i32
    return %arg0, %arg1 : i32, i32
  }
  func.func @transform_1(%arg0: i32, %arg1: i32) -> (i32, i32) {
    %c0_i32 = arith.constant 0 : i32
    %c0_i32_0 = arith.constant 0 : i32
    %c0_i32_1 = arith.constant 0 : i32
    return %c0_i32, %c0_i32_0 : i32, i32
  }
  func.func @transform_2(%arg0: i32, %arg1: i32) -> (i32, i32) {
    %c0_i32 = arith.constant 0 : i32
    %c0_i32_0 = arith.constant 0 : i32
    %c0_i32_1 = arith.constant 0 : i32
    return %c0_i32, %c0_i32_0 : i32, i32
  }
  func.func @transform_3(%arg0: i32, %arg1: i32) -> (i32, i32) {
    %c0_i32 = arith.constant 0 : i32
    %c0_i32_0 = arith.constant 0 : i32
    return %arg0, %c0_i32 : i32, i32
  }
}

module attributes {stable_mosaic.version = 11 : i64} {
  func.func @_resblock_kernel(%arg0: i32, %arg1: i32, %arg2: memref<32x384xbf16, #tpu.memory_space<vmem>>, %arg3: memref<1152x128xbf16, #tpu.memory_space<vmem>>, %arg4: memref<128x128xbf16, #tpu.memory_space<vmem>>, %arg5: memref<32x128xbf16, #tpu.memory_space<vmem>>, %arg6: memref<32x128xbf16, #tpu.memory_space<vmem>>, %arg7: memref<32x128xf32, #tpu.memory_space<vmem>>) attributes {dimension_semantics = [#tpu.dimension_semantics<parallel>, #tpu.dimension_semantics<arbitrary>], iteration_bounds = array<i64: 1, 3>, scalar_prefetch = 0 : i64, scratch_operands = 1 : i64, tpu.core_type = #tpu.core_type<tc>, window_params = [{transform_indices = @transform_0, window_bounds = array<i64: 32, 384>}, {pipeline_mode = #tpu.pipeline_mode<synchronous>, transform_indices = @transform_1, window_bounds = array<i64: 1152, 128>}, {pipeline_mode = #tpu.pipeline_mode<synchronous>, transform_indices = @transform_2, window_bounds = array<i64: 128, 128>}, {transform_indices = @transform_3, window_bounds = array<i64: 32, 128>}, {transform_indices = @transform_4, window_bounds = array<i64: 32, 128>}]} {
    %c0_i32 = arith.constant 0 : i32
    %0 = arith.cmpi eq, %arg1, %c0_i32 : i32
    %1 = arith.extui %0 : i1 to i32
    %c0_i32_0 = arith.constant 0 : i32
    %2 = arith.cmpi ne, %1, %c0_i32_0 : i32
    scf.if %2 {
      %cst_8 = arith.constant 0.000000e+00 : f32
      %15 = vector.broadcast %cst_8 : f32 to vector<32x128xf32>
      %c0_9 = arith.constant 0 : index
      %c0_10 = arith.constant 0 : index
      %16 = vector.load %arg7[%c0_9, %c0_10] : memref<32x128xf32, #tpu.memory_space<vmem>>, vector<32x128xf32>
      tpu.vector_store %arg7[%c0_9, %c0_10], %15 {strides = array<i32>} : memref<32x128xf32, #tpu.memory_space<vmem>>, vector<32x128xf32>,
    } else {
    }
    %c384_i32 = arith.constant 384 : i32
    %3 = arith.muli %arg1, %c384_i32 : i32
    %4 = tpu.assume_multiple %3, 384 : i32
    %5 = arith.index_cast %4 : i32 to index
    %c0 = arith.constant 0 : index
    %6 = vector.load %arg3[%5, %c0] : memref<1152x128xbf16, #tpu.memory_space<vmem>>, vector<384x128xbf16>
    %c0_1 = arith.constant 0 : index
    %c0_2 = arith.constant 0 : index
    %7 = vector.load %arg7[%c0_1, %c0_2] : memref<32x128xf32, #tpu.memory_space<vmem>>, vector<32x128xf32>
    %c0_3 = arith.constant 0 : index
    %c0_4 = arith.constant 0 : index
    %8 = vector.load %arg2[%c0_3, %c0_4] : memref<32x384xbf16, #tpu.memory_space<vmem>>, vector<32x384xbf16>
    %cst = arith.constant dense<0.000000e+00> : vector<32x128xf32>
    %9 = tpu.matmul %8, %6, %cst {dimension_numbers = #tpu.dot_dimension_numbers<[1], [0], [0], [1], [0, 0, 1, 1], [], []>} : vector<32x384xbf16>, vector<384x128xbf16>, vector<32x128xf32> -> vector<32x128xf32>
    %10 = arith.addf %7, %9 : vector<32x128xf32>
    %c0_5 = arith.constant 0 : index
    %c0_6 = arith.constant 0 : index
    %11 = vector.load %arg7[%c0_5, %c0_6] : memref<32x128xf32, #tpu.memory_space<vmem>>, vector<32x128xf32>
    tpu.vector_store %arg7[%c0_5, %c0_6], %10 {strides = array<i32>} : memref<32x128xf32, #tpu.memory_space<vmem>>, vector<32x128xf32>,
    %c2_i32 = arith.constant 2 : i32
    %12 = arith.cmpi eq, %arg1, %c2_i32 : i32
    %13 = arith.extui %12 : i1 to i32
    %c0_i32_7 = arith.constant 0 : i32
    %14 = arith.cmpi ne, %13, %c0_i32_7 : i32
    scf.if %14 {
      %c0_8 = arith.constant 0 : index
      %c0_9 = arith.constant 0 : index
      %15 = vector.load %arg7[%c0_8, %c0_9] : memref<32x128xf32, #tpu.memory_space<vmem>>, vector<32x128xf32>
      %cst_10 = arith.constant 0.000000e+00 : f32
      %16 = vector.broadcast %cst_10 : f32 to vector<32x128xf32>
      %17 = arith.maximumf %15, %16 : vector<32x128xf32>
      %18 = arith.truncf %17 : vector<32x128xf32> to vector<32x128xbf16>
      %c0_11 = arith.constant 0 : index
      %c0_12 = arith.constant 0 : index
      %19 = vector.load %arg4[%c0_11, %c0_12] : memref<128x128xbf16, #tpu.memory_space<vmem>>, vector<128x128xbf16>
      %cst_13 = arith.constant dense<0.000000e+00> : vector<32x128xf32>
      %20 = tpu.matmul %18, %19, %cst_13 {dimension_numbers = #tpu.dot_dimension_numbers<[1], [0], [0], [1], [0, 0, 1, 1], [], []>} : vector<32x128xbf16>, vector<128x128xbf16>, vector<32x128xf32> -> vector<32x128xf32>
      %c0_14 = arith.constant 0 : index
      %c0_15 = arith.constant 0 : index
      %21 = vector.load %arg5[%c0_14, %c0_15] : memref<32x128xbf16, #tpu.memory_space<vmem>>, vector<32x128xbf16>
      %22 = arith.extf %21 : vector<32x128xbf16> to vector<32x128xf32>
      %23 = arith.addf %20, %22 : vector<32x128xf32>
      %24 = arith.truncf %23 : vector<32x128xf32> to vector<32x128xbf16>
      %c0_16 = arith.constant 0 : index
      %c0_17 = arith.constant 0 : index
      %25 = vector.load %arg6[%c0_16, %c0_17] : memref<32x128xbf16, #tpu.memory_space<vmem>>, vector<32x128xbf16>
      tpu.vector_store %arg6[%c0_16, %c0_17], %24 {strides = array<i32>} : memref<32x128xbf16, #tpu.memory_space<vmem>>, vector<32x128xbf16>,
    } else {
    }
    return
  }
  func.func @transform_0(%arg0: i32, %arg1: i32) -> (i32, i32) {
    %c0_i32 = arith.constant 0 : i32
    return %arg0, %arg1 : i32, i32
  }
  func.func @transform_1(%arg0: i32, %arg1: i32) -> (i32, i32) {
    %c0_i32 = arith.constant 0 : i32
    %c0_i32_0 = arith.constant 0 : i32
    %c0_i32_1 = arith.constant 0 : i32
    return %c0_i32, %c0_i32_0 : i32, i32
  }
  func.func @transform_2(%arg0: i32, %arg1: i32) -> (i32, i32) {
    %c0_i32 = arith.constant 0 : i32
    %c0_i32_0 = arith.constant 0 : i32
    %c0_i32_1 = arith.constant 0 : i32
    return %c0_i32, %c0_i32_0 : i32, i32
  }
  func.func @transform_3(%arg0: i32, %arg1: i32) -> (i32, i32) {
    %c0_i32 = arith.constant 0 : i32
    %c0_i32_0 = arith.constant 0 : i32
    return %arg0, %c0_i32 : i32, i32
  }
  func.func @transform_4(%arg0: i32, %arg1: i32) -> (i32, i32) {
    %c0_i32 = arith.constant 0 : i32
    %c0_i32_0 = arith.constant 0 : i32
    return %arg0, %c0_i32 : i32, i32
  }
}

module attributes {stable_mosaic.version = 11 : i64} {
  func.func @_resblock_kernel(%arg0: i32, %arg1: i32, %arg2: memref<32x384xbf16, #tpu.memory_space<vmem>>, %arg3: memref<1152x128xbf16, #tpu.memory_space<vmem>>, %arg4: memref<128x128xbf16, #tpu.memory_space<vmem>>, %arg5: memref<32x128xbf16, #tpu.memory_space<vmem>>, %arg6: memref<32x128xbf16, #tpu.memory_space<vmem>>, %arg7: memref<32x128xf32, #tpu.memory_space<vmem>>) attributes {dimension_semantics = [#tpu.dimension_semantics<parallel>, #tpu.dimension_semantics<arbitrary>], iteration_bounds = array<i64: 1, 3>, scalar_prefetch = 0 : i64, scratch_operands = 1 : i64, tpu.core_type = #tpu.core_type<tc>, window_params = [{transform_indices = @transform_0, window_bounds = array<i64: 32, 384>}, {pipeline_mode = #tpu.pipeline_mode<synchronous>, transform_indices = @transform_1, window_bounds = array<i64: 1152, 128>}, {pipeline_mode = #tpu.pipeline_mode<synchronous>, transform_indices = @transform_2, window_bounds = array<i64: 128, 128>}, {transform_indices = @transform_3, window_bounds = array<i64: 32, 128>}, {transform_indices = @transform_4, window_bounds = array<i64: 32, 128>}]} {
    %c0_i32 = arith.constant 0 : i32
    %0 = arith.cmpi eq, %arg1, %c0_i32 : i32
    %1 = arith.extui %0 : i1 to i32
    %c0_i32_0 = arith.constant 0 : i32
    %2 = arith.cmpi ne, %1, %c0_i32_0 : i32
    scf.if %2 {
      %cst_8 = arith.constant 0.000000e+00 : f32
      %15 = vector.broadcast %cst_8 : f32 to vector<32x128xf32>
      %c0_9 = arith.constant 0 : index
      %c0_10 = arith.constant 0 : index
      %16 = vector.load %arg7[%c0_9, %c0_10] : memref<32x128xf32, #tpu.memory_space<vmem>>, vector<32x128xf32>
      tpu.vector_store %arg7[%c0_9, %c0_10], %15 {strides = array<i32>} : memref<32x128xf32, #tpu.memory_space<vmem>>, vector<32x128xf32>,
    } else {
    }
    %c384_i32 = arith.constant 384 : i32
    %3 = arith.muli %arg1, %c384_i32 : i32
    %4 = tpu.assume_multiple %3, 384 : i32
    %5 = arith.index_cast %4 : i32 to index
    %c0 = arith.constant 0 : index
    %6 = vector.load %arg3[%5, %c0] : memref<1152x128xbf16, #tpu.memory_space<vmem>>, vector<384x128xbf16>
    %c0_1 = arith.constant 0 : index
    %c0_2 = arith.constant 0 : index
    %7 = vector.load %arg7[%c0_1, %c0_2] : memref<32x128xf32, #tpu.memory_space<vmem>>, vector<32x128xf32>
    %c0_3 = arith.constant 0 : index
    %c0_4 = arith.constant 0 : index
    %8 = vector.load %arg2[%c0_3, %c0_4] : memref<32x384xbf16, #tpu.memory_space<vmem>>, vector<32x384xbf16>
    %cst = arith.constant dense<0.000000e+00> : vector<32x128xf32>
    %9 = tpu.matmul %8, %6, %cst {dimension_numbers = #tpu.dot_dimension_numbers<[1], [0], [0], [1], [0, 0, 1, 1], [], []>} : vector<32x384xbf16>, vector<384x128xbf16>, vector<32x128xf32> -> vector<32x128xf32>
    %10 = arith.addf %7, %9 : vector<32x128xf32>
    %c0_5 = arith.constant 0 : index
    %c0_6 = arith.constant 0 : index
    %11 = vector.load %arg7[%c0_5, %c0_6] : memref<32x128xf32, #tpu.memory_space<vmem>>, vector<32x128xf32>
    tpu.vector_store %arg7[%c0_5, %c0_6], %10 {strides = array<i32>} : memref<32x128xf32, #tpu.memory_space<vmem>>, vector<32x128xf32>,
    %c2_i32 = arith.constant 2 : i32
    %12 = arith.cmpi eq, %arg1, %c2_i32 : i32
    %13 = arith.extui %12 : i1 to i32
    %c0_i32_7 = arith.constant 0 : i32
    %14 = arith.cmpi ne, %13, %c0_i32_7 : i32
    scf.if %14 {
      %c0_8 = arith.constant 0 : index
      %c0_9 = arith.constant 0 : index
      %15 = vector.load %arg7[%c0_8, %c0_9] : memref<32x128xf32, #tpu.memory_space<vmem>>, vector<32x128xf32>
      %cst_10 = arith.constant 0.000000e+00 : f32
      %16 = vector.broadcast %cst_10 : f32 to vector<32x128xf32>
      %17 = arith.maximumf %15, %16 : vector<32x128xf32>
      %18 = arith.truncf %17 : vector<32x128xf32> to vector<32x128xbf16>
      %c0_11 = arith.constant 0 : index
      %c0_12 = arith.constant 0 : index
      %19 = vector.load %arg4[%c0_11, %c0_12] : memref<128x128xbf16, #tpu.memory_space<vmem>>, vector<128x128xbf16>
      %cst_13 = arith.constant dense<0.000000e+00> : vector<32x128xf32>
      %20 = tpu.matmul %18, %19, %cst_13 {dimension_numbers = #tpu.dot_dimension_numbers<[1], [0], [0], [1], [0, 0, 1, 1], [], []>} : vector<32x128xbf16>, vector<128x128xbf16>, vector<32x128xf32> -> vector<32x128xf32>
      %c0_14 = arith.constant 0 : index
      %c0_15 = arith.constant 0 : index
      %21 = vector.load %arg5[%c0_14, %c0_15] : memref<32x128xbf16, #tpu.memory_space<vmem>>, vector<32x128xbf16>
      %22 = arith.extf %21 : vector<32x128xbf16> to vector<32x128xf32>
      %23 = arith.addf %20, %22 : vector<32x128xf32>
      %cst_16 = arith.constant 0.000000e+00 : f32
      %24 = vector.broadcast %cst_16 : f32 to vector<32x128xf32>
      %25 = arith.cmpf oge, %23, %24 : vector<32x128xf32>
      %cst_17 = arith.constant 0.00999999977 : f32
      %26 = vector.broadcast %cst_17 : f32 to vector<32x128xf32>
      %27 = arith.mulf %26, %23 : vector<32x128xf32>
      %28 = arith.select %25, %23, %27 : vector<32x128xi1>, vector<32x128xf32>
      %29 = arith.truncf %28 : vector<32x128xf32> to vector<32x128xbf16>
      %c0_18 = arith.constant 0 : index
      %c0_19 = arith.constant 0 : index
      %30 = vector.load %arg6[%c0_18, %c0_19] : memref<32x128xbf16, #tpu.memory_space<vmem>>, vector<32x128xbf16>
      tpu.vector_store %arg6[%c0_18, %c0_19], %29 {strides = array<i32>} : memref<32x128xbf16, #tpu.memory_space<vmem>>, vector<32x128xbf16>,
    } else {
    }
    return
  }
  func.func @transform_0(%arg0: i32, %arg1: i32) -> (i32, i32) {
    %c0_i32 = arith.constant 0 : i32
    return %arg0, %arg1 : i32, i32
  }
  func.func @transform_1(%arg0: i32, %arg1: i32) -> (i32, i32) {
    %c0_i32 = arith.constant 0 : i32
    %c0_i32_0 = arith.constant 0 : i32
    %c0_i32_1 = arith.constant 0 : i32
    return %c0_i32, %c0_i32_0 : i32, i32
  }
  func.func @transform_2(%arg0: i32, %arg1: i32) -> (i32, i32) {
    %c0_i32 = arith.constant 0 : i32
    %c0_i32_0 = arith.constant 0 : i32
    %c0_i32_1 = arith.constant 0 : i32
    return %c0_i32, %c0_i32_0 : i32, i32
  }
  func.func @transform_3(%arg0: i32, %arg1: i32) -> (i32, i32) {
    %c0_i32 = arith.constant 0 : i32
    %c0_i32_0 = arith.constant 0 : i32
    return %arg0, %c0_i32 : i32, i32
  }
  func.func @transform_4(%arg0: i32, %arg1: i32) -> (i32, i32) {
    %c0_i32 = arith.constant 0 : i32
    %c0_i32_0 = arith.constant 0 : i32
    return %arg0, %c0_i32 : i32, i32
  }
}

module attributes {stable_mosaic.version = 11 : i64} {
  func.func @_gemm_kernel(%arg0: i32, %arg1: i32, %arg2: memref<32x128xbf16, #tpu.memory_space<vmem>>, %arg3: memref<128x128xbf16, #tpu.memory_space<vmem>>, %arg4: memref<1x128xf32, #tpu.memory_space<vmem>>, %arg5: memref<32x128xf32, #tpu.memory_space<vmem>>, %arg6: memref<32x128xf32, #tpu.memory_space<vmem>>) attributes {dimension_semantics = [#tpu.dimension_semantics<parallel>, #tpu.dimension_semantics<arbitrary>], iteration_bounds = array<i64: 1, 1>, scalar_prefetch = 0 : i64, scratch_operands = 1 : i64, tpu.core_type = #tpu.core_type<tc>, window_params = [{transform_indices = @transform_0, window_bounds = array<i64: 32, 128>}, {pipeline_mode = #tpu.pipeline_mode<synchronous>, transform_indices = @transform_1, window_bounds = array<i64: 128, 128>}, {pipeline_mode = #tpu.pipeline_mode<synchronous>, transform_indices = @transform_2, window_bounds = array<i64: 1, 128>}, {transform_indices = @transform_3, window_bounds = array<i64: 32, 128>}]} {
    %c0_i32 = arith.constant 0 : i32
    %0 = arith.cmpi eq, %arg1, %c0_i32 : i32
    %1 = arith.extui %0 : i1 to i32
    %c0_i32_0 = arith.constant 0 : i32
    %2 = arith.cmpi ne, %1, %c0_i32_0 : i32
    scf.if %2 {
      %cst_10 = arith.constant 0.000000e+00 : f32
      %12 = vector.broadcast %cst_10 : f32 to vector<32x128xf32>
      %c0_11 = arith.constant 0 : index
      %c0_12 = arith.constant 0 : index
      %13 = vector.load %arg6[%c0_11, %c0_12] : memref<32x128xf32, #tpu.memory_space<vmem>>, vector<32x128xf32>
      tpu.vector_store %arg6[%c0_11, %c0_12], %12 {strides = array<i32>} : memref<32x128xf32, #tpu.memory_space<vmem>>, vector<32x128xf32>,
    } else {
    }
    %c0 = arith.constant 0 : index
    %c0_1 = arith.constant 0 : index
    %3 = vector.load %arg3[%c0, %c0_1] : memref<128x128xbf16, #tpu.memory_space<vmem>>, vector<128x128xbf16>
    %c0_2 = arith.constant 0 : index
    %c0_3 = arith.constant 0 : index
    %4 = vector.load %arg6[%c0_2, %c0_3] : memref<32x128xf32, #tpu.memory_space<vmem>>, vector<32x128xf32>
    %c0_4 = arith.constant 0 : index
    %c0_5 = arith.constant 0 : index
    %5 = vector.load %arg2[%c0_4, %c0_5] : memref<32x128xbf16, #tpu.memory_space<vmem>>, vector<32x128xbf16>
    %cst = arith.constant dense<0.000000e+00> : vector<32x128xf32>
    %6 = tpu.matmul %5, %3, %cst {dimension_numbers = #tpu.dot_dimension_numbers<[1], [0], [0], [1], [0, 0, 1, 1], [], []>} : vector<32x128xbf16>, vector<128x128xbf16>, vector<32x128xf32> -> vector<32x128xf32>
    %7 = arith.addf %4, %6 : vector<32x128xf32>
    %c0_6 = arith.constant 0 : index
    %c0_7 = arith.constant 0 : index
    %8 = vector.load %arg6[%c0_6, %c0_7] : memref<32x128xf32, #tpu.memory_space<vmem>>, vector<32x128xf32>
    tpu.vector_store %arg6[%c0_6, %c0_7], %7 {strides = array<i32>} : memref<32x128xf32, #tpu.memory_space<vmem>>, vector<32x128xf32>,
    %c0_i32_8 = arith.constant 0 : i32
    %9 = arith.cmpi eq, %arg1, %c0_i32_8 : i32
    %10 = arith.extui %9 : i1 to i32
    %c0_i32_9 = arith.constant 0 : i32
    %11 = arith.cmpi ne, %10, %c0_i32_9 : i32
    scf.if %11 {
      %c0_10 = arith.constant 0 : index
      %c0_11 = arith.constant 0 : index
      %12 = vector.load %arg6[%c0_10, %c0_11] : memref<32x128xf32, #tpu.memory_space<vmem>>, vector<32x128xf32>
      %c0_12 = arith.constant 0 : index
      %c0_13 = arith.constant 0 : index
      %13 = vector.load %arg4[%c0_12, %c0_13] : memref<1x128xf32, #tpu.memory_space<vmem>>, vector<1x128xf32>
      %14 = vector.broadcast %13 : vector<1x128xf32> to vector<32x128xf32>
      %15 = arith.addf %12, %14 : vector<32x128xf32>
      %cst_14 = arith.constant 0.000000e+00 : f32
      %16 = vector.broadcast %cst_14 : f32 to vector<32x128xf32>
      %17 = arith.cmpf oge, %15, %16 : vector<32x128xf32>
      %cst_15 = arith.constant 0.00999999977 : f32
      %18 = vector.broadcast %cst_15 : f32 to vector<32x128xf32>
      %19 = arith.mulf %18, %15 : vector<32x128xf32>
      %20 = arith.select %17, %15, %19 : vector<32x128xi1>, vector<32x128xf32>
      %c0_16 = arith.constant 0 : index
      %c0_17 = arith.constant 0 : index
      %21 = vector.load %arg5[%c0_16, %c0_17] : memref<32x128xf32, #tpu.memory_space<vmem>>, vector<32x128xf32>
      tpu.vector_store %arg5[%c0_16, %c0_17], %20 {strides = array<i32>} : memref<32x128xf32, #tpu.memory_space<vmem>>, vector<32x128xf32>,
    } else {
    }
    return
  }
  func.func @transform_0(%arg0: i32, %arg1: i32) -> (i32, i32) {
    %c0_i32 = arith.constant 0 : i32
    return %arg0, %arg1 : i32, i32
  }
  func.func @transform_1(%arg0: i32, %arg1: i32) -> (i32, i32) {
    %c0_i32 = arith.constant 0 : i32
    %c0_i32_0 = arith.constant 0 : i32
    %c0_i32_1 = arith.constant 0 : i32
    return %c0_i32, %c0_i32_0 : i32, i32
  }
  func.func @transform_2(%arg0: i32, %arg1: i32) -> (i32, i32) {
    %c0_i32 = arith.constant 0 : i32
    %c0_i32_0 = arith.constant 0 : i32
    %c0_i32_1 = arith.constant 0 : i32
    return %c0_i32, %c0_i32_0 : i32, i32
  }
  func.func @transform_3(%arg0: i32, %arg1: i32) -> (i32, i32) {
    %c0_i32 = arith.constant 0 : i32
    %c0_i32_0 = arith.constant 0 : i32
    return %arg0, %c0_i32 : i32, i32
  }
}

module attributes {stable_mosaic.version = 11 : i64} {
  func.func @_vq_kernel(%arg0: i32, %arg1: memref<32x128xf32, #tpu.memory_space<vmem>>, %arg2: memref<128x128xf32, #tpu.memory_space<vmem>>, %arg3: memref<128x128xf32, #tpu.memory_space<vmem>>, %arg4: memref<1x128xf32, #tpu.memory_space<vmem>>, %arg5: memref<32x128xf32, #tpu.memory_space<vmem>>, %arg6: memref<1x1xf32, #tpu.memory_space<vmem>>) attributes {dimension_semantics = [#tpu.dimension_semantics<arbitrary>], iteration_bounds = array<i64: 1>, scalar_prefetch = 0 : i64, scratch_operands = 0 : i64, tpu.core_type = #tpu.core_type<tc>, window_params = [{transform_indices = @transform_0, window_bounds = array<i64: 32, 128>}, {pipeline_mode = #tpu.pipeline_mode<synchronous>, transform_indices = @transform_1, window_bounds = array<i64: 128, 128>}, {pipeline_mode = #tpu.pipeline_mode<synchronous>, transform_indices = @transform_2, window_bounds = array<i64: 128, 128>}, {pipeline_mode = #tpu.pipeline_mode<synchronous>, transform_indices = @transform_3, window_bounds = array<i64: 1, 128>}, {transform_indices = @transform_4, window_bounds = array<i64: 32, 128>}, {pipeline_mode = #tpu.pipeline_mode<synchronous>, transform_indices = @transform_5, window_bounds = array<i64: 1, 1>}]} {
    %c0 = arith.constant 0 : index
    %c0_0 = arith.constant 0 : index
    %0 = vector.load %arg1[%c0, %c0_0] : memref<32x128xf32, #tpu.memory_space<vmem>>, vector<32x128xf32>
    %1 = arith.mulf %0, %0 : vector<32x128xf32>
    %cst = arith.constant dense<0.000000e+00> : vector<32xf32>
    %2 = vector.multi_reduction <add>, %1, %cst [1] : vector<32x128xf32> to vector<32xf32>
    %3 = vector.shape_cast %2 : vector<32xf32> to vector<32x1xf32>
    %c0_1 = arith.constant 0 : index
    %c0_2 = arith.constant 0 : index
    %4 = vector.load %arg2[%c0_1, %c0_2] : memref<128x128xf32, #tpu.memory_space<vmem>>, vector<128x128xf32>
    %cst_3 = arith.constant dense<0.000000e+00> : vector<32x128xf32>
    %5 = tpu.matmul %0, %4, %cst_3 {dimension_numbers = #tpu.dot_dimension_numbers<[1], [0], [0], [1], [0, 0, 1, 1], [], []>} : vector<32x128xf32>, vector<128x128xf32>, vector<32x128xf32> -> vector<32x128xf32>
    %c0_4 = arith.constant 0 : index
    %c0_5 = arith.constant 0 : index
    %6 = vector.load %arg4[%c0_4, %c0_5] : memref<1x128xf32, #tpu.memory_space<vmem>>, vector<1x128xf32>
    %7 = vector.broadcast %3 : vector<32x1xf32> to vector<32x128xf32>
    %8 = vector.broadcast %6 : vector<1x128xf32> to vector<32x128xf32>
    %9 = arith.addf %7, %8 : vector<32x128xf32>
    %cst_6 = arith.constant 2.000000e+00 : f32
    %10 = vector.broadcast %cst_6 : f32 to vector<32x128xf32>
    %11 = arith.mulf %10, %5 : vector<32x128xf32>
    %12 = arith.subf %9, %11 : vector<32x128xf32>
    %13 = tpu.iota {dimensions = array<i32: 1>} : vector<32x128xi32>
    %c16_i32 = arith.constant 16 : i32
    %14 = vector.broadcast %c16_i32 : i32 to vector<32x128xi32>
    %15 = arith.cmpi slt, %13, %14 : vector<32x128xi32>
    %cst_7 = arith.constant 3.40282347E+38 : f32
    %16 = vector.broadcast %cst_7 : f32 to vector<32x128xf32>
    %17 = arith.select %15, %12, %16 : vector<32x128xi1>, vector<32x128xf32>
    %cst_8 = arith.constant dense<0x7F800000> : vector<32xf32>
    %18 = vector.multi_reduction <minimumf>, %17, %cst_8 [1] : vector<32x128xf32> to vector<32xf32>
    %19 = vector.shape_cast %18 : vector<32xf32> to vector<32x1xf32>
    %20 = vector.broadcast %19 : vector<32x1xf32> to vector<32x128xf32>
    %21 = arith.cmpf ole, %17, %20 : vector<32x128xf32>
    %c128_i32 = arith.constant 128 : i32
    %22 = vector.broadcast %c128_i32 : i32 to vector<32x128xi32>
    %23 = arith.select %21, %13, %22 : vector<32x128xi1>, vector<32x128xi32>
    %cst_9 = arith.constant dense<2147483647> : vector<32xi32>
    %24 = vector.multi_reduction <minsi>, %23, %cst_9 [1] : vector<32x128xi32> to vector<32xi32>
    %25 = vector.shape_cast %24 : vector<32xi32> to vector<32x1xi32>
    %26 = vector.broadcast %25 : vector<32x1xi32> to vector<32x128xi32>
    %27 = arith.cmpi eq, %13, %26 : vector<32x128xi32>
    %28 = arith.extui %27 : vector<32x128xi1> to vector<32x128xi32>
    %29 = arith.sitofp %28 : vector<32x128xi32> to vector<32x128xf32>
    %c0_10 = arith.constant 0 : index
    %c0_11 = arith.constant 0 : index
    %30 = vector.load %arg3[%c0_10, %c0_11] : memref<128x128xf32, #tpu.memory_space<vmem>>, vector<128x128xf32>
    %cst_12 = arith.constant dense<0.000000e+00> : vector<32x128xf32>
    %31 = tpu.matmul %29, %30, %cst_12 {dimension_numbers = #tpu.dot_dimension_numbers<[1], [0], [0], [1], [0, 0, 1, 1], [], []>} : vector<32x128xf32>, vector<128x128xf32>, vector<32x128xf32> -> vector<32x128xf32>
    %c0_13 = arith.constant 0 : index
    %c0_14 = arith.constant 0 : index
    %32 = vector.load %arg5[%c0_13, %c0_14] : memref<32x128xf32, #tpu.memory_space<vmem>>, vector<32x128xf32>
    tpu.vector_store %arg5[%c0_13, %c0_14], %31 {strides = array<i32>} : memref<32x128xf32, #tpu.memory_space<vmem>>, vector<32x128xf32>,
    %33 = tpu.iota {dimensions = array<i32: 0>} : vector<32x1xi32>
    %c32_i32 = arith.constant 32 : i32
    %34 = arith.muli %arg0, %c32_i32 : i32
    %35 = vector.broadcast %34 : i32 to vector<32x1xi32>
    %36 = arith.addi %33, %35 : vector<32x1xi32>
    %c32_i32_15 = arith.constant 32 : i32
    %37 = vector.broadcast %c32_i32_15 : i32 to vector<32x1xi32>
    %38 = arith.cmpi slt, %36, %37 : vector<32x1xi32>
    %39 = arith.extui %38 : vector<32x1xi1> to vector<32x1xi32>
    %40 = arith.sitofp %39 : vector<32x1xi32> to vector<32x1xf32>
    %41 = arith.subf %31, %0 : vector<32x128xf32>
    %42 = vector.broadcast %40 : vector<32x1xf32> to vector<32x128xf32>
    %43 = arith.mulf %41, %42 : vector<32x128xf32>
    %44 = arith.mulf %43, %43 : vector<32x128xf32>
    %45 = vector.shape_cast %44 : vector<32x128xf32> to vector<1x32x128xf32>
    %cst_16 = arith.constant dense<0.000000e+00> : vector<1xf32>
    %46 = vector.multi_reduction <add>, %45, %cst_16 [1, 2] : vector<1x32x128xf32> to vector<1xf32>
    %47 = vector.shape_cast %46 : vector<1xf32> to vector<1x1x1xf32>
    %48 = vector.extract %47[0, 0, 0] : f32 from vector<1x1x1xf32>
    %c0_i32 = arith.constant 0 : i32
    %49 = arith.cmpi eq, %arg0, %c0_i32 : i32
    %50 = arith.extui %49 : i1 to i32
    %c0_i32_17 = arith.constant 0 : i32
    %51 = arith.cmpi ne, %50, %c0_i32_17 : i32
    scf.if %51 {
      %cst_23 = arith.constant 0.000000e+00 : f32
      %58 = vector.broadcast %cst_23 : f32 to vector<1x1xf32>
      %c0_24 = arith.constant 0 : index
      %c0_25 = arith.constant 0 : index
      %59 = vector.load %arg6[%c0_24, %c0_25] : memref<1x1xf32, #tpu.memory_space<vmem>>, vector<1x1xf32>
      tpu.vector_store %arg6[%c0_24, %c0_25], %58 {strides = array<i32>} : memref<1x1xf32, #tpu.memory_space<vmem>>, vector<1x1xf32>,
    } else {
    }
    %c0_18 = arith.constant 0 : index
    %c0_19 = arith.constant 0 : index
    %52 = vector.load %arg6[%c0_18, %c0_19] : memref<1x1xf32, #tpu.memory_space<vmem>>, vector<1x1xf32>
    %53 = vector.broadcast %48 : f32 to vector<1x1xf32>
    %cst_20 = arith.constant 0.0048828125 : f32
    %54 = vector.broadcast %cst_20 : f32 to vector<1x1xf32>
    %55 = arith.mulf %53, %54 : vector<1x1xf32>
    %56 = arith.addf %52, %55 : vector<1x1xf32>
    %c0_21 = arith.constant 0 : index
    %c0_22 = arith.constant 0 : index
    %57 = vector.load %arg6[%c0_21, %c0_22] : memref<1x1xf32, #tpu.memory_space<vmem>>, vector<1x1xf32>
    tpu.vector_store %arg6[%c0_21, %c0_22], %56 {strides = array<i32>} : memref<1x1xf32, #tpu.memory_space<vmem>>, vector<1x1xf32>,
    return
  }
  func.func @transform_0(%arg0: i32) -> (i32, i32) {
    %c0_i32 = arith.constant 0 : i32
    %c0_i32_0 = arith.constant 0 : i32
    return %arg0, %c0_i32 : i32, i32
  }
  func.func @transform_1(%arg0: i32) -> (i32, i32) {
    %c0_i32 = arith.constant 0 : i32
    %c0_i32_0 = arith.constant 0 : i32
    %c0_i32_1 = arith.constant 0 : i32
    return %c0_i32, %c0_i32_0 : i32, i32
  }
  func.func @transform_2(%arg0: i32) -> (i32, i32) {
    %c0_i32 = arith.constant 0 : i32
    %c0_i32_0 = arith.constant 0 : i32
    %c0_i32_1 = arith.constant 0 : i32
    return %c0_i32, %c0_i32_0 : i32, i32
  }
  func.func @transform_3(%arg0: i32) -> (i32, i32) {
    %c0_i32 = arith.constant 0 : i32
    %c0_i32_0 = arith.constant 0 : i32
    %c0_i32_1 = arith.constant 0 : i32
    return %c0_i32, %c0_i32_0 : i32, i32
  }
  func.func @transform_4(%arg0: i32) -> (i32, i32) {
    %c0_i32 = arith.constant 0 : i32
    %c0_i32_0 = arith.constant 0 : i32
    return %arg0, %c0_i32 : i32, i32
  }
  func.func @transform_5(%arg0: i32) -> (i32, i32) {
    %c0_i32 = arith.constant 0 : i32
    %c0_i32_0 = arith.constant 0 : i32
    %c0_i32_1 = arith.constant 0 : i32
    return %c0_i32, %c0_i32_0 : i32, i32
  }
}

module attributes {stable_mosaic.version = 11 : i64} {
  func.func @_gemm_kernel(%arg0: i32, %arg1: i32, %arg2: memref<64x512xbf16, #tpu.memory_space<vmem>>, %arg3: memref<512x512xbf16, #tpu.memory_space<vmem>>, %arg4: memref<1x512xf32, #tpu.memory_space<vmem>>, %arg5: memref<64x512xbf16, #tpu.memory_space<vmem>>, %arg6: memref<64x512xf32, #tpu.memory_space<vmem>>) attributes {dimension_semantics = [#tpu.dimension_semantics<parallel>, #tpu.dimension_semantics<arbitrary>], iteration_bounds = array<i64: 1, 1>, scalar_prefetch = 0 : i64, scratch_operands = 1 : i64, tpu.core_type = #tpu.core_type<tc>, window_params = [{transform_indices = @transform_0, window_bounds = array<i64: 64, 512>}, {pipeline_mode = #tpu.pipeline_mode<synchronous>, transform_indices = @transform_1, window_bounds = array<i64: 512, 512>}, {pipeline_mode = #tpu.pipeline_mode<synchronous>, transform_indices = @transform_2, window_bounds = array<i64: 1, 512>}, {transform_indices = @transform_3, window_bounds = array<i64: 64, 512>}]} {
    %c0_i32 = arith.constant 0 : i32
    %0 = arith.cmpi eq, %arg1, %c0_i32 : i32
    %1 = arith.extui %0 : i1 to i32
    %c0_i32_0 = arith.constant 0 : i32
    %2 = arith.cmpi ne, %1, %c0_i32_0 : i32
    scf.if %2 {
      %cst_10 = arith.constant 0.000000e+00 : f32
      %12 = vector.broadcast %cst_10 : f32 to vector<64x512xf32>
      %c0_11 = arith.constant 0 : index
      %c0_12 = arith.constant 0 : index
      %13 = vector.load %arg6[%c0_11, %c0_12] : memref<64x512xf32, #tpu.memory_space<vmem>>, vector<64x512xf32>
      tpu.vector_store %arg6[%c0_11, %c0_12], %12 {strides = array<i32>} : memref<64x512xf32, #tpu.memory_space<vmem>>, vector<64x512xf32>,
    } else {
    }
    %c0 = arith.constant 0 : index
    %c0_1 = arith.constant 0 : index
    %3 = vector.load %arg3[%c0, %c0_1] : memref<512x512xbf16, #tpu.memory_space<vmem>>, vector<512x512xbf16>
    %c0_2 = arith.constant 0 : index
    %c0_3 = arith.constant 0 : index
    %4 = vector.load %arg6[%c0_2, %c0_3] : memref<64x512xf32, #tpu.memory_space<vmem>>, vector<64x512xf32>
    %c0_4 = arith.constant 0 : index
    %c0_5 = arith.constant 0 : index
    %5 = vector.load %arg2[%c0_4, %c0_5] : memref<64x512xbf16, #tpu.memory_space<vmem>>, vector<64x512xbf16>
    %cst = arith.constant dense<0.000000e+00> : vector<64x512xf32>
    %6 = tpu.matmul %5, %3, %cst {dimension_numbers = #tpu.dot_dimension_numbers<[1], [0], [0], [1], [0, 0, 1, 1], [], []>} : vector<64x512xbf16>, vector<512x512xbf16>, vector<64x512xf32> -> vector<64x512xf32>
    %7 = arith.addf %4, %6 : vector<64x512xf32>
    %c0_6 = arith.constant 0 : index
    %c0_7 = arith.constant 0 : index
    %8 = vector.load %arg6[%c0_6, %c0_7] : memref<64x512xf32, #tpu.memory_space<vmem>>, vector<64x512xf32>
    tpu.vector_store %arg6[%c0_6, %c0_7], %7 {strides = array<i32>} : memref<64x512xf32, #tpu.memory_space<vmem>>, vector<64x512xf32>,
    %c0_i32_8 = arith.constant 0 : i32
    %9 = arith.cmpi eq, %arg1, %c0_i32_8 : i32
    %10 = arith.extui %9 : i1 to i32
    %c0_i32_9 = arith.constant 0 : i32
    %11 = arith.cmpi ne, %10, %c0_i32_9 : i32
    scf.if %11 {
      %c0_10 = arith.constant 0 : index
      %c0_11 = arith.constant 0 : index
      %12 = vector.load %arg6[%c0_10, %c0_11] : memref<64x512xf32, #tpu.memory_space<vmem>>, vector<64x512xf32>
      %c0_12 = arith.constant 0 : index
      %c0_13 = arith.constant 0 : index
      %13 = vector.load %arg4[%c0_12, %c0_13] : memref<1x512xf32, #tpu.memory_space<vmem>>, vector<1x512xf32>
      %14 = vector.broadcast %13 : vector<1x512xf32> to vector<64x512xf32>
      %15 = arith.addf %12, %14 : vector<64x512xf32>
      %cst_14 = arith.constant 0.000000e+00 : f32
      %16 = vector.broadcast %cst_14 : f32 to vector<64x512xf32>
      %17 = arith.cmpf oge, %15, %16 : vector<64x512xf32>
      %cst_15 = arith.constant 0.00999999977 : f32
      %18 = vector.broadcast %cst_15 : f32 to vector<64x512xf32>
      %19 = arith.mulf %18, %15 : vector<64x512xf32>
      %20 = arith.select %17, %15, %19 : vector<64x512xi1>, vector<64x512xf32>
      %21 = arith.truncf %20 : vector<64x512xf32> to vector<64x512xbf16>
      %c0_16 = arith.constant 0 : index
      %c0_17 = arith.constant 0 : index
      %22 = vector.load %arg5[%c0_16, %c0_17] : memref<64x512xbf16, #tpu.memory_space<vmem>>, vector<64x512xbf16>
      tpu.vector_store %arg5[%c0_16, %c0_17], %21 {strides = array<i32>} : memref<64x512xbf16, #tpu.memory_space<vmem>>, vector<64x512xbf16>,
    } else {
    }
    return
  }
  func.func @transform_0(%arg0: i32, %arg1: i32) -> (i32, i32) {
    %c0_i32 = arith.constant 0 : i32
    return %arg0, %arg1 : i32, i32
  }
  func.func @transform_1(%arg0: i32, %arg1: i32) -> (i32, i32) {
    %c0_i32 = arith.constant 0 : i32
    %c0_i32_0 = arith.constant 0 : i32
    %c0_i32_1 = arith.constant 0 : i32
    return %c0_i32, %c0_i32_0 : i32, i32
  }
  func.func @transform_2(%arg0: i32, %arg1: i32) -> (i32, i32) {
    %c0_i32 = arith.constant 0 : i32
    %c0_i32_0 = arith.constant 0 : i32
    %c0_i32_1 = arith.constant 0 : i32
    return %c0_i32, %c0_i32_0 : i32, i32
  }
  func.func @transform_3(%arg0: i32, %arg1: i32) -> (i32, i32) {
    %c0_i32 = arith.constant 0 : i32
    %c0_i32_0 = arith.constant 0 : i32
    return %arg0, %c0_i32 : i32, i32
  }
}

module attributes {stable_mosaic.version = 11 : i64} {
  func.func @_gemm_kernel(%arg0: i32, %arg1: i32, %arg2: memref<96x512xbf16, #tpu.memory_space<vmem>>, %arg3: memref<512x512xbf16, #tpu.memory_space<vmem>>, %arg4: memref<1x512xf32, #tpu.memory_space<vmem>>, %arg5: memref<96x512xbf16, #tpu.memory_space<vmem>>, %arg6: memref<96x512xf32, #tpu.memory_space<vmem>>) attributes {dimension_semantics = [#tpu.dimension_semantics<parallel>, #tpu.dimension_semantics<arbitrary>], iteration_bounds = array<i64: 2, 1>, scalar_prefetch = 0 : i64, scratch_operands = 1 : i64, tpu.core_type = #tpu.core_type<tc>, window_params = [{transform_indices = @transform_0, window_bounds = array<i64: 96, 512>}, {pipeline_mode = #tpu.pipeline_mode<synchronous>, transform_indices = @transform_1, window_bounds = array<i64: 512, 512>}, {pipeline_mode = #tpu.pipeline_mode<synchronous>, transform_indices = @transform_2, window_bounds = array<i64: 1, 512>}, {transform_indices = @transform_3, window_bounds = array<i64: 96, 512>}]} {
    %c0_i32 = arith.constant 0 : i32
    %0 = arith.cmpi eq, %arg1, %c0_i32 : i32
    %1 = arith.extui %0 : i1 to i32
    %c0_i32_0 = arith.constant 0 : i32
    %2 = arith.cmpi ne, %1, %c0_i32_0 : i32
    scf.if %2 {
      %cst_10 = arith.constant 0.000000e+00 : f32
      %12 = vector.broadcast %cst_10 : f32 to vector<96x512xf32>
      %c0_11 = arith.constant 0 : index
      %c0_12 = arith.constant 0 : index
      %13 = vector.load %arg6[%c0_11, %c0_12] : memref<96x512xf32, #tpu.memory_space<vmem>>, vector<96x512xf32>
      tpu.vector_store %arg6[%c0_11, %c0_12], %12 {strides = array<i32>} : memref<96x512xf32, #tpu.memory_space<vmem>>, vector<96x512xf32>,
    } else {
    }
    %c0 = arith.constant 0 : index
    %c0_1 = arith.constant 0 : index
    %3 = vector.load %arg3[%c0, %c0_1] : memref<512x512xbf16, #tpu.memory_space<vmem>>, vector<512x512xbf16>
    %c0_2 = arith.constant 0 : index
    %c0_3 = arith.constant 0 : index
    %4 = vector.load %arg6[%c0_2, %c0_3] : memref<96x512xf32, #tpu.memory_space<vmem>>, vector<96x512xf32>
    %c0_4 = arith.constant 0 : index
    %c0_5 = arith.constant 0 : index
    %5 = vector.load %arg2[%c0_4, %c0_5] : memref<96x512xbf16, #tpu.memory_space<vmem>>, vector<96x512xbf16>
    %cst = arith.constant dense<0.000000e+00> : vector<96x512xf32>
    %6 = tpu.matmul %5, %3, %cst {dimension_numbers = #tpu.dot_dimension_numbers<[1], [0], [0], [1], [0, 0, 1, 1], [], []>} : vector<96x512xbf16>, vector<512x512xbf16>, vector<96x512xf32> -> vector<96x512xf32>
    %7 = arith.addf %4, %6 : vector<96x512xf32>
    %c0_6 = arith.constant 0 : index
    %c0_7 = arith.constant 0 : index
    %8 = vector.load %arg6[%c0_6, %c0_7] : memref<96x512xf32, #tpu.memory_space<vmem>>, vector<96x512xf32>
    tpu.vector_store %arg6[%c0_6, %c0_7], %7 {strides = array<i32>} : memref<96x512xf32, #tpu.memory_space<vmem>>, vector<96x512xf32>,
    %c0_i32_8 = arith.constant 0 : i32
    %9 = arith.cmpi eq, %arg1, %c0_i32_8 : i32
    %10 = arith.extui %9 : i1 to i32
    %c0_i32_9 = arith.constant 0 : i32
    %11 = arith.cmpi ne, %10, %c0_i32_9 : i32
    scf.if %11 {
      %c0_10 = arith.constant 0 : index
      %c0_11 = arith.constant 0 : index
      %12 = vector.load %arg6[%c0_10, %c0_11] : memref<96x512xf32, #tpu.memory_space<vmem>>, vector<96x512xf32>
      %c0_12 = arith.constant 0 : index
      %c0_13 = arith.constant 0 : index
      %13 = vector.load %arg4[%c0_12, %c0_13] : memref<1x512xf32, #tpu.memory_space<vmem>>, vector<1x512xf32>
      %14 = vector.broadcast %13 : vector<1x512xf32> to vector<96x512xf32>
      %15 = arith.addf %12, %14 : vector<96x512xf32>
      %16 = math.tanh %15 : vector<96x512xf32>
      %17 = arith.truncf %16 : vector<96x512xf32> to vector<96x512xbf16>
      %c0_14 = arith.constant 0 : index
      %c0_15 = arith.constant 0 : index
      %18 = vector.load %arg5[%c0_14, %c0_15] : memref<96x512xbf16, #tpu.memory_space<vmem>>, vector<96x512xbf16>
      tpu.vector_store %arg5[%c0_14, %c0_15], %17 {strides = array<i32>} : memref<96x512xbf16, #tpu.memory_space<vmem>>, vector<96x512xbf16>,
    } else {
    }
    return
  }
  func.func @transform_0(%arg0: i32, %arg1: i32) -> (i32, i32) {
    %c0_i32 = arith.constant 0 : i32
    return %arg0, %arg1 : i32, i32
  }
  func.func @transform_1(%arg0: i32, %arg1: i32) -> (i32, i32) {
    %c0_i32 = arith.constant 0 : i32
    %c0_i32_0 = arith.constant 0 : i32
    %c0_i32_1 = arith.constant 0 : i32
    return %c0_i32, %c0_i32_0 : i32, i32
  }
  func.func @transform_2(%arg0: i32, %arg1: i32) -> (i32, i32) {
    %c0_i32 = arith.constant 0 : i32
    %c0_i32_0 = arith.constant 0 : i32
    %c0_i32_1 = arith.constant 0 : i32
    return %c0_i32, %c0_i32_0 : i32, i32
  }
  func.func @transform_3(%arg0: i32, %arg1: i32) -> (i32, i32) {
    %c0_i32 = arith.constant 0 : i32
    %c0_i32_0 = arith.constant 0 : i32
    return %arg0, %c0_i32 : i32, i32
  }
}

</mosaic_0001>

<bundles_post_ra>
// kernel: vqvae_forward.20
= control target key start
LH: loop header
LB: loop body
LE: loop exit
PB: predicated region body
PF: predicated region fallthrough
CT: control target
= control target key end

     0   :  { %s748_s12 = smov 0   ;;  %s750_s13 = smov 0   ;;  %s823_s0 = inlined_call_operand.vmem [shape: bf16[128,128], index: 0, kind: input, shape index: {}]   ;;  %s824_s1 = inlined_call_operand.vmem [shape: bf16[128,128], index: 1, kind: input, shape index: {}]   ;;  %s825_s2 = inlined_call_operand.vmem [shape: f32[1,128], index: 2, kind: input, shape index: {}]   ;;  %s826_s3 = inlined_call_operand.vmem [shape: bf16[128,128], index: 3, kind: output, shape index: {}]  }
   0x1   :  { %s752_s14 = smov 0  }
   0x2 LB: > { %s25_s15 = sadd.s32 1, %s722_s13  ;;  %p557_p0 = scmp.ge.s32.totalorder %s726_s14, 1  ;;  %s726_s14 = sphi %s752_s14, %s13_s14   ;;  %s722_s13 = sphi %s750_s13, %s828_s13   ;;  %s718_s12 = sphi %s748_s12, %s827_s12  }
   0x3   : > { %p27_p1 = scmp.ge.s32.totalorder %s25_s15, 2  ;;  %p155_p2 = scmp.lt.s32.totalorder %s726_s14, 3 }
   0x5   : > { %s830_s15 = smov (%p27_p1, %s25_s15), 0  ;;  %p156_p3 = pnand %p557_p0, %p155_p2 }
   0x6   : > { %v692_v0 = vld [vmem:[%s824_s1] sm:$0xff] (!%p156_p3)   ;;  %s558_s18 = sshll.u32 (!%p156_p3), %s718_s12, 3  ;;  %v693_v1 = vld [vmem:[%s824_s1 + $0x8] sm:$0xff] (!%p156_p3)   ;;  %v694_v2 = vld [vmem:[%s824_s1 + $0x10] sm:$0xff] (!%p156_p3)  }
   0x7   : > { %159 = sbr.rel (%p156_p3) target bundleno = 264 (0x108), region = 32  ;;  %p183_p4 = scmp.lt.s32.totalorder (!%p156_p3), %s558_s18, 15  ;;  %628 = vmatprep.subr.bf16.mxu0 (!%p156_p3), %v692_v0  ;;  %652 = vmatprep.subr.bf16.mxu1 (!%p156_p3), %v692_v0  ;;  %v695_v3 = vld [vmem:[%s824_s1 + $0x18] sm:$0xff] (!%p156_p3)   ;;  %v696_v6 = vld [vmem:[%s824_s1 + $0x20] sm:$0xff] (!%p156_p3)   ;;  %v697_v7 = vld [vmem:[%s824_s1 + $0x28] sm:$0xff] (!%p156_p3)  }
   0x8   : > { %629 = vmatpush3.bf16.msra.mxu0 (!%p156_p3), %v692_v0  ;;  %660 = vmatpush3.bf16.msra.mxu1 (!%p156_p3), %v692_v0  ;;  %v698_v8 = vld [vmem:[%s824_s1 + $0x30] sm:$0xff] (!%p156_p3)   ;;  %v699_v9 = vld [vmem:[%s824_s1 + $0x38] sm:$0xff] (!%p156_p3)   ;;  %v574_v12 = vld [vmem:[%s825_s2] ss:$0 sm:$0xff] (!%p156_p3) }
   0x9   : > { %630 = vmatprep.subr.bf16.mxu0 (!%p156_p3), %v693_v1  ;;  %653 = vmatprep.subr.bf16.mxu1 (!%p156_p3), %v693_v1 }
   0xc   : > { %631 = vmatpush3.bf16.msra.mxu0 (!%p156_p3), %v693_v1  ;;  %661 = vmatpush3.bf16.msra.mxu1 (!%p156_p3), %v693_v1 }
   0xd   : > { %632 = vmatprep.subr.bf16.mxu0 (!%p156_p3), %v694_v2  ;;  %654 = vmatprep.subr.bf16.mxu1 (!%p156_p3), %v694_v2 }
   0xe   : > { %s832_s18 = smov (!%p183_p4, %s558_s18), 15 }
   0xf   : > { %s559_s23 = sshll.u32 %s832_s18, 2 }
  0x10   : > { %s783_s26 = scalar_lea.vmem %s823_s0, %s559_s23  ;;  %633 = vmatpush3.bf16.msra.mxu0 %v694_v2  ;;  %662 = vmatpush3.bf16.msra.mxu1 %v694_v2  ;;  %s195_s17 = scalar_lea.vmem %s826_s3, %s559_s23 }
  0x11   : > { %v700_v4 = vld [vmem:[%s783_s26] sm:$0xff]   ;;  %v701_v5 = vld [vmem:[%s783_s26 + $0x10] sm:$0xff]   ;;  %634 = vmatprep.subr.bf16.mxu0 %v695_v3  ;;  %655 = vmatprep.subr.bf16.mxu1 %v695_v3  ;;  %v702_v10 = vld [vmem:[%s783_s26 + $0x8] sm:$0xff]  }
  0x12   : > { %644 = vmatprep.mubr.bf16.mxu0 %v700_v4  ;;  %648 = vmatprep.mubr.bf16.mxu1 %v701_v5  ;;  %v703_v11 = vld [vmem:[%s783_s26 + $0x18] sm:$0xff]  }
  0x14   : > { %635 = vmatpush3.bf16.msra.mxu0 %v695_v3  ;;  %663 = vmatpush3.bf16.msra.mxu1 %v695_v3 }
  0x15   : > { %636 = vmatprep.subr.bf16.mxu0 %v696_v6  ;;  %656 = vmatprep.subr.bf16.mxu1 %v696_v6 }
  0x18   : > { %637 = vmatpush3.bf16.msra.mxu0 %v696_v6  ;;  %664 = vmatpush3.bf16.msra.mxu1 %v696_v6 }
  0x19   : > { %638 = vmatprep.subr.bf16.mxu0 %v697_v7  ;;  %657 = vmatprep.subr.bf16.mxu1 %v697_v7 }
  0x1c   : > { %639 = vmatpush3.bf16.msra.mxu0 %v697_v7  ;;  %665 = vmatpush3.bf16.msra.mxu1 %v697_v7 }
  0x1d   : > { %640 = vmatprep.subr.bf16.mxu0 %v698_v8  ;;  %658 = vmatprep.subr.bf16.mxu1 %v698_v8 }
  0x20   : > { %641 = vmatpush3.bf16.msra.mxu0 %v698_v8  ;;  %666 = vmatpush3.bf16.msra.mxu1 %v698_v8 }
  0x21   : > { %642 = vmatprep.subr.bf16.mxu0 %v699_v9  ;;  %659 = vmatprep.subr.bf16.mxu1 %v699_v9 }
  0x24   : > { %643 = vmatpush3.bf16.msra.mxu0 %v699_v9  ;;  %667 = vmatpush3.bf16.msra.mxu1 %v699_v9 }
  0x27   : > { %645 = vmatmul.mubr.bf16.vlgmr.msra.gmra.mrb[0].mxu0 %v702_v10  ;;  %649 = vmatmul.mubr.bf16.vlgmr.msra.gmra.mrb[0].mxu1 %v703_v11 }
  0xfa   : > { %v646_v13 = vpop.f32.mrb[0].mxu0  ;;  %v650_v14 = vpop.f32.mrb[0].mxu1 }
  0xfb   : > { %v415_v15 = vadd.f32 %v646_v13, %v574_v12  ;;  %v419_v16 = vadd.f32 %v650_v14, %v574_v12  ;;  %v348_v17 = vpop.f32.mrb[1].mxu0  ;;  %v364_v18 = vpop.f32.mrb[1].mxu1 }
  0xfc   : > { %v413_v19 = vadd.f32 %v574_v12, %v348_v17  ;;  %v417_v20 = vadd.f32 %v574_v12, %v364_v18  ;;  %v647_v21 = vpop.f32.mrb[2].mxu0  ;;  %v651_v22 = vpop.f32.mrb[2].mxu1 }
  0xfd   : > { %vm423_vm0 = vcmp.ge.f32.partialorder %v415_v15, 0.0  ;;  %v431_v23 = vmul.f32 0.01, %v415_v15  ;;  %vm427_vm1 = vcmp.ge.f32.partialorder %v419_v16, 0.0  ;;  %v435_v24 = vmul.f32 0.01, %v419_v16 }
  0xfe   : > { %vm421_vm2 = vcmp.ge.f32.partialorder %v413_v19, 0.0  ;;  %v429_v25 = vmul.f32 0.01, %v413_v19  ;;  %vm425_vm3 = vcmp.ge.f32.partialorder %v417_v20, 0.0  ;;  %v433_v26 = vmul.f32 0.01, %v417_v20 }
  0xff   : > { %v416_v27 = vadd.f32 %v647_v21, %v574_v12  ;;  %v420_v28 = vadd.f32 %v651_v22, %v574_v12  ;;  %v351_v29 = vpop.f32.mrb[3].mxu0  ;;  %v367_v30 = vpop.f32.mrb[3].mxu1  ;;  %v439_v31 = vsel %vm423_vm0, %v415_v15, %v431_v23  ;;  %v443_v32 = vsel %vm427_vm1, %v419_v16, %v435_v24 }
 0x100   : > { %v414_v33 = vadd.f32 %v574_v12, %v351_v29  ;;  %v418_v34 = vadd.f32 %v574_v12, %v367_v30  ;;  %v437_v39 = vsel %vm421_vm2, %v413_v19, %v429_v25  ;;  %v441_v40 = vsel %vm425_vm3, %v417_v20, %v433_v26 }
 0x101   : > { %vm424_vm4 = vcmp.ge.f32.partialorder %v416_v27, 0.0  ;;  %v432_v35 = vmul.f32 0.01, %v416_v27  ;;  %vm428_vm5 = vcmp.ge.f32.partialorder %v420_v28, 0.0  ;;  %v436_v36 = vmul.f32 0.01, %v420_v28 }
 0x102   : > { %vm422_vm6 = vcmp.ge.f32.partialorder %v414_v33, 0.0  ;;  %v430_v37 = vmul.f32 0.01, %v414_v33  ;;  %vm426_vm7 = vcmp.ge.f32.partialorder %v418_v34, 0.0  ;;  %v434_v38 = vmul.f32 0.01, %v418_v34 }
 0x103   : > { %v440_v41 = vsel %vm424_vm4, %v416_v27, %v432_v35  ;;  %v444_v42 = vsel %vm428_vm5, %v420_v28, %v436_v36 }
 0x104   : > { %v601_v43 = vpack.c.bf16 %v440_v41, %v439_v31  ;;  %v611_v44 = vpack.c.bf16 %v444_v42, %v443_v32  ;;  %v438_v45 = vsel %vm422_vm6, %v414_v33, %v430_v37  ;;  %v442_v46 = vsel %vm426_vm7, %v418_v34, %v434_v38 }
 0x105   : > { %v596_v47 = vpack.c.bf16 %v438_v45, %v437_v39  ;;  %v606_v48 = vpack.c.bf16 %v442_v46, %v441_v40 }
 0x106   : > { %613 = vst [vmem:[%s195_s17 + $0x8] sm:$0xff] %v601_v43   ;;  %615 = vst [vmem:[%s195_s17 + $0x18] sm:$0xff] %v611_v44  }
 0x107   : > { %597 = vst [vmem:[%s195_s17] sm:$0xff] %v596_v47   ;;  %614 = vst [vmem:[%s195_s17 + $0x10] sm:$0xff] %v606_v48  }
 0x108 PF: > { %s13_s14 = sadd.s32 1, %s726_s14   ;;  %s827_s12 = smov %s722_s13 }
 0x109   : > { %p10_p5 = scmp.ge.s32.totalorder %s13_s14, 4   ;;  %s828_s13 = smov %s830_s15 }
 0x10b   :  { %12 = sbr.rel (!%p10_p5) target bundleno = 2 (0x2), region = 70 }

// kernel: vqvae_forward.21
= control target key start
LH: loop header
LB: loop body
LE: loop exit
PB: predicated region body
PF: predicated region fallthrough
CT: control target
= control target key end

     0   :  { %s1056_s12 = smov 0   ;;  %s1058_s13 = smov 0   ;;  %s1176_s0 = inlined_call_operand.vmem [shape: bf16[32,2048], index: 0, kind: input, shape index: {}]   ;;  %s1177_s1 = inlined_call_operand.vmem [shape: bf16[2048,128], index: 1, kind: input, shape index: {}]   ;;  %s1178_s2 = inlined_call_operand.vmem [shape: f32[1,128], index: 2, kind: input, shape index: {}]   ;;  %s1179_s3 = inlined_call_operand.vmem [shape: bf16[32,128], index: 3, kind: output, shape index: {}]  }
   0x1   :  { %s1060_s14 = smov 0   ;;  %s1062_s15 = smov 0  }
   0x2   :  { %s1064_s16 = smov 0  }
   0x3 LB: > { %s22_s17 = sadd.s32 1, %s1029_s15  ;;  %p41_p1 = scmp.ne.s32.totalorder %s1021_s13, %s1017_s12  ;;  %s1033_s16 = sphi %s1064_s16, %s13_s16   ;;  %s1029_s15 = sphi %s1062_s15, %s1183_s15   ;;  %s1025_s14 = sphi %s1060_s14, %s1182_s14   ;;  %s1021_s13 = sphi %s1058_s13, %s1181_s13   ;;  %s1017_s12 = sphi %s1056_s12, %s1180_s12  }
   0x4   : > { %p23_p0 = scmp.ge.s32.totalorder %s22_s17, 4  ;;  %p42_p2 = scmp.eq.s32.totalorder %s1033_s16, 0 }
   0x5   : > { %s34_s19 = sadd.s32 1, %s1021_s13  ;;  %p779_p5 = scmp.ge.s32.totalorder %s1033_s16, 4 }
   0x6   : > { %s1185_s17 = smov (%p23_p0, %s22_s17), 0  ;;  %p43_p3 = por %p42_p2, %p41_p1 }
   0x7   : > { %s30_s18 = ssub.s32 %s1029_s15, %s1185_s17  ;;  %141 = sbr.rel (%p779_p5) target bundleno = 22 (0x16), region = 24 }
   0x8   : > { %p32_p4 = scmp.eq.s32.totalorder %s30_s18, 0 }
   0xa   : > { %s1091_s20 = scalar_select %p32_p4, %s1021_s13, %s34_s19  }
   0xe   : > { %144 = sbr.rel (!%p43_p3) target bundleno = 22 (0x16), region = 28  ;;  %s146_s21 = sand.u32 (%p43_p3), 1, %s1021_s13  }
   0xf   : > { %s838_s22 = sshll.u32 (%p43_p3), %s1029_s15, 4  ;;  %s780_s23 = sshll.u32 (%p43_p3), %s146_s21, 6 }
  0x10   : > { %s154_s26 = scalar_lea.vmem (%p43_p3), %s1176_s0, %s838_s22  ;;  %s148_s27 = scalar_lea.vmem (%p43_p3), [#allocation3], %s780_s23 }
  0x11   : > { %v167_v0 = vld [vmem:[%s154_s26] sm:$0xff] (%p43_p3)  ;;  %v169_v1 = vld [vmem:[%s154_s26 + $0x8] sm:$0xff] (%p43_p3) }
  0x12   : > { %v171_v2 = vld [vmem:[%s154_s26 + $0x40] sm:$0xff] (%p43_p3)  ;;  %168 = vst [vmem:[%s148_s27] sm:$0xff] (%p43_p3), %v167_v0  ;;  %170 = vst [vmem:[%s148_s27 + $0x8] sm:$0xff] (%p43_p3), %v169_v1  ;;  %v173_v3 = vld [vmem:[%s154_s26 + $0x48] sm:$0xff] (%p43_p3) }
  0x13   : > { %172 = vst [vmem:[%s148_s27 + $0x10] sm:$0xff] (%p43_p3), %v171_v2  ;;  %v175_v4 = vld [vmem:[%s154_s26 + $0x80] sm:$0xff] (%p43_p3)  ;;  %v177_v5 = vld [vmem:[%s154_s26 + $0x88] sm:$0xff] (%p43_p3)  ;;  %174 = vst [vmem:[%s148_s27 + $0x18] sm:$0xff] (%p43_p3), %v173_v3 }
  0x14   : > { %176 = vst [vmem:[%s148_s27 + $0x20] sm:$0xff] (%p43_p3), %v175_v4  ;;  %178 = vst [vmem:[%s148_s27 + $0x28] sm:$0xff] (%p43_p3), %v177_v5  ;;  %v179_v6 = vld [vmem:[%s154_s26 + $0xc0] sm:$0xff] (%p43_p3)  ;;  %v181_v7 = vld [vmem:[%s154_s26 + $0xc8] sm:$0xff] (%p43_p3) }
  0x15   : > { %180 = vst [vmem:[%s148_s27 + $0x30] sm:$0xff] %v179_v6  ;;  %182 = vst [vmem:[%s148_s27 + $0x38] sm:$0xff] %v181_v7 }
  0x16 PF: > { %p783_p6 = scmp.ge.s32.totalorder %s1033_s16, 1  ;;  %p187_p7 = scmp.lt.s32.totalorder %s1033_s16, 5 }
  0x18   : > { %p188_p8 = pnand %p783_p6, %p187_p7 }
  0x19   : > { %s194_s28 = sand.u32 (!%p188_p8), 1, %s1017_s12   ;;  %p785_p9 = scmp.ne.s32.totalorder (!%p188_p8), %s1025_s14, 0 }
  0x1a   : > { %191 = sbr.rel (%p188_p8) target bundleno = 324 (0x144), region = 51  ;;  %s784_s29 = sshll.u32 (!%p188_p8), %s194_s28, 6 }
  0x1b   : > { %s1102_s30 = scalar_lea.vmem (!%p188_p8), [#allocation3], %s784_s29 }
  0x21   : > { %229 = sbr.rel (%p785_p9) target bundleno = 40 (0x28), region = 59  ;;  %v1035_v8 = vmov (!%p785_p9), 0.0  }
  0x22   : > { %230 = vst [vmem:[#allocation2] sm:$0xff] (!%p785_p9), %v1035_v8  ;;  %231 = vst [vmem:[#allocation2 + $0x8] sm:$0xff] (!%p785_p9), %v1035_v8 }
  0x23   : > { %232 = vst [vmem:[#allocation2 + $0x10] sm:$0xff] (!%p785_p9), %v1035_v8  ;;  %233 = vst [vmem:[#allocation2 + $0x18] sm:$0xff] (!%p785_p9), %v1035_v8 }
  0x28 PF: > { %s786_s4 = sshll.u32 %s1025_s14, 9  ;;  %v985_v9 = vld [vmem:[%s1102_s30 + $0x4] ss:$16 sps:$4 sm:$0xff]   ;;  %v988_v10 = vld [vmem:[%s1102_s30 + $0xc] ss:$16 sps:$4 sm:$0xff]   ;;  %p828_p10 = scmp.ne.s32.totalorder %s1025_s14, 3 }
  0x29   : > { %s235_s5 = sshra.s32 %s786_s4, 3  ;;  %579 = vmatprep.mubr.bf16.mxu0 %v985_v9  ;;  %628 = vmatprep.mubr.bf16.mxu1 %v988_v10  ;;  %v983_v41 = vld [vmem:[%s1102_s30] ss:$16 sps:$4 sm:$0xff]   ;;  %v986_v44 = vld [vmem:[%s1102_s30 + $0x8] ss:$16 sps:$4 sm:$0xff]  }
  0x2a   : > { %s787_s6 = sshll.u32 %s235_s5, 2  ;;  %v989_v45 = vld [vmem:[%s1102_s30 + $0x24] ss:$16 sps:$4 sm:$0xff]   ;;  %v991_v46 = vld [vmem:[%s1102_s30 + $0x2c] ss:$16 sps:$4 sm:$0xff]  }
  0x2b   : > { %s1111_s9 = scalar_lea.vmem %s1177_s1, %s787_s6  ;;  %v993_v47 = vld [vmem:[%s1102_s30 + $0x20] ss:$16 sps:$4 sm:$0xff]   ;;  %v994_v48 = vld [vmem:[%s1102_s30 + $0x28] ss:$16 sps:$4 sm:$0xff]  }
  0x2c   : > { %v951_v11 = vld [vmem:[%s1111_s9 + $0x40] sm:$0xff]   ;;  %v955_v15 = vld [vmem:[%s1111_s9 + $0x48] sm:$0xff]   ;;  %v959_v19 = vld [vmem:[%s1111_s9 + $0x50] sm:$0xff]  }
  0x2d   : > { %v952_v12 = vld [vmem:[%s1111_s9 + $0xc0] sm:$0xff]   ;;  %854 = vmatprep.subr.bf16.mxu0 %v951_v11  ;;  %v956_v16 = vld [vmem:[%s1111_s9 + $0xc8] sm:$0xff]   ;;  %v960_v20 = vld [vmem:[%s1111_s9 + $0xd0] sm:$0xff]  }
  0x2e   : > { %v953_v13 = vld [vmem:[%s1111_s9] sm:$0xff]   ;;  %882 = vmatprep.subr.bf16.mxu1 %v952_v12  ;;  %v957_v17 = vld [vmem:[%s1111_s9 + $0x8] sm:$0xff]   ;;  %v961_v21 = vld [vmem:[%s1111_s9 + $0x10] sm:$0xff]  }
  0x2f   : > { %v954_v14 = vld [vmem:[%s1111_s9 + $0x80] sm:$0xff]   ;;  %855 = vmatpush3.bf16.msra.mxu0 %v953_v13  ;;  %v958_v18 = vld [vmem:[%s1111_s9 + $0x88] sm:$0xff]   ;;  %v962_v22 = vld [vmem:[%s1111_s9 + $0x90] sm:$0xff]  }
  0x30   : > { %883 = vmatpush3.bf16.msra.mxu1 %v954_v14  ;;  %856 = vmatprep.subr.bf16.mxu0 %v955_v15  ;;  %v963_v23 = vld [vmem:[%s1111_s9 + $0x58] sm:$0xff]   ;;  %v967_v27 = vld [vmem:[%s1111_s9 + $0x60] sm:$0xff]   ;;  %v971_v31 = vld [vmem:[%s1111_s9 + $0x68] sm:$0xff]  }
  0x31   : > { %884 = vmatprep.subr.bf16.mxu1 %v956_v16  ;;  %v964_v24 = vld [vmem:[%s1111_s9 + $0xd8] sm:$0xff]   ;;  %v968_v28 = vld [vmem:[%s1111_s9 + $0xe0] sm:$0xff]   ;;  %v972_v32 = vld [vmem:[%s1111_s9 + $0xe8] sm:$0xff]  }
  0x32   : > { %v965_v25 = vld [vmem:[%s1111_s9 + $0x18] sm:$0xff]   ;;  %v969_v29 = vld [vmem:[%s1111_s9 + $0x20] sm:$0xff]   ;;  %v973_v33 = vld [vmem:[%s1111_s9 + $0x28] sm:$0xff]  }
  0x33   : > { %857 = vmatpush3.bf16.msra.mxu0 %v957_v17  ;;  %v966_v26 = vld [vmem:[%s1111_s9 + $0x98] sm:$0xff]   ;;  %v970_v30 = vld [vmem:[%s1111_s9 + $0xa0] sm:$0xff]   ;;  %v974_v34 = vld [vmem:[%s1111_s9 + $0xa8] sm:$0xff]  }
  0x34   : > { %885 = vmatpush3.bf16.msra.mxu1 %v958_v18  ;;  %858 = vmatprep.subr.bf16.mxu0 %v959_v19  ;;  %v975_v35 = vld [vmem:[%s1111_s9 + $0x70] sm:$0xff]   ;;  %v979_v39 = vld [vmem:[%s1111_s9 + $0x78] sm:$0xff]   ;;  %v303_v58 = vld [vmem:[#allocation2] sm:$0xff] }
  0x35   : > { %886 = vmatprep.subr.bf16.mxu1 %v960_v20  ;;  %v976_v36 = vld [vmem:[%s1111_s9 + $0xf0] sm:$0xff]   ;;  %v980_v40 = vld [vmem:[%s1111_s9 + $0xf8] sm:$0xff]   ;;  %v304_v63 = vld [vmem:[#allocation2 + $0x8] sm:$0xff] }
  0x36   : > { %v977_v37 = vld [vmem:[%s1111_s9 + $0x30] sm:$0xff]   ;;  %v981_v42 = vld [vmem:[%s1111_s9 + $0x38] sm:$0xff]  }
  0x37   : > { %859 = vmatpush3.bf16.msra.mxu0 %v961_v21  ;;  %v978_v38 = vld [vmem:[%s1111_s9 + $0xb0] sm:$0xff]   ;;  %v982_v43 = vld [vmem:[%s1111_s9 + $0xb8] sm:$0xff]  }
  0x38   : > { %887 = vmatpush3.bf16.msra.mxu1 %v962_v22  ;;  %860 = vmatprep.subr.bf16.mxu0 %v963_v23  ;;  %v305_v12 = vld [vmem:[#allocation2 + $0x10] sm:$0xff]  ;;  %v306_v17 = vld [vmem:[#allocation2 + $0x18] sm:$0xff]  ;;  %v829_v23 = vld [vmem:[%s1178_s2] ss:$0 sm:$0xff] (!%p828_p10) }
  0x39   : > { %888 = vmatprep.subr.bf16.mxu1 %v964_v24 }
  0x3b   : > { %861 = vmatpush3.bf16.msra.mxu0 %v965_v25 }
  0x3c   : > { %889 = vmatpush3.bf16.msra.mxu1 %v966_v26  ;;  %862 = vmatprep.subr.bf16.mxu0 %v967_v27 }
  0x3d   : > { %890 = vmatprep.subr.bf16.mxu1 %v968_v28 }
  0x3f   : > { %863 = vmatpush3.bf16.msra.mxu0 %v969_v29 }
  0x40   : > { %891 = vmatpush3.bf16.msra.mxu1 %v970_v30  ;;  %864 = vmatprep.subr.bf16.mxu0 %v971_v31 }
  0x41   : > { %892 = vmatprep.subr.bf16.mxu1 %v972_v32 }
  0x43   : > { %865 = vmatpush3.bf16.msra.mxu0 %v973_v33 }
  0x44   : > { %893 = vmatpush3.bf16.msra.mxu1 %v974_v34  ;;  %866 = vmatprep.subr.bf16.mxu0 %v975_v35 }
  0x45   : > { %894 = vmatprep.subr.bf16.mxu1 %v976_v36 }
  0x47   : > { %867 = vmatpush3.bf16.msra.mxu0 %v977_v37 }
  0x48   : > { %895 = vmatpush3.bf16.msra.mxu1 %v978_v38  ;;  %868 = vmatprep.subr.bf16.mxu0 %v979_v39 }
  0x49   : > { %896 = vmatprep.subr.bf16.mxu1 %v980_v40 }
  0x4b   : > { %869 = vmatpush3.bf16.msra.mxu0 %v981_v42 }
  0x4c   : > { %897 = vmatpush3.bf16.msra.mxu1 %v982_v43 }
  0x4e   : > { %580 = vmatmul.mubr.bf16.vlgmr.msra.gmra.mrb[0].mxu0 %v983_v41 }
  0x4f   : > { %629 = vmatmul.mubr.bf16.vlgmr.msra.gmra.mrb[0].mxu1 %v986_v44  ;;  %587 = vmatprep.mubr.bf16.mxu0 %v989_v45 }
  0x50   : > { %636 = vmatprep.mubr.bf16.mxu1 %v991_v46 }
  0x56   : > { %588 = vmatmul.mubr.bf16.gmra.mrb[4].mxu0 %v993_v47 }
  0x57   : > { %637 = vmatmul.mubr.bf16.gmra.mrb[4].mxu1 %v994_v48 }
 0x121   : > { %v870_v49 = vpop.f32.mrb[0].mxu0 }
 0x122   : > { %v898_v50 = vpop.f32.mrb[0].mxu1  ;;  %v871_v51 = vpop.f32.mrb[1].mxu0 }
 0x123   : > { %v872_v52 = vadd.f32 %v871_v51, %v870_v49  ;;  %v899_v53 = vpop.f32.mrb[1].mxu1  ;;  %v873_v54 = vpop.f32.mrb[2].mxu0 }
 0x124   : > { %v900_v55 = vadd.f32 %v899_v53, %v898_v50  ;;  %v901_v56 = vpop.f32.mrb[2].mxu1  ;;  %v874_v57 = vpop.f32.mrb[3].mxu0 }
 0x125   : > { %v875_v59 = vadd.f32 %v874_v57, %v873_v54  ;;  %v902_v60 = vpop.f32.mrb[3].mxu1 }
 0x126   : > { %v631_v61 = vadd.f32 %v900_v55, %v872_v52  ;;  %v903_v62 = vadd.f32 %v902_v60, %v901_v56 }
 0x128   : > { %v645_v0 = vadd.f32 %v631_v61, %v303_v58  ;;  %v634_v1 = vadd.f32 %v903_v62, %v875_v59 }
 0x129   : > { %v876_v2 = vpop.f32.mrb[4].mxu0 }
 0x12a   : > { %649 = vst [vmem:[#allocation2] sm:$0xff] %v645_v0  ;;  %v646_v3 = vadd.f32 %v634_v1, %v304_v63  ;;  %v904_v4 = vpop.f32.mrb[4].mxu1  ;;  %v877_v5 = vpop.f32.mrb[5].mxu0 }
 0x12b   : > { %v878_v6 = vadd.f32 %v877_v5, %v876_v2  ;;  %v905_v7 = vpop.f32.mrb[5].mxu1  ;;  %v879_v8 = vpop.f32.mrb[6].mxu0 }
 0x12c   : > { %650 = vst [vmem:[#allocation2 + $0x8] sm:$0xff] %v646_v3  ;;  %v906_v9 = vadd.f32 %v905_v7, %v904_v4  ;;  %v907_v10 = vpop.f32.mrb[6].mxu1  ;;  %v880_v11 = vpop.f32.mrb[7].mxu0 }
 0x12d   : > { %v881_v13 = vadd.f32 %v880_v11, %v879_v8  ;;  %v908_v14 = vpop.f32.mrb[7].mxu1 }
 0x12e   : > { %v639_v15 = vadd.f32 %v906_v9, %v878_v6  ;;  %v909_v16 = vadd.f32 %v908_v14, %v907_v10  ;;  %656 = sbr.rel (%p828_p10) target bundleno = 324 (0x144), region = 63 }
 0x130   : > { %v647_v18 = vadd.f32 %v639_v15, %v305_v12  ;;  %v642_v19 = vadd.f32 %v909_v16, %v881_v13 }
 0x131   : > { %v657_v21 = vld [vmem:[#allocation2] sm:$0xff] (!%p828_p10) }
 0x132   : > { %651 = vst [vmem:[#allocation2 + $0x10] sm:$0xff] %v647_v18  ;;  %v648_v20 = vadd.f32 %v642_v19, %v306_v17  ;;  %v668_v24 = vadd.f32 (!%p828_p10), %v829_v23, %v657_v21 }
 0x133   : > { %v658_v22 = vld [vmem:[#allocation2 + $0x8] sm:$0xff] (!%p828_p10) }
 0x134   : > { %652 = vst [vmem:[#allocation2 + $0x18] sm:$0xff] %v648_v20  ;;  %v669_v25 = vadd.f32 (!%p828_p10), %v829_v23, %v658_v22  ;;  %vm672_vm0 = vcmp.ge.f32.partialorder (!%p828_p10), %v668_v24, 0.0  ;;  %v676_v30 = vmul.f32 (!%p828_p10), 0.01, %v668_v24 }
 0x136   : > { %vm673_vm1 = vcmp.ge.f32.partialorder %v669_v25, 0.0  ;;  %v677_v31 = vmul.f32 0.01, %v669_v25  ;;  %v680_v34 = vsel %vm672_vm0, %v668_v24, %v676_v30 }
 0x138   : > { %v681_v35 = vsel %vm673_vm1, %v669_v25, %v677_v31 }
 0x139   : > { %v659_v26 = vld [vmem:[#allocation2 + $0x10] sm:$0xff]  ;;  %v846_v36 = vpack.c.bf16 %v681_v35, %v680_v34 }
 0x13a   : > { %v670_v28 = vadd.f32 %v829_v23, %v659_v26 }
 0x13b   : > { %v660_v27 = vld [vmem:[#allocation2 + $0x18] sm:$0xff]  ;;  %847 = vst [vmem:[%s1179_s3] sm:$0xff] %v846_v36  }
 0x13c   : > { %v671_v29 = vadd.f32 %v829_v23, %v660_v27  ;;  %vm674_vm2 = vcmp.ge.f32.partialorder %v670_v28, 0.0  ;;  %v678_v32 = vmul.f32 0.01, %v670_v28 }
 0x13e   : > { %vm675_vm3 = vcmp.ge.f32.partialorder %v671_v29, 0.0  ;;  %v679_v33 = vmul.f32 0.01, %v671_v29  ;;  %v682_v37 = vsel %vm674_vm2, %v670_v28, %v678_v32 }
 0x140   : > { %v683_v38 = vsel %vm675_vm3, %v671_v29, %v679_v33 }
 0x141   : > { %v851_v39 = vpack.c.bf16 %v683_v38, %v682_v37 }
 0x143   : > { %853 = vst [vmem:[%s1179_s3 + $0x8] sm:$0xff] %v851_v39  }
 0x144 PF: > { %s13_s16 = sadd.s32 1, %s1033_s16   ;;  %s1180_s12 = smov %s1021_s13 }
 0x145   : > { %p10_p11 = scmp.ge.s32.totalorder %s13_s16, 6   ;;  %s1181_s13 = smov %s1091_s20 }
 0x146   : > { %s1182_s14 = smov %s1029_s15  ;;  %s1183_s15 = smov %s1185_s17 }
 0x147   :  { %12 = sbr.rel (!%p10_p11) target bundleno = 3 (0x3), region = 99 }

// kernel: vqvae_forward.22
= control target key start
LH: loop header
LB: loop body
LE: loop exit
PB: predicated region body
PF: predicated region fallthrough
CT: control target
= control target key end

     0   :  { %s983_s12 = smov 0   ;;  %s985_s13 = smov 0   ;;  %s1093_s0 = inlined_call_operand.vmem [shape: bf16[32,1152], index: 0, kind: input, shape index: {}]   ;;  %s1094_s1 = inlined_call_operand.vmem [shape: bf16[1152,128], index: 1, kind: input, shape index: {}]   ;;  %s1095_s2 = inlined_call_operand.vmem [shape: f32[1,128], index: 2, kind: input, shape index: {}]   ;;  %s1096_s3 = inlined_call_operand.vmem [shape: bf16[32,128], index: 3, kind: output, shape index: {}]  }
   0x1   :  { %s987_s14 = smov 0   ;;  %s989_s15 = smov 0  }
   0x2   :  { %s991_s16 = smov 0  }
   0x3 LB: > { %s22_s17 = sadd.s32 1, %s956_s15  ;;  %p41_p1 = scmp.ne.s32.totalorder %s948_s13, %s944_s12  ;;  %s960_s16 = sphi %s991_s16, %s13_s16   ;;  %s956_s15 = sphi %s989_s15, %s1100_s15   ;;  %s952_s14 = sphi %s987_s14, %s1099_s14   ;;  %s948_s13 = sphi %s985_s13, %s1098_s13   ;;  %s944_s12 = sphi %s983_s12, %s1097_s12  }
   0x4   : > { %p23_p0 = scmp.ge.s32.totalorder %s22_s17, 3  ;;  %p42_p2 = scmp.eq.s32.totalorder %s960_s16, 0 }
   0x5   : > { %s34_s19 = sadd.s32 1, %s948_s13  ;;  %p720_p5 = scmp.ge.s32.totalorder %s960_s16, 3 }
   0x6   : > { %s1102_s17 = smov (%p23_p0, %s22_s17), 0  ;;  %p43_p3 = por %p42_p2, %p41_p1 }
   0x7   : > { %s30_s18 = ssub.s32 %s956_s15, %s1102_s17  ;;  %141 = sbr.rel (%p720_p5) target bundleno = 23 (0x17), region = 24 }
   0x8   : > { %p32_p4 = scmp.eq.s32.totalorder %s30_s18, 0 }
   0xa   : > { %s1018_s20 = scalar_select %p32_p4, %s948_s13, %s34_s19  }
   0xe   : > { %144 = sbr.rel (!%p43_p3) target bundleno = 23 (0x17), region = 28  ;;  %s146_s21 = sand.u32 (%p43_p3), 1, %s948_s13  }
   0xf   : > { %s773_s22 = smul.u32 (%p43_p3), 12, %s956_s15 }
  0x10   : > { %s847_s23 = smul.u32 (%p43_p3), 48, %s146_s21 }
  0x11   : > { %s154_s26 = scalar_lea.vmem (%p43_p3), %s1093_s0, %s773_s22 }
  0x12   : > { %v169_v0 = vld [vmem:[%s154_s26] sm:$0xff] (%p43_p3)  ;;  %v173_v2 = vld [vmem:[%s154_s26 + $0x48] sm:$0xff] (%p43_p3)  ;;  %s148_s27 = scalar_lea.vmem (%p43_p3), [#allocation3], %s847_s23  ;;  %v726_v6 = vld [vmem:[%s154_s26 + $0x50] sm:$0xf] (%p43_p3) }
  0x13   : > { %v171_v1 = vld [vmem:[%s154_s26 + $0x24] sm:$0xff] (%p43_p3)  ;;  %170 = vst [vmem:[%s148_s27] sm:$0xff] (%p43_p3), %v169_v0  ;;  %174 = vst [vmem:[%s148_s27 + $0x18] sm:$0xff] (%p43_p3), %v173_v2  ;;  %v175_v3 = vld [vmem:[%s154_s26 + $0x6c] sm:$0xff] (%p43_p3) }
  0x14   : > { %172 = vst [vmem:[%s148_s27 + $0xc] sm:$0xff] (%p43_p3), %v171_v1  ;;  %v722_v4 = vld [vmem:[%s154_s26 + $0x8] sm:$0xf] (%p43_p3)  ;;  %v724_v5 = vld [vmem:[%s154_s26 + $0x2c] sm:$0xf] (%p43_p3)  ;;  %176 = vst [vmem:[%s148_s27 + $0x24] sm:$0xff] (%p43_p3), %v175_v3 }
  0x15   : > { %723 = vst [vmem:[%s148_s27 + $0x8] sm:$0xf] %v722_v4  ;;  %725 = vst [vmem:[%s148_s27 + $0x14] sm:$0xf] %v724_v5  ;;  %v728_v7 = vld [vmem:[%s154_s26 + $0x74] sm:$0xf] }
  0x16   : > { %727 = vst [vmem:[%s148_s27 + $0x20] sm:$0xf] %v726_v6  ;;  %729 = vst [vmem:[%s148_s27 + $0x2c] sm:$0xf] %v728_v7 }
  0x17 PF: > { %p730_p6 = scmp.ge.s32.totalorder %s960_s16, 1  ;;  %p196_p7 = scmp.lt.s32.totalorder %s960_s16, 4 }
  0x19   : > { %p197_p8 = pnand %p730_p6, %p196_p7 }
  0x1a   : > { %s203_s28 = sand.u32 (!%p197_p8), 1, %s944_s12   ;;  %p731_p9 = scmp.ne.s32.totalorder (!%p197_p8), %s952_s14, 0 }
  0x1b   : > { %200 = sbr.rel (%p197_p8) target bundleno = 324 (0x144), region = 54 }
  0x1c   : > { %s848_s29 = smul.u32 (!%p197_p8), 48, %s203_s28 }
  0x1e   : > { %s1029_s30 = scalar_lea.vmem (!%p197_p8), [#allocation3], %s848_s29 }
  0x22   : > { %238 = sbr.rel (%p731_p9) target bundleno = 41 (0x29), region = 62  ;;  %v962_v8 = vmov (!%p731_p9), 0.0  }
  0x23   : > { %239 = vst [vmem:[#allocation2] sm:$0xff] (!%p731_p9), %v962_v8  ;;  %240 = vst [vmem:[#allocation2 + $0x8] sm:$0xff] (!%p731_p9), %v962_v8 }
  0x24   : > { %241 = vst [vmem:[#allocation2 + $0x10] sm:$0xff] (!%p731_p9), %v962_v8  ;;  %242 = vst [vmem:[#allocation2 + $0x18] sm:$0xff] (!%p731_p9), %v962_v8 }
  0x29 PF: > { %s243_s4 = smul.u32 384, %s952_s14  ;;  %v916_v9 = vld [vmem:[%s1029_s30 + $0x4] ss:$12 sps:$4 sm:$0xff]   ;;  %v917_v10 = vld [vmem:[%s1029_s30 + $0x8] ss:$12 sps:$4 sm:$0xff]   ;;  %p763_p10 = scmp.ne.s32.totalorder %s952_s14, 2 }
  0x2a   : > { %516 = vmatprep.mubr.bf16.mxu0 %v916_v9  ;;  %843 = vmatprep.mubr.bf16.mxu1 %v917_v10  ;;  %v914_v35 = vld [vmem:[%s1029_s30] ss:$12 sps:$4 sm:$0xff]   ;;  %v919_v36 = vld [vmem:[%s1029_s30 + $0x1c] ss:$12 sps:$4 sm:$0xff]   ;;  %v921_v38 = vld [vmem:[%s1029_s30 + $0x18] ss:$12 sps:$4 sm:$0xff]  }
  0x2b   : > { %s244_s5 = sshra.s32 %s243_s4, 3  ;;  %v918_v37 = vld [vmem:[%s1029_s30 + $0x20] ss:$12 sps:$4 sm:$0xff]  }
  0x2c   : > { %s732_s6 = sshll.u32 %s244_s5, 2  ;;  %v296_v45 = vld [vmem:[#allocation2] sm:$0xff]  ;;  %v297_v50 = vld [vmem:[#allocation2 + $0x8] sm:$0xff]  ;;  %v298_v59 = vld [vmem:[#allocation2 + $0x10] sm:$0xff] }
  0x2d   : > { %s1038_s9 = scalar_lea.vmem %s1094_s1, %s732_s6  ;;  %v299_v63 = vld [vmem:[#allocation2 + $0x18] sm:$0xff]  ;;  %v764_v5 = vld [vmem:[%s1095_s2] ss:$0 sm:$0xff] (!%p763_p10) }
  0x2e   : > { %v890_v11 = vld [vmem:[%s1038_s9 + $0x40] sm:$0xff]   ;;  %v893_v14 = vld [vmem:[%s1038_s9 + $0x48] sm:$0xff]   ;;  %v896_v17 = vld [vmem:[%s1038_s9 + $0x50] sm:$0xff]  }
  0x2f   : > { %v891_v12 = vld [vmem:[%s1038_s9] sm:$0xff]   ;;  %789 = vmatprep.subr.bf16.mxu0 %v890_v11  ;;  %v894_v15 = vld [vmem:[%s1038_s9 + $0x8] sm:$0xff]   ;;  %v897_v18 = vld [vmem:[%s1038_s9 + $0x10] sm:$0xff]  }
  0x30   : > { %v892_v13 = vld [vmem:[%s1038_s9 + $0x80] sm:$0xff]   ;;  %790 = vmatpush3.bf16.msra.mxu0 %v891_v12  ;;  %v895_v16 = vld [vmem:[%s1038_s9 + $0x88] sm:$0xff]   ;;  %v898_v19 = vld [vmem:[%s1038_s9 + $0x90] sm:$0xff]  }
  0x31   : > { %827 = vmatprep.subr.bf16.mxu1 %v892_v13  ;;  %791 = vmatprep.subr.bf16.mxu0 %v893_v14  ;;  %v899_v20 = vld [vmem:[%s1038_s9 + $0x58] sm:$0xff]   ;;  %v902_v23 = vld [vmem:[%s1038_s9 + $0x60] sm:$0xff]   ;;  %v905_v26 = vld [vmem:[%s1038_s9 + $0x68] sm:$0xff]  }
  0x32   : > { %828 = vmatpush3.bf16.msra.mxu1 %v892_v13  ;;  %v900_v21 = vld [vmem:[%s1038_s9 + $0x18] sm:$0xff]   ;;  %v904_v24 = vld [vmem:[%s1038_s9 + $0xa0] sm:$0xff]   ;;  %v907_v27 = vld [vmem:[%s1038_s9 + $0xa8] sm:$0xff]  }
  0x33   : > { %829 = vmatprep.subr.bf16.mxu1 %v895_v16  ;;  %v901_v22 = vld [vmem:[%s1038_s9 + $0x98] sm:$0xff]   ;;  %v903_v25 = vld [vmem:[%s1038_s9 + $0x20] sm:$0xff]   ;;  %v906_v28 = vld [vmem:[%s1038_s9 + $0x28] sm:$0xff]  }
  0x34   : > { %792 = vmatpush3.bf16.msra.mxu0 %v894_v15  ;;  %v908_v29 = vld [vmem:[%s1038_s9 + $0x70] sm:$0xff]   ;;  %v911_v32 = vld [vmem:[%s1038_s9 + $0x78] sm:$0xff]  }
  0x35   : > { %793 = vmatprep.subr.bf16.mxu0 %v896_v17  ;;  %v910_v30 = vld [vmem:[%s1038_s9 + $0xb0] sm:$0xff]   ;;  %v913_v33 = vld [vmem:[%s1038_s9 + $0xb8] sm:$0xff]  }
  0x36   : > { %830 = vmatpush3.bf16.msra.mxu1 %v895_v16  ;;  %v909_v31 = vld [vmem:[%s1038_s9 + $0x30] sm:$0xff]   ;;  %v912_v34 = vld [vmem:[%s1038_s9 + $0x38] sm:$0xff]  }
  0x37   : > { %831 = vmatprep.subr.bf16.mxu1 %v898_v19 }
  0x38   : > { %794 = vmatpush3.bf16.msra.mxu0 %v897_v18 }
  0x39   : > { %795 = vmatprep.subr.bf16.mxu0 %v899_v20 }
  0x3a   : > { %832 = vmatpush3.bf16.msra.mxu1 %v898_v19 }
  0x3b   : > { %833 = vmatprep.subr.bf16.mxu1 %v901_v22 }
  0x3c   : > { %796 = vmatpush3.bf16.msra.mxu0 %v900_v21 }
  0x3d   : > { %797 = vmatprep.subr.bf16.mxu0 %v902_v23 }
  0x3e   : > { %834 = vmatpush3.bf16.msra.mxu1 %v901_v22 }
  0x3f   : > { %835 = vmatprep.subr.bf16.mxu1 %v904_v24 }
  0x40   : > { %798 = vmatpush3.bf16.msra.mxu0 %v903_v25 }
  0x41   : > { %799 = vmatprep.subr.bf16.mxu0 %v905_v26 }
  0x42   : > { %836 = vmatpush3.bf16.msra.mxu1 %v904_v24 }
  0x43   : > { %837 = vmatprep.subr.bf16.mxu1 %v907_v27 }
  0x44   : > { %800 = vmatpush3.bf16.msra.mxu0 %v906_v28 }
  0x45   : > { %801 = vmatprep.subr.bf16.mxu0 %v908_v29 }
  0x46   : > { %838 = vmatpush3.bf16.msra.mxu1 %v907_v27 }
  0x47   : > { %839 = vmatprep.subr.bf16.mxu1 %v910_v30 }
  0x48   : > { %802 = vmatpush3.bf16.msra.mxu0 %v909_v31 }
  0x49   : > { %803 = vmatprep.subr.bf16.mxu0 %v911_v32 }
  0x4a   : > { %840 = vmatpush3.bf16.msra.mxu1 %v910_v30 }
  0x4b   : > { %841 = vmatprep.subr.bf16.mxu1 %v913_v33 }
  0x4c   : > { %804 = vmatpush3.bf16.msra.mxu0 %v912_v34 }
  0x4e   : > { %842 = vmatpush3.bf16.msra.mxu1 %v913_v33 }
  0x4f   : > { %517 = vmatmul.mubr.bf16.vlgmr.msra.gmra.mrb[0].mxu0 %v914_v35 }
  0x50   : > { %524 = vmatprep.mubr.bf16.mxu0 %v919_v36 }
  0x51   : > { %844 = vmatmul.mubr.bf16.vlgmr.msra.gmra.mrb[0].mxu1 %v918_v37 }
  0x57   : > { %525 = vmatmul.mubr.bf16.gmra.mrb[4].mxu0 %v921_v38 }
 0x122   : > { %v805_v39 = vpop.f32.mrb[0].mxu0 }
 0x123   : > { %v806_v40 = vpop.f32.mrb[1].mxu0 }
 0x124   : > { %v807_v41 = vadd.f32 %v806_v40, %v805_v39  ;;  %v808_v42 = vpop.f32.mrb[2].mxu0  ;;  %v845_v43 = vpop.f32.mrb[0].mxu1 }
 0x125   : > { %v809_v44 = vpop.f32.mrb[3].mxu0  ;;  %v567_v46 = vpop.f32.mrb[1].mxu1 }
 0x126   : > { %v810_v47 = vadd.f32 %v809_v44, %v808_v42  ;;  %v568_v48 = vadd.f32 %v807_v41, %v567_v46  ;;  %v846_v49 = vpop.f32.mrb[2].mxu1 }
 0x127   : > { %v570_v51 = vpop.f32.mrb[3].mxu1 }
 0x128   : > { %v582_v52 = vadd.f32 %v568_v48, %v296_v45  ;;  %v571_v53 = vadd.f32 %v810_v47, %v570_v51 }
 0x12a   : > { %586 = vst [vmem:[#allocation2] sm:$0xff] %v582_v52  ;;  %v583_v54 = vadd.f32 %v571_v53, %v297_v50  ;;  %v811_v55 = vpop.f32.mrb[4].mxu0 }
 0x12b   : > { %v812_v56 = vpop.f32.mrb[5].mxu0 }
 0x12c   : > { %587 = vst [vmem:[#allocation2 + $0x8] sm:$0xff] %v583_v54  ;;  %v813_v57 = vadd.f32 %v812_v56, %v811_v55  ;;  %v814_v58 = vpop.f32.mrb[6].mxu0 }
 0x12d   : > { %v815_v60 = vpop.f32.mrb[7].mxu0 }
 0x12e   : > { %v576_v61 = vadd.f32 %v845_v43, %v813_v57  ;;  %v816_v62 = vadd.f32 %v815_v60, %v814_v58  ;;  %593 = sbr.rel (%p763_p10) target bundleno = 324 (0x144), region = 66 }
 0x130   : > { %v584_v0 = vadd.f32 %v576_v61, %v298_v59  ;;  %v579_v1 = vadd.f32 %v846_v49, %v816_v62 }
 0x131   : > { %v594_v3 = vld [vmem:[#allocation2] sm:$0xff] (!%p763_p10) }
 0x132   : > { %588 = vst [vmem:[#allocation2 + $0x10] sm:$0xff] %v584_v0  ;;  %v585_v2 = vadd.f32 %v579_v1, %v299_v63  ;;  %v605_v6 = vadd.f32 (!%p763_p10), %v764_v5, %v594_v3 }
 0x133   : > { %v595_v4 = vld [vmem:[#allocation2 + $0x8] sm:$0xff] (!%p763_p10) }
 0x134   : > { %589 = vst [vmem:[#allocation2 + $0x18] sm:$0xff] %v585_v2  ;;  %v606_v7 = vadd.f32 (!%p763_p10), %v764_v5, %v595_v4  ;;  %vm609_vm0 = vcmp.ge.f32.partialorder (!%p763_p10), %v605_v6, 0.0  ;;  %v613_v12 = vmul.f32 (!%p763_p10), 0.01, %v605_v6 }
 0x136   : > { %vm610_vm1 = vcmp.ge.f32.partialorder %v606_v7, 0.0  ;;  %v614_v13 = vmul.f32 0.01, %v606_v7  ;;  %v617_v16 = vsel %vm609_vm0, %v605_v6, %v613_v12 }
 0x138   : > { %v618_v17 = vsel %vm610_vm1, %v606_v7, %v614_v13 }
 0x139   : > { %v596_v8 = vld [vmem:[#allocation2 + $0x10] sm:$0xff]  ;;  %v781_v18 = vpack.c.bf16 %v618_v17, %v617_v16 }
 0x13a   : > { %v607_v10 = vadd.f32 %v764_v5, %v596_v8 }
 0x13b   : > { %v597_v9 = vld [vmem:[#allocation2 + $0x18] sm:$0xff]  ;;  %782 = vst [vmem:[%s1096_s3] sm:$0xff] %v781_v18  }
 0x13c   : > { %v608_v11 = vadd.f32 %v764_v5, %v597_v9  ;;  %vm611_vm2 = vcmp.ge.f32.partialorder %v607_v10, 0.0  ;;  %v615_v14 = vmul.f32 0.01, %v607_v10 }
 0x13e   : > { %vm612_vm3 = vcmp.ge.f32.partialorder %v608_v11, 0.0  ;;  %v616_v15 = vmul.f32 0.01, %v608_v11  ;;  %v619_v19 = vsel %vm611_vm2, %v607_v10, %v615_v14 }
 0x140   : > { %v620_v20 = vsel %vm612_vm3, %v608_v11, %v616_v15 }
 0x141   : > { %v786_v21 = vpack.c.bf16 %v620_v20, %v619_v19 }
 0x143   : > { %788 = vst [vmem:[%s1096_s3 + $0x8] sm:$0xff] %v786_v21  }
 0x144 PF: > { %s13_s16 = sadd.s32 1, %s960_s16   ;;  %s1097_s12 = smov %s948_s13 }
 0x145   : > { %p10_p11 = scmp.ge.s32.totalorder %s13_s16, 5   ;;  %s1098_s13 = smov %s1018_s20 }
 0x146   : > { %s1099_s14 = smov %s956_s15  ;;  %s1100_s15 = smov %s1102_s17 }
 0x147   :  { %12 = sbr.rel (!%p10_p11) target bundleno = 3 (0x3), region = 108 }

// kernel: vqvae_forward.23
= control target key start
LH: loop header
LB: loop body
LE: loop exit
PB: predicated region body
PF: predicated region fallthrough
CT: control target
= control target key end

     0   :  { %s1211_s15 = smov 0   ;;  %s1213_s16 = smov 0   ;;  %s1348_s0 = inlined_call_operand.vmem [shape: bf16[32,1152], index: 0, kind: input, shape index: {}]   ;;  %s1349_s1 = inlined_call_operand.vmem [shape: bf16[1152,128], index: 1, kind: input, shape index: {}]   ;;  %s1350_s2 = inlined_call_operand.vmem [shape: bf16[128,128], index: 2, kind: input, shape index: {}]   ;;  %s1351_s3 = inlined_call_operand.vmem [shape: bf16[32,128], index: 3, kind: input, shape index: {}]   ;;  %s1352_s4 = inlined_call_operand.vmem [shape: bf16[32,128], index: 4, kind: output, shape index: {}]  }
   0x1   :  { %s1215_s17 = smov 0   ;;  %s1217_s18 = smov 0  }
   0x2   :  { %s1219_s19 = smov 0  }
   0x3 LB: > { %s23_s20 = sadd.s32 1, %s1179_s18  ;;  %p42_p1 = scmp.ne.s32.totalorder %s1171_s16, %s1167_s15  ;;  %s1183_s19 = sphi %s1219_s19, %s14_s19   ;;  %s1179_s18 = sphi %s1217_s18, %s1356_s18   ;;  %s1175_s17 = sphi %s1215_s17, %s1355_s17   ;;  %s1171_s16 = sphi %s1213_s16, %s1354_s16   ;;  %s1167_s15 = sphi %s1211_s15, %s1353_s15  }
   0x4   : > { %p24_p0 = scmp.ge.s32.totalorder %s23_s20, 3  ;;  %p43_p2 = scmp.eq.s32.totalorder %s1183_s19, 0 }
   0x5   : > { %s35_s22 = sadd.s32 1, %s1171_s16  ;;  %p889_p5 = scmp.ge.s32.totalorder %s1183_s19, 3 }
   0x6   : > { %s1358_s20 = smov (%p24_p0, %s23_s20), 0  ;;  %p44_p3 = por %p43_p2, %p42_p1 }
   0x7   : > { %s31_s21 = ssub.s32 %s1179_s18, %s1358_s20  ;;  %177 = sbr.rel (%p889_p5) target bundleno = 23 (0x17), region = 28 }
   0x8   : > { %p33_p4 = scmp.eq.s32.totalorder %s31_s21, 0 }
   0xa   : > { %s1246_s23 = scalar_select %p33_p4, %s1171_s16, %s35_s22  }
   0xe   : > { %180 = sbr.rel (!%p44_p3) target bundleno = 23 (0x17), region = 32  ;;  %s182_s24 = sand.u32 (%p44_p3), 1, %s1171_s16  }
   0xf   : > { %s949_s25 = smul.u32 (%p44_p3), 12, %s1179_s18 }
  0x10   : > { %s1062_s26 = smul.u32 (%p44_p3), 48, %s182_s24 }
  0x11   : > { %s190_s29 = scalar_lea.vmem (%p44_p3), %s1348_s0, %s949_s25 }
  0x12   : > { %v205_v0 = vld [vmem:[%s190_s29] sm:$0xff] (%p44_p3)  ;;  %v209_v2 = vld [vmem:[%s190_s29 + $0x48] sm:$0xff] (%p44_p3)  ;;  %s184_s30 = scalar_lea.vmem (%p44_p3), [#allocation3], %s1062_s26  ;;  %v895_v6 = vld [vmem:[%s190_s29 + $0x50] sm:$0xf] (%p44_p3) }
  0x13   : > { %v207_v1 = vld [vmem:[%s190_s29 + $0x24] sm:$0xff] (%p44_p3)  ;;  %206 = vst [vmem:[%s184_s30] sm:$0xff] (%p44_p3), %v205_v0  ;;  %210 = vst [vmem:[%s184_s30 + $0x18] sm:$0xff] (%p44_p3), %v209_v2  ;;  %v211_v3 = vld [vmem:[%s190_s29 + $0x6c] sm:$0xff] (%p44_p3) }
  0x14   : > { %208 = vst [vmem:[%s184_s30 + $0xc] sm:$0xff] (%p44_p3), %v207_v1  ;;  %v891_v4 = vld [vmem:[%s190_s29 + $0x8] sm:$0xf] (%p44_p3)  ;;  %v893_v5 = vld [vmem:[%s190_s29 + $0x2c] sm:$0xf] (%p44_p3)  ;;  %212 = vst [vmem:[%s184_s30 + $0x24] sm:$0xff] (%p44_p3), %v211_v3 }
  0x15   : > { %892 = vst [vmem:[%s184_s30 + $0x8] sm:$0xf] %v891_v4  ;;  %894 = vst [vmem:[%s184_s30 + $0x14] sm:$0xf] %v893_v5  ;;  %v897_v7 = vld [vmem:[%s190_s29 + $0x74] sm:$0xf] }
  0x16   : > { %896 = vst [vmem:[%s184_s30 + $0x20] sm:$0xf] %v895_v6  ;;  %898 = vst [vmem:[%s184_s30 + $0x2c] sm:$0xf] %v897_v7 }
  0x17 PF: > { %p899_p6 = scmp.ge.s32.totalorder %s1183_s19, 1  ;;  %p232_p7 = scmp.lt.s32.totalorder %s1183_s19, 4 }
  0x19   : > { %p233_p8 = pnand %p899_p6, %p232_p7 }
  0x1a   : > { %s239_s5 = sand.u32 (!%p233_p8), 1, %s1167_s15   ;;  %p900_p9 = scmp.ne.s32.totalorder (!%p233_p8), %s1175_s17, 0 }
  0x1b   : > { %236 = sbr.rel (%p233_p8) target bundleno = 540 (0x21c), region = 58 }
  0x1c   : > { %s1063_s6 = smul.u32 (!%p233_p8), 48, %s239_s5 }
  0x1e   : > { %s1257_s7 = scalar_lea.vmem (!%p233_p8), [#allocation3], %s1063_s6 }
  0x22   : > { %287 = sbr.rel (%p900_p9) target bundleno = 41 (0x29), region = 66  ;;  %v1185_v8 = vmov (!%p900_p9), 0.0  }
  0x23   : > { %288 = vst [vmem:[#allocation2] sm:$0xff] (!%p900_p9), %v1185_v8  ;;  %289 = vst [vmem:[#allocation2 + $0x8] sm:$0xff] (!%p900_p9), %v1185_v8 }
  0x24   : > { %290 = vst [vmem:[#allocation2 + $0x10] sm:$0xff] (!%p900_p9), %v1185_v8  ;;  %291 = vst [vmem:[#allocation2 + $0x18] sm:$0xff] (!%p900_p9), %v1185_v8 }
  0x29 PF: > { %s292_s8 = smul.u32 384, %s1175_s17  ;;  %v1131_v9 = vld [vmem:[%s1257_s7 + $0x4] ss:$12 sps:$4 sm:$0xff]   ;;  %v1132_v10 = vld [vmem:[%s1257_s7 + $0x8] ss:$12 sps:$4 sm:$0xff]   ;;  %p932_p10 = scmp.ne.s32.totalorder %s1175_s17, 2 }
  0x2a   : > { %565 = vmatprep.mubr.bf16.mxu0 %v1131_v9  ;;  %1038 = vmatprep.mubr.bf16.mxu1 %v1132_v10  ;;  %v1129_v35 = vld [vmem:[%s1257_s7] ss:$12 sps:$4 sm:$0xff]   ;;  %v1134_v36 = vld [vmem:[%s1257_s7 + $0x1c] ss:$12 sps:$4 sm:$0xff]   ;;  %v1136_v38 = vld [vmem:[%s1257_s7 + $0x18] ss:$12 sps:$4 sm:$0xff]  }
  0x2b   : > { %s293_s9 = sshra.s32 %s292_s8, 3  ;;  %v1133_v37 = vld [vmem:[%s1257_s7 + $0x20] ss:$12 sps:$4 sm:$0xff]  }
  0x2c   : > { %s901_s10 = sshll.u32 %s293_s9, 2  ;;  %v345_v45 = vld [vmem:[#allocation2] sm:$0xff]  ;;  %v346_v50 = vld [vmem:[#allocation2 + $0x8] sm:$0xff]  ;;  %v347_v59 = vld [vmem:[#allocation2 + $0x10] sm:$0xff] }
  0x2d   : > { %s1266_s13 = scalar_lea.vmem %s1349_s1, %s901_s10  ;;  %v348_v63 = vld [vmem:[#allocation2 + $0x18] sm:$0xff]  ;;  %v1137_v3 = vld [vmem:[%s1350_s2] sm:$0xff] (!%p932_p10)   ;;  %v1138_v4 = vld [vmem:[%s1350_s2 + $0x8] sm:$0xff] (!%p932_p10)  }
  0x2e   : > { %v1105_v11 = vld [vmem:[%s1266_s13 + $0x40] sm:$0xff]   ;;  %v1108_v14 = vld [vmem:[%s1266_s13 + $0x48] sm:$0xff]   ;;  %v1111_v17 = vld [vmem:[%s1266_s13 + $0x50] sm:$0xff]  }
  0x2f   : > { %v1106_v12 = vld [vmem:[%s1266_s13] sm:$0xff]   ;;  %974 = vmatprep.subr.bf16.mxu0 %v1105_v11  ;;  %v1109_v15 = vld [vmem:[%s1266_s13 + $0x8] sm:$0xff]   ;;  %v1112_v18 = vld [vmem:[%s1266_s13 + $0x10] sm:$0xff]  }
  0x30   : > { %v1107_v13 = vld [vmem:[%s1266_s13 + $0x80] sm:$0xff]   ;;  %975 = vmatpush3.bf16.msra.mxu0 %v1106_v12  ;;  %v1110_v16 = vld [vmem:[%s1266_s13 + $0x88] sm:$0xff]   ;;  %v1113_v19 = vld [vmem:[%s1266_s13 + $0x90] sm:$0xff]  }
  0x31   : > { %1022 = vmatprep.subr.bf16.mxu1 %v1107_v13  ;;  %976 = vmatprep.subr.bf16.mxu0 %v1108_v14  ;;  %v1114_v20 = vld [vmem:[%s1266_s13 + $0x58] sm:$0xff]   ;;  %v1117_v23 = vld [vmem:[%s1266_s13 + $0x60] sm:$0xff]   ;;  %v1120_v26 = vld [vmem:[%s1266_s13 + $0x68] sm:$0xff]  }
  0x32   : > { %1023 = vmatpush3.bf16.msra.mxu1 %v1107_v13  ;;  %v1115_v21 = vld [vmem:[%s1266_s13 + $0x18] sm:$0xff]   ;;  %v1119_v24 = vld [vmem:[%s1266_s13 + $0xa0] sm:$0xff]   ;;  %v1122_v27 = vld [vmem:[%s1266_s13 + $0xa8] sm:$0xff]  }
  0x33   : > { %1024 = vmatprep.subr.bf16.mxu1 %v1110_v16  ;;  %v1116_v22 = vld [vmem:[%s1266_s13 + $0x98] sm:$0xff]   ;;  %v1118_v25 = vld [vmem:[%s1266_s13 + $0x20] sm:$0xff]   ;;  %v1121_v28 = vld [vmem:[%s1266_s13 + $0x28] sm:$0xff]  }
  0x34   : > { %977 = vmatpush3.bf16.msra.mxu0 %v1109_v15  ;;  %v1123_v29 = vld [vmem:[%s1266_s13 + $0x70] sm:$0xff]   ;;  %v1126_v32 = vld [vmem:[%s1266_s13 + $0x78] sm:$0xff]   ;;  %v1141_v12 = vld [vmem:[%s1350_s2 + $0x20] sm:$0xff] (!%p932_p10)  }
  0x35   : > { %978 = vmatprep.subr.bf16.mxu0 %v1111_v17  ;;  %v1125_v30 = vld [vmem:[%s1266_s13 + $0xb0] sm:$0xff]   ;;  %v1128_v33 = vld [vmem:[%s1266_s13 + $0xb8] sm:$0xff]   ;;  %v1142_v13 = vld [vmem:[%s1350_s2 + $0x28] sm:$0xff] (!%p932_p10)  }
  0x36   : > { %1025 = vmatpush3.bf16.msra.mxu1 %v1110_v16  ;;  %v1124_v31 = vld [vmem:[%s1266_s13 + $0x30] sm:$0xff]   ;;  %v1127_v34 = vld [vmem:[%s1266_s13 + $0x38] sm:$0xff]  }
  0x37   : > { %1026 = vmatprep.subr.bf16.mxu1 %v1113_v19  ;;  %v1139_v5 = vld [vmem:[%s1350_s2 + $0x10] sm:$0xff] (!%p932_p10)   ;;  %v1140_v6 = vld [vmem:[%s1350_s2 + $0x18] sm:$0xff] (!%p932_p10)  }
  0x38   : > { %979 = vmatpush3.bf16.msra.mxu0 %v1112_v18  ;;  %v1143_v14 = vld [vmem:[%s1350_s2 + $0x30] sm:$0xff] (!%p932_p10)   ;;  %v1144_v17 = vld [vmem:[%s1350_s2 + $0x38] sm:$0xff] (!%p932_p10)  }
  0x39   : > { %980 = vmatprep.subr.bf16.mxu0 %v1114_v20 }
  0x3a   : > { %1027 = vmatpush3.bf16.msra.mxu1 %v1113_v19 }
  0x3b   : > { %1028 = vmatprep.subr.bf16.mxu1 %v1116_v22 }
  0x3c   : > { %981 = vmatpush3.bf16.msra.mxu0 %v1115_v21  ;;  %v972_v21 = vld [vmem:[%s1351_s3 + $0x8] sm:$0xff] (!%p932_p10)  }
  0x3d   : > { %982 = vmatprep.subr.bf16.mxu0 %v1117_v23  ;;  %v960_v23 = vunpack.c.l.bf16 (!%p932_p10), %v972_v21 }
  0x3e   : > { %1029 = vmatpush3.bf16.msra.mxu1 %v1116_v22  ;;  %v955_v22 = vld [vmem:[%s1351_s3] sm:$0xff] (!%p932_p10)  }
  0x3f   : > { %1030 = vmatprep.subr.bf16.mxu1 %v1119_v24 }
  0x40   : > { %983 = vmatpush3.bf16.msra.mxu0 %v1118_v25 }
  0x41   : > { %984 = vmatprep.subr.bf16.mxu0 %v1120_v26  ;;  %v956_v26 = vunpack.c.l.bf16 (!%p932_p10), %v955_v22 }
  0x42   : > { %1031 = vmatpush3.bf16.msra.mxu1 %v1119_v24  ;;  %v961_v24 = vunpack.c.h.bf16 (!%p932_p10), %v972_v21 }
  0x43   : > { %1032 = vmatprep.subr.bf16.mxu1 %v1122_v27 }
  0x44   : > { %985 = vmatpush3.bf16.msra.mxu0 %v1121_v28 }
  0x45   : > { %986 = vmatprep.subr.bf16.mxu0 %v1123_v29 }
  0x46   : > { %1033 = vmatpush3.bf16.msra.mxu1 %v1122_v27  ;;  %v957_v27 = vunpack.c.h.bf16 (!%p932_p10), %v955_v22 }
  0x47   : > { %1034 = vmatprep.subr.bf16.mxu1 %v1125_v30 }
  0x48   : > { %987 = vmatpush3.bf16.msra.mxu0 %v1124_v31 }
  0x49   : > { %988 = vmatprep.subr.bf16.mxu0 %v1126_v32 }
  0x4a   : > { %1035 = vmatpush3.bf16.msra.mxu1 %v1125_v30 }
  0x4b   : > { %1036 = vmatprep.subr.bf16.mxu1 %v1128_v33 }
  0x4c   : > { %989 = vmatpush3.bf16.msra.mxu0 %v1127_v34 }
  0x4d   : > { %1042 = vmatprep.subr.bf16.mxu0 (!%p932_p10), %v1137_v3 }
  0x4e   : > { %1037 = vmatpush3.bf16.msra.mxu1 %v1128_v33 }
  0x4f   : > { %566 = vmatmul.mubr.bf16.vlgmr.msra.gmra.mrb[0].mxu0 %v1129_v35 }
  0x50   : > { %573 = vmatprep.mubr.bf16.mxu0 %v1134_v36  ;;  %1043 = vmatpush3.bf16.msra.mxu0 (!%p932_p10), %v1137_v3 }
  0x51   : > { %1039 = vmatmul.mubr.bf16.vlgmr.msra.gmra.mrb[0].mxu1 %v1133_v37  ;;  %1044 = vmatprep.subr.bf16.mxu0 (!%p932_p10), %v1138_v4 }
  0x54   : > { %1045 = vmatpush3.bf16.msra.mxu0 (!%p932_p10), %v1138_v4 }
  0x55   : > { %1046 = vmatprep.subr.bf16.mxu0 (!%p932_p10), %v1139_v5 }
  0x57   : > { %574 = vmatmul.mubr.bf16.gmra.mrb[4].mxu0 %v1136_v38 }
  0x58   : > { %1047 = vmatpush3.bf16.msra.mxu0 (!%p932_p10), %v1139_v5 }
  0x59   : > { %1048 = vmatprep.subr.bf16.mxu0 (!%p932_p10), %v1140_v6 }
  0x5c   : > { %1049 = vmatpush3.bf16.msra.mxu0 (!%p932_p10), %v1140_v6 }
  0x5d   : > { %1050 = vmatprep.subr.bf16.mxu0 (!%p932_p10), %v1141_v12 }
  0x60   : > { %1051 = vmatpush3.bf16.msra.mxu0 (!%p932_p10), %v1141_v12 }
  0x61   : > { %1052 = vmatprep.subr.bf16.mxu0 (!%p932_p10), %v1142_v13 }
  0x64   : > { %1053 = vmatpush3.bf16.msra.mxu0 (!%p932_p10), %v1142_v13 }
  0x65   : > { %1054 = vmatprep.subr.bf16.mxu0 (!%p932_p10), %v1143_v14 }
  0x68   : > { %1055 = vmatpush3.bf16.msra.mxu0 (!%p932_p10), %v1143_v14 }
  0x69   : > { %1056 = vmatprep.subr.bf16.mxu0 (!%p932_p10), %v1144_v17 }
  0x6c   : > { %1057 = vmatpush3.bf16.msra.mxu0 (!%p932_p10), %v1144_v17 }
 0x122   : > { %v990_v39 = vpop.f32.mrb[0].mxu0 }
 0x123   : > { %v991_v40 = vpop.f32.mrb[1].mxu0 }
 0x124   : > { %v992_v41 = vadd.f32 %v991_v40, %v990_v39  ;;  %v993_v42 = vpop.f32.mrb[2].mxu0  ;;  %v1040_v43 = vpop.f32.mrb[0].mxu1 }
 0x125   : > { %v994_v44 = vpop.f32.mrb[3].mxu0  ;;  %v616_v46 = vpop.f32.mrb[1].mxu1 }
 0x126   : > { %v995_v47 = vadd.f32 %v994_v44, %v993_v42  ;;  %v617_v48 = vadd.f32 %v992_v41, %v616_v46  ;;  %v1041_v49 = vpop.f32.mrb[2].mxu1 }
 0x127   : > { %v619_v51 = vpop.f32.mrb[3].mxu1 }
 0x128   : > { %v631_v52 = vadd.f32 %v617_v48, %v345_v45  ;;  %v620_v53 = vadd.f32 %v995_v47, %v619_v51 }
 0x12a   : > { %635 = vst [vmem:[#allocation2] sm:$0xff] %v631_v52  ;;  %v632_v54 = vadd.f32 %v620_v53, %v346_v50  ;;  %v996_v55 = vpop.f32.mrb[4].mxu0 }
 0x12b   : > { %v997_v56 = vpop.f32.mrb[5].mxu0 }
 0x12c   : > { %636 = vst [vmem:[#allocation2 + $0x8] sm:$0xff] %v632_v54  ;;  %v998_v57 = vadd.f32 %v997_v56, %v996_v55  ;;  %v999_v58 = vpop.f32.mrb[6].mxu0 }
 0x12d   : > { %v1000_v60 = vpop.f32.mrb[7].mxu0 }
 0x12e   : > { %v625_v61 = vadd.f32 %v1040_v43, %v998_v57  ;;  %v1001_v62 = vadd.f32 %v1000_v60, %v999_v58  ;;  %642 = sbr.rel (%p932_p10) target bundleno = 540 (0x21c), region = 70 }
 0x130   : > { %v633_v0 = vadd.f32 %v625_v61, %v347_v59  ;;  %v628_v1 = vadd.f32 %v1041_v49, %v1001_v62 }
 0x131   : > { %v643_v7 = vld [vmem:[#allocation2] sm:$0xff] (!%p932_p10) }
 0x132   : > { %637 = vst [vmem:[#allocation2 + $0x10] sm:$0xff] %v633_v0  ;;  %v634_v2 = vadd.f32 %v628_v1, %v348_v63  ;;  %v647_v9 = vmax.f32 (!%p932_p10), %v643_v7, 0.0 }
 0x133   : > { %v644_v8 = vld [vmem:[#allocation2 + $0x8] sm:$0xff] (!%p932_p10) }
 0x134   : > { %638 = vst [vmem:[#allocation2 + $0x18] sm:$0xff] %v634_v2  ;;  %v648_v10 = vmax.f32 (!%p932_p10), %v644_v8, 0.0 }
 0x136   : > { %v651_v11 = vpack.c.bf16 %v648_v10, %v647_v9 }
 0x138   : > { %1058 = vmatprep.mubr.bf16.mxu0 %v651_v11 }
 0x139   : > { %v645_v15 = vld [vmem:[#allocation2 + $0x10] sm:$0xff] }
 0x13a   : > { %v649_v18 = vmax.f32 %v645_v15, 0.0 }
 0x13b   : > { %v646_v16 = vld [vmem:[#allocation2 + $0x18] sm:$0xff] }
 0x13c   : > { %v650_v19 = vmax.f32 %v646_v16, 0.0 }
 0x13e   : > { %v652_v20 = vpack.c.bf16 %v650_v19, %v649_v18 }
 0x140   : > { %1059 = vmatmul.mubr.bf16.vlgmr.msra.gmra.mrb[0].mxu0 %v652_v20 }
 0x213   : > { %v1060_v25 = vpop.f32.mrb[0].mxu0 }
 0x214   : > { %v759_v28 = vpop.f32.mrb[1].mxu0  ;;  %v768_v30 = vadd.f32 %v1060_v25, %v960_v23 }
 0x215   : > { %v1061_v29 = vpop.f32.mrb[2].mxu0  ;;  %v760_v33 = vadd.f32 %v956_v26, %v759_v28 }
 0x216   : > { %v771_v31 = vadd.f32 %v1061_v29, %v961_v24  ;;  %v762_v32 = vpop.f32.mrb[3].mxu0 }
 0x217   : > { %v763_v34 = vadd.f32 %v957_v27, %v762_v32 }
 0x218   : > { %v970_v35 = vpack.c.bf16 %v771_v31, %v768_v30 }
 0x219   : > { %v965_v36 = vpack.c.bf16 %v763_v34, %v760_v33 }
 0x21a   : > { %973 = vst [vmem:[%s1352_s4 + $0x8] sm:$0xff] %v970_v35  }
 0x21b   : > { %966 = vst [vmem:[%s1352_s4] sm:$0xff] %v965_v36  }
 0x21c PF: > { %s14_s19 = sadd.s32 1, %s1183_s19   ;;  %s1353_s15 = smov %s1171_s16 }
 0x21d   : > { %p11_p11 = scmp.ge.s32.totalorder %s14_s19, 5   ;;  %s1354_s16 = smov %s1246_s23 }
 0x21e   : > { %s1355_s17 = smov %s1179_s18  ;;  %s1356_s18 = smov %s1358_s20 }
 0x21f   :  { %13 = sbr.rel (!%p11_p11) target bundleno = 3 (0x3), region = 115 }

// kernel: vqvae_forward.29
= control target key start
LH: loop header
LB: loop body
LE: loop exit
PB: predicated region body
PF: predicated region fallthrough
CT: control target
= control target key end

     0   :  { %s318_s1 = inlined_call_operand.vmem [shape: bf16[128,128], index: 1, kind: input, shape index: {}]   ;;  %s319_s0 = inlined_call_operand.vmem [shape: bf16[32,128], index: 0, kind: input, shape index: {}]   ;;  %s320_s2 = inlined_call_operand.vmem [shape: f32[1,128], index: 2, kind: input, shape index: {}]   ;;  %s321_s3 = inlined_call_operand.vmem [shape: f32[32,128], index: 3, kind: output, shape index: {}]  }
   0x1   :  { %v243_v0 = vld [vmem:[%s318_s1] sm:$0xff]   ;;  %v244_v1 = vld [vmem:[%s318_s1 + $0x8] sm:$0xff]   ;;  %v245_v2 = vld [vmem:[%s318_s1 + $0x10] sm:$0xff]  }
   0x2   :  { %223 = vmatprep.subr.bf16.mxu0 %v243_v0  ;;  %v246_v3 = vld [vmem:[%s318_s1 + $0x18] sm:$0xff]   ;;  %v251_v4 = vld [vmem:[%s319_s0] sm:$0xff]   ;;  %v248_v6 = vld [vmem:[%s318_s1 + $0x28] sm:$0xff]  }
   0x3   :  { %224 = vmatpush3.bf16.msra.mxu0 %v243_v0  ;;  %239 = vmatprep.mubr.bf16.mxu0 %v251_v4  ;;  %v247_v5 = vld [vmem:[%s318_s1 + $0x20] sm:$0xff]   ;;  %v249_v7 = vld [vmem:[%s318_s1 + $0x30] sm:$0xff]   ;;  %v250_v8 = vld [vmem:[%s318_s1 + $0x38] sm:$0xff]  }
   0x4   :  { %225 = vmatprep.subr.bf16.mxu0 %v244_v1  ;;  %v252_v9 = vld [vmem:[%s319_s0 + $0x8] sm:$0xff]   ;;  %v212_v10 = vld [vmem:[%s320_s2] ss:$0 sm:$0xff] }
   0x7   :  { %226 = vmatpush3.bf16.msra.mxu0 %v244_v1 }
   0x8   :  { %227 = vmatprep.subr.bf16.mxu0 %v245_v2 }
   0xb   :  { %228 = vmatpush3.bf16.msra.mxu0 %v245_v2 }
   0xc   :  { %229 = vmatprep.subr.bf16.mxu0 %v246_v3 }
   0xf   :  { %230 = vmatpush3.bf16.msra.mxu0 %v246_v3 }
  0x10   :  { %231 = vmatprep.subr.bf16.mxu0 %v247_v5 }
  0x13   :  { %232 = vmatpush3.bf16.msra.mxu0 %v247_v5 }
  0x14   :  { %233 = vmatprep.subr.bf16.mxu0 %v248_v6 }
  0x17   :  { %234 = vmatpush3.bf16.msra.mxu0 %v248_v6 }
  0x18   :  { %235 = vmatprep.subr.bf16.mxu0 %v249_v7 }
  0x1b   :  { %236 = vmatpush3.bf16.msra.mxu0 %v249_v7 }
  0x1c   :  { %237 = vmatprep.subr.bf16.mxu0 %v250_v8 }
  0x1f   :  { %238 = vmatpush3.bf16.msra.mxu0 %v250_v8 }
  0x22   :  { %240 = vmatmul.mubr.bf16.vlgmr.msra.gmra.mrb[0].mxu0 %v252_v9 }
  0xf5   :  { %v241_v11 = vpop.f32.mrb[0].mxu0 }
  0xf6   :  { %v180_v12 = vadd.f32 %v241_v11, %v212_v10  ;;  %v141_v13 = vpop.f32.mrb[1].mxu0 }
  0xf7   :  { %v178_v14 = vadd.f32 %v212_v10, %v141_v13  ;;  %v242_v15 = vpop.f32.mrb[2].mxu0 }
  0xf8   :  { %vm184_vm0 = vcmp.ge.f32.partialorder %v180_v12, 0.0  ;;  %v188_v16 = vmul.f32 0.01, %v180_v12  ;;  %v181_v17 = vadd.f32 %v242_v15, %v212_v10  ;;  %v144_v18 = vpop.f32.mrb[3].mxu0 }
  0xf9   :  { %vm182_vm1 = vcmp.ge.f32.partialorder %v178_v14, 0.0  ;;  %v186_v19 = vmul.f32 0.01, %v178_v14  ;;  %v179_v20 = vadd.f32 %v212_v10, %v144_v18 }
  0xfa   :  { %v192_v21 = vsel %vm184_vm0, %v180_v12, %v188_v16  ;;  %vm185_vm2 = vcmp.ge.f32.partialorder %v181_v17, 0.0  ;;  %v189_v22 = vmul.f32 0.01, %v181_v17 }
  0xfb   :  { %196 = vst [vmem:[%s321_s3 + $0x10] sm:$0xff] %v192_v21  ;;  %v190_v23 = vsel %vm182_vm1, %v178_v14, %v186_v19  ;;  %vm183_vm3 = vcmp.ge.f32.partialorder %v179_v20, 0.0  ;;  %v187_v24 = vmul.f32 0.01, %v179_v20 }
  0xfc   :  { %194 = vst [vmem:[%s321_s3] sm:$0xff] %v190_v23  ;;  %v193_v25 = vsel %vm185_vm2, %v181_v17, %v189_v22 }
  0xfd   :  { %197 = vst [vmem:[%s321_s3 + $0x18] sm:$0xff] %v193_v25  ;;  %v191_v26 = vsel %vm183_vm3, %v179_v20, %v187_v24 }
  0xfe   :  { %195 = vst [vmem:[%s321_s3 + $0x8] sm:$0xff] %v191_v26 }

// kernel: vqvae_forward.28
= control target key start
LH: loop header
LB: loop body
LE: loop exit
PB: predicated region body
PF: predicated region fallthrough
CT: control target
= control target key end

     0   :  { %s1223_s15 = smov 0   ;;  %s1225_s16 = smov 0   ;;  %s1360_s0 = inlined_call_operand.vmem [shape: bf16[32,1152], index: 0, kind: input, shape index: {}]   ;;  %s1361_s1 = inlined_call_operand.vmem [shape: bf16[1152,128], index: 1, kind: input, shape index: {}]   ;;  %s1362_s2 = inlined_call_operand.vmem [shape: bf16[128,128], index: 2, kind: input, shape index: {}]   ;;  %s1363_s3 = inlined_call_operand.vmem [shape: bf16[32,128], index: 3, kind: input, shape index: {}]   ;;  %s1364_s4 = inlined_call_operand.vmem [shape: bf16[32,128], index: 4, kind: output, shape index: {}]  }
   0x1   :  { %s1227_s17 = smov 0   ;;  %s1229_s18 = smov 0  }
   0x2   :  { %s1231_s19 = smov 0  }
   0x3 LB: > { %s23_s20 = sadd.s32 1, %s1191_s18  ;;  %p42_p1 = scmp.ne.s32.totalorder %s1183_s16, %s1179_s15  ;;  %s1195_s19 = sphi %s1231_s19, %s14_s19   ;;  %s1191_s18 = sphi %s1229_s18, %s1368_s18   ;;  %s1187_s17 = sphi %s1227_s17, %s1367_s17   ;;  %s1183_s16 = sphi %s1225_s16, %s1366_s16   ;;  %s1179_s15 = sphi %s1223_s15, %s1365_s15  }
   0x4   : > { %p24_p0 = scmp.ge.s32.totalorder %s23_s20, 3  ;;  %p43_p2 = scmp.eq.s32.totalorder %s1195_s19, 0 }
   0x5   : > { %s35_s22 = sadd.s32 1, %s1183_s16  ;;  %p901_p5 = scmp.ge.s32.totalorder %s1195_s19, 3 }
   0x6   : > { %s1370_s20 = smov (%p24_p0, %s23_s20), 0  ;;  %p44_p3 = por %p43_p2, %p42_p1 }
   0x7   : > { %s31_s21 = ssub.s32 %s1191_s18, %s1370_s20  ;;  %177 = sbr.rel (%p901_p5) target bundleno = 23 (0x17), region = 28 }
   0x8   : > { %p33_p4 = scmp.eq.s32.totalorder %s31_s21, 0 }
   0xa   : > { %s1258_s23 = scalar_select %p33_p4, %s1183_s16, %s35_s22  }
   0xe   : > { %180 = sbr.rel (!%p44_p3) target bundleno = 23 (0x17), region = 32  ;;  %s182_s24 = sand.u32 (%p44_p3), 1, %s1183_s16  }
   0xf   : > { %s961_s25 = smul.u32 (%p44_p3), 12, %s1191_s18 }
  0x10   : > { %s1074_s26 = smul.u32 (%p44_p3), 48, %s182_s24 }
  0x11   : > { %s190_s29 = scalar_lea.vmem (%p44_p3), %s1360_s0, %s961_s25 }
  0x12   : > { %v205_v0 = vld [vmem:[%s190_s29] sm:$0xff] (%p44_p3)  ;;  %v209_v2 = vld [vmem:[%s190_s29 + $0x48] sm:$0xff] (%p44_p3)  ;;  %s184_s30 = scalar_lea.vmem (%p44_p3), [#allocation3], %s1074_s26  ;;  %v907_v6 = vld [vmem:[%s190_s29 + $0x50] sm:$0xf] (%p44_p3) }
  0x13   : > { %v207_v1 = vld [vmem:[%s190_s29 + $0x24] sm:$0xff] (%p44_p3)  ;;  %206 = vst [vmem:[%s184_s30] sm:$0xff] (%p44_p3), %v205_v0  ;;  %210 = vst [vmem:[%s184_s30 + $0x18] sm:$0xff] (%p44_p3), %v209_v2  ;;  %v211_v3 = vld [vmem:[%s190_s29 + $0x6c] sm:$0xff] (%p44_p3) }
  0x14   : > { %208 = vst [vmem:[%s184_s30 + $0xc] sm:$0xff] (%p44_p3), %v207_v1  ;;  %v903_v4 = vld [vmem:[%s190_s29 + $0x8] sm:$0xf] (%p44_p3)  ;;  %v905_v5 = vld [vmem:[%s190_s29 + $0x2c] sm:$0xf] (%p44_p3)  ;;  %212 = vst [vmem:[%s184_s30 + $0x24] sm:$0xff] (%p44_p3), %v211_v3 }
  0x15   : > { %904 = vst [vmem:[%s184_s30 + $0x8] sm:$0xf] %v903_v4  ;;  %906 = vst [vmem:[%s184_s30 + $0x14] sm:$0xf] %v905_v5  ;;  %v909_v7 = vld [vmem:[%s190_s29 + $0x74] sm:$0xf] }
  0x16   : > { %908 = vst [vmem:[%s184_s30 + $0x20] sm:$0xf] %v907_v6  ;;  %910 = vst [vmem:[%s184_s30 + $0x2c] sm:$0xf] %v909_v7 }
  0x17 PF: > { %p911_p6 = scmp.ge.s32.totalorder %s1195_s19, 1  ;;  %p232_p7 = scmp.lt.s32.totalorder %s1195_s19, 4 }
  0x19   : > { %p233_p8 = pnand %p911_p6, %p232_p7 }
  0x1a   : > { %s239_s5 = sand.u32 (!%p233_p8), 1, %s1179_s15   ;;  %p912_p9 = scmp.ne.s32.totalorder (!%p233_p8), %s1187_s17, 0 }
  0x1b   : > { %236 = sbr.rel (%p233_p8) target bundleno = 543 (0x21f), region = 58 }
  0x1c   : > { %s1075_s6 = smul.u32 (!%p233_p8), 48, %s239_s5 }
  0x1e   : > { %s1269_s7 = scalar_lea.vmem (!%p233_p8), [#allocation3], %s1075_s6 }
  0x22   : > { %287 = sbr.rel (%p912_p9) target bundleno = 41 (0x29), region = 66  ;;  %v1197_v8 = vmov (!%p912_p9), 0.0  }
  0x23   : > { %288 = vst [vmem:[#allocation2] sm:$0xff] (!%p912_p9), %v1197_v8  ;;  %289 = vst [vmem:[#allocation2 + $0x8] sm:$0xff] (!%p912_p9), %v1197_v8 }
  0x24   : > { %290 = vst [vmem:[#allocation2 + $0x10] sm:$0xff] (!%p912_p9), %v1197_v8  ;;  %291 = vst [vmem:[#allocation2 + $0x18] sm:$0xff] (!%p912_p9), %v1197_v8 }
  0x29 PF: > { %s292_s8 = smul.u32 384, %s1187_s17  ;;  %v1143_v9 = vld [vmem:[%s1269_s7 + $0x4] ss:$12 sps:$4 sm:$0xff]   ;;  %v1144_v10 = vld [vmem:[%s1269_s7 + $0x8] ss:$12 sps:$4 sm:$0xff]   ;;  %p944_p10 = scmp.ne.s32.totalorder %s1187_s17, 2 }
  0x2a   : > { %565 = vmatprep.mubr.bf16.mxu0 %v1143_v9  ;;  %1050 = vmatprep.mubr.bf16.mxu1 %v1144_v10  ;;  %v1141_v35 = vld [vmem:[%s1269_s7] ss:$12 sps:$4 sm:$0xff]   ;;  %v1146_v36 = vld [vmem:[%s1269_s7 + $0x1c] ss:$12 sps:$4 sm:$0xff]   ;;  %v1148_v38 = vld [vmem:[%s1269_s7 + $0x18] ss:$12 sps:$4 sm:$0xff]  }
  0x2b   : > { %s293_s9 = sshra.s32 %s292_s8, 3  ;;  %v1145_v37 = vld [vmem:[%s1269_s7 + $0x20] ss:$12 sps:$4 sm:$0xff]  }
  0x2c   : > { %s913_s10 = sshll.u32 %s293_s9, 2  ;;  %v345_v45 = vld [vmem:[#allocation2] sm:$0xff]  ;;  %v346_v50 = vld [vmem:[#allocation2 + $0x8] sm:$0xff]  ;;  %v347_v59 = vld [vmem:[#allocation2 + $0x10] sm:$0xff] }
  0x2d   : > { %s1278_s13 = scalar_lea.vmem %s1361_s1, %s913_s10  ;;  %v348_v63 = vld [vmem:[#allocation2 + $0x18] sm:$0xff]  ;;  %v1149_v3 = vld [vmem:[%s1362_s2] sm:$0xff] (!%p944_p10)   ;;  %v1150_v4 = vld [vmem:[%s1362_s2 + $0x8] sm:$0xff] (!%p944_p10)  }
  0x2e   : > { %v1117_v11 = vld [vmem:[%s1278_s13 + $0x40] sm:$0xff]   ;;  %v1120_v14 = vld [vmem:[%s1278_s13 + $0x48] sm:$0xff]   ;;  %v1123_v17 = vld [vmem:[%s1278_s13 + $0x50] sm:$0xff]  }
  0x2f   : > { %v1118_v12 = vld [vmem:[%s1278_s13] sm:$0xff]   ;;  %986 = vmatprep.subr.bf16.mxu0 %v1117_v11  ;;  %v1121_v15 = vld [vmem:[%s1278_s13 + $0x8] sm:$0xff]   ;;  %v1124_v18 = vld [vmem:[%s1278_s13 + $0x10] sm:$0xff]  }
  0x30   : > { %v1119_v13 = vld [vmem:[%s1278_s13 + $0x80] sm:$0xff]   ;;  %987 = vmatpush3.bf16.msra.mxu0 %v1118_v12  ;;  %v1122_v16 = vld [vmem:[%s1278_s13 + $0x88] sm:$0xff]   ;;  %v1125_v19 = vld [vmem:[%s1278_s13 + $0x90] sm:$0xff]  }
  0x31   : > { %1034 = vmatprep.subr.bf16.mxu1 %v1119_v13  ;;  %988 = vmatprep.subr.bf16.mxu0 %v1120_v14  ;;  %v1126_v20 = vld [vmem:[%s1278_s13 + $0x58] sm:$0xff]   ;;  %v1129_v23 = vld [vmem:[%s1278_s13 + $0x60] sm:$0xff]   ;;  %v1132_v26 = vld [vmem:[%s1278_s13 + $0x68] sm:$0xff]  }
  0x32   : > { %1035 = vmatpush3.bf16.msra.mxu1 %v1119_v13  ;;  %v1127_v21 = vld [vmem:[%s1278_s13 + $0x18] sm:$0xff]   ;;  %v1131_v24 = vld [vmem:[%s1278_s13 + $0xa0] sm:$0xff]   ;;  %v1134_v27 = vld [vmem:[%s1278_s13 + $0xa8] sm:$0xff]  }
  0x33   : > { %1036 = vmatprep.subr.bf16.mxu1 %v1122_v16  ;;  %v1128_v22 = vld [vmem:[%s1278_s13 + $0x98] sm:$0xff]   ;;  %v1130_v25 = vld [vmem:[%s1278_s13 + $0x20] sm:$0xff]   ;;  %v1133_v28 = vld [vmem:[%s1278_s13 + $0x28] sm:$0xff]  }
  0x34   : > { %989 = vmatpush3.bf16.msra.mxu0 %v1121_v15  ;;  %v1135_v29 = vld [vmem:[%s1278_s13 + $0x70] sm:$0xff]   ;;  %v1138_v32 = vld [vmem:[%s1278_s13 + $0x78] sm:$0xff]   ;;  %v1153_v12 = vld [vmem:[%s1362_s2 + $0x20] sm:$0xff] (!%p944_p10)  }
  0x35   : > { %990 = vmatprep.subr.bf16.mxu0 %v1123_v17  ;;  %v1137_v30 = vld [vmem:[%s1278_s13 + $0xb0] sm:$0xff]   ;;  %v1140_v33 = vld [vmem:[%s1278_s13 + $0xb8] sm:$0xff]   ;;  %v1154_v13 = vld [vmem:[%s1362_s2 + $0x28] sm:$0xff] (!%p944_p10)  }
  0x36   : > { %1037 = vmatpush3.bf16.msra.mxu1 %v1122_v16  ;;  %v1136_v31 = vld [vmem:[%s1278_s13 + $0x30] sm:$0xff]   ;;  %v1139_v34 = vld [vmem:[%s1278_s13 + $0x38] sm:$0xff]  }
  0x37   : > { %1038 = vmatprep.subr.bf16.mxu1 %v1125_v19  ;;  %v1151_v5 = vld [vmem:[%s1362_s2 + $0x10] sm:$0xff] (!%p944_p10)   ;;  %v1152_v6 = vld [vmem:[%s1362_s2 + $0x18] sm:$0xff] (!%p944_p10)  }
  0x38   : > { %991 = vmatpush3.bf16.msra.mxu0 %v1124_v18  ;;  %v1155_v14 = vld [vmem:[%s1362_s2 + $0x30] sm:$0xff] (!%p944_p10)   ;;  %v1156_v17 = vld [vmem:[%s1362_s2 + $0x38] sm:$0xff] (!%p944_p10)  }
  0x39   : > { %992 = vmatprep.subr.bf16.mxu0 %v1126_v20 }
  0x3a   : > { %1039 = vmatpush3.bf16.msra.mxu1 %v1125_v19 }
  0x3b   : > { %1040 = vmatprep.subr.bf16.mxu1 %v1128_v22 }
  0x3c   : > { %993 = vmatpush3.bf16.msra.mxu0 %v1127_v21  ;;  %v984_v21 = vld [vmem:[%s1363_s3 + $0x8] sm:$0xff] (!%p944_p10)  }
  0x3d   : > { %994 = vmatprep.subr.bf16.mxu0 %v1129_v23  ;;  %v972_v23 = vunpack.c.l.bf16 (!%p944_p10), %v984_v21 }
  0x3e   : > { %1041 = vmatpush3.bf16.msra.mxu1 %v1128_v22  ;;  %v967_v22 = vld [vmem:[%s1363_s3] sm:$0xff] (!%p944_p10)  }
  0x3f   : > { %1042 = vmatprep.subr.bf16.mxu1 %v1131_v24 }
  0x40   : > { %995 = vmatpush3.bf16.msra.mxu0 %v1130_v25  ;;  %v973_v25 = vunpack.c.h.bf16 (!%p944_p10), %v984_v21 }
  0x41   : > { %996 = vmatprep.subr.bf16.mxu0 %v1132_v26 }
  0x42   : > { %1043 = vmatpush3.bf16.msra.mxu1 %v1131_v24  ;;  %v968_v24 = vunpack.c.l.bf16 (!%p944_p10), %v967_v22 }
  0x43   : > { %1044 = vmatprep.subr.bf16.mxu1 %v1134_v27 }
  0x44   : > { %997 = vmatpush3.bf16.msra.mxu0 %v1133_v28 }
  0x45   : > { %998 = vmatprep.subr.bf16.mxu0 %v1135_v29 }
  0x46   : > { %1045 = vmatpush3.bf16.msra.mxu1 %v1134_v27  ;;  %v969_v27 = vunpack.c.h.bf16 (!%p944_p10), %v967_v22 }
  0x47   : > { %1046 = vmatprep.subr.bf16.mxu1 %v1137_v30 }
  0x48   : > { %999 = vmatpush3.bf16.msra.mxu0 %v1136_v31 }
  0x49   : > { %1000 = vmatprep.subr.bf16.mxu0 %v1138_v32 }
  0x4a   : > { %1047 = vmatpush3.bf16.msra.mxu1 %v1137_v30 }
  0x4b   : > { %1048 = vmatprep.subr.bf16.mxu1 %v1140_v33 }
  0x4c   : > { %1001 = vmatpush3.bf16.msra.mxu0 %v1139_v34 }
  0x4d   : > { %1054 = vmatprep.subr.bf16.mxu0 (!%p944_p10), %v1149_v3 }
  0x4e   : > { %1049 = vmatpush3.bf16.msra.mxu1 %v1140_v33 }
  0x4f   : > { %566 = vmatmul.mubr.bf16.vlgmr.msra.gmra.mrb[0].mxu0 %v1141_v35 }
  0x50   : > { %573 = vmatprep.mubr.bf16.mxu0 %v1146_v36  ;;  %1055 = vmatpush3.bf16.msra.mxu0 (!%p944_p10), %v1149_v3 }
  0x51   : > { %1051 = vmatmul.mubr.bf16.vlgmr.msra.gmra.mrb[0].mxu1 %v1145_v37  ;;  %1056 = vmatprep.subr.bf16.mxu0 (!%p944_p10), %v1150_v4 }
  0x54   : > { %1057 = vmatpush3.bf16.msra.mxu0 (!%p944_p10), %v1150_v4 }
  0x55   : > { %1058 = vmatprep.subr.bf16.mxu0 (!%p944_p10), %v1151_v5 }
  0x57   : > { %574 = vmatmul.mubr.bf16.gmra.mrb[4].mxu0 %v1148_v38 }
  0x58   : > { %1059 = vmatpush3.bf16.msra.mxu0 (!%p944_p10), %v1151_v5 }
  0x59   : > { %1060 = vmatprep.subr.bf16.mxu0 (!%p944_p10), %v1152_v6 }
  0x5c   : > { %1061 = vmatpush3.bf16.msra.mxu0 (!%p944_p10), %v1152_v6 }
  0x5d   : > { %1062 = vmatprep.subr.bf16.mxu0 (!%p944_p10), %v1153_v12 }
  0x60   : > { %1063 = vmatpush3.bf16.msra.mxu0 (!%p944_p10), %v1153_v12 }
  0x61   : > { %1064 = vmatprep.subr.bf16.mxu0 (!%p944_p10), %v1154_v13 }
  0x64   : > { %1065 = vmatpush3.bf16.msra.mxu0 (!%p944_p10), %v1154_v13 }
  0x65   : > { %1066 = vmatprep.subr.bf16.mxu0 (!%p944_p10), %v1155_v14 }
  0x68   : > { %1067 = vmatpush3.bf16.msra.mxu0 (!%p944_p10), %v1155_v14 }
  0x69   : > { %1068 = vmatprep.subr.bf16.mxu0 (!%p944_p10), %v1156_v17 }
  0x6c   : > { %1069 = vmatpush3.bf16.msra.mxu0 (!%p944_p10), %v1156_v17 }
 0x122   : > { %v1002_v39 = vpop.f32.mrb[0].mxu0 }
 0x123   : > { %v1003_v40 = vpop.f32.mrb[1].mxu0 }
 0x124   : > { %v1004_v41 = vadd.f32 %v1003_v40, %v1002_v39  ;;  %v1005_v42 = vpop.f32.mrb[2].mxu0  ;;  %v1052_v43 = vpop.f32.mrb[0].mxu1 }
 0x125   : > { %v1006_v44 = vpop.f32.mrb[3].mxu0  ;;  %v616_v46 = vpop.f32.mrb[1].mxu1 }
 0x126   : > { %v1007_v47 = vadd.f32 %v1006_v44, %v1005_v42  ;;  %v617_v48 = vadd.f32 %v1004_v41, %v616_v46  ;;  %v1053_v49 = vpop.f32.mrb[2].mxu1 }
 0x127   : > { %v619_v51 = vpop.f32.mrb[3].mxu1 }
 0x128   : > { %v631_v52 = vadd.f32 %v617_v48, %v345_v45  ;;  %v620_v53 = vadd.f32 %v1007_v47, %v619_v51 }
 0x12a   : > { %635 = vst [vmem:[#allocation2] sm:$0xff] %v631_v52  ;;  %v632_v54 = vadd.f32 %v620_v53, %v346_v50  ;;  %v1008_v55 = vpop.f32.mrb[4].mxu0 }
 0x12b   : > { %v1009_v56 = vpop.f32.mrb[5].mxu0 }
 0x12c   : > { %636 = vst [vmem:[#allocation2 + $0x8] sm:$0xff] %v632_v54  ;;  %v1010_v57 = vadd.f32 %v1009_v56, %v1008_v55  ;;  %v1011_v58 = vpop.f32.mrb[6].mxu0 }
 0x12d   : > { %v1012_v60 = vpop.f32.mrb[7].mxu0 }
 0x12e   : > { %v625_v61 = vadd.f32 %v1052_v43, %v1010_v57  ;;  %v1013_v62 = vadd.f32 %v1012_v60, %v1011_v58  ;;  %642 = sbr.rel (%p944_p10) target bundleno = 543 (0x21f), region = 70 }
 0x130   : > { %v633_v0 = vadd.f32 %v625_v61, %v347_v59  ;;  %v628_v1 = vadd.f32 %v1053_v49, %v1013_v62 }
 0x131   : > { %v643_v7 = vld [vmem:[#allocation2] sm:$0xff] (!%p944_p10) }
 0x132   : > { %637 = vst [vmem:[#allocation2 + $0x10] sm:$0xff] %v633_v0  ;;  %v634_v2 = vadd.f32 %v628_v1, %v348_v63  ;;  %v647_v9 = vmax.f32 (!%p944_p10), %v643_v7, 0.0 }
 0x133   : > { %v644_v8 = vld [vmem:[#allocation2 + $0x8] sm:$0xff] (!%p944_p10) }
 0x134   : > { %638 = vst [vmem:[#allocation2 + $0x18] sm:$0xff] %v634_v2  ;;  %v648_v10 = vmax.f32 (!%p944_p10), %v644_v8, 0.0 }
 0x136   : > { %v651_v11 = vpack.c.bf16 %v648_v10, %v647_v9 }
 0x138   : > { %1070 = vmatprep.mubr.bf16.mxu0 %v651_v11 }
 0x139   : > { %v645_v15 = vld [vmem:[#allocation2 + $0x10] sm:$0xff] }
 0x13a   : > { %v649_v18 = vmax.f32 %v645_v15, 0.0 }
 0x13b   : > { %v646_v16 = vld [vmem:[#allocation2 + $0x18] sm:$0xff] }
 0x13c   : > { %v650_v19 = vmax.f32 %v646_v16, 0.0 }
 0x13e   : > { %v652_v20 = vpack.c.bf16 %v650_v19, %v649_v18 }
 0x140   : > { %1071 = vmatmul.mubr.bf16.vlgmr.msra.gmra.mrb[0].mxu0 %v652_v20 }
 0x213   : > { %v1072_v26 = vpop.f32.mrb[0].mxu0 }
 0x214   : > { %v768_v28 = vadd.f32 %v1072_v26, %v972_v23  ;;  %v759_v29 = vpop.f32.mrb[1].mxu0 }
 0x215   : > { %v760_v30 = vadd.f32 %v968_v24, %v759_v29  ;;  %v1073_v31 = vpop.f32.mrb[2].mxu0 }
 0x216   : > { %v780_v32 = vmul.f32 0.01, %v768_v28  ;;  %v771_v33 = vadd.f32 %v1073_v31, %v973_v25  ;;  %v762_v34 = vpop.f32.mrb[3].mxu0  ;;  %vm776_vm0 = vcmp.ge.f32.partialorder %v768_v28, 0.0 }
 0x217   : > { %v778_v35 = vmul.f32 0.01, %v760_v30  ;;  %v763_v36 = vadd.f32 %v969_v27, %v762_v34  ;;  %vm774_vm1 = vcmp.ge.f32.partialorder %v760_v30, 0.0 }
 0x218   : > { %vm777_vm2 = vcmp.ge.f32.partialorder %v771_v33, 0.0  ;;  %v781_v37 = vmul.f32 0.01, %v771_v33  ;;  %v784_v39 = vsel %vm776_vm0, %v768_v28, %v780_v32 }
 0x219   : > { %vm775_vm3 = vcmp.ge.f32.partialorder %v763_v36, 0.0  ;;  %v779_v38 = vmul.f32 0.01, %v763_v36  ;;  %v782_v41 = vsel %vm774_vm1, %v760_v30, %v778_v35 }
 0x21a   : > { %v785_v40 = vsel %vm777_vm2, %v771_v33, %v781_v37 }
 0x21b   : > { %v982_v42 = vpack.c.bf16 %v785_v40, %v784_v39  ;;  %v783_v43 = vsel %vm775_vm3, %v763_v36, %v779_v38 }
 0x21c   : > { %v977_v44 = vpack.c.bf16 %v783_v43, %v782_v41 }
 0x21d   : > { %985 = vst [vmem:[%s1364_s4 + $0x8] sm:$0xff] %v982_v42  }
 0x21e   : > { %978 = vst [vmem:[%s1364_s4] sm:$0xff] %v977_v44  }
 0x21f PF: > { %s14_s19 = sadd.s32 1, %s1195_s19   ;;  %s1365_s15 = smov %s1183_s16 }
 0x220   : > { %p11_p11 = scmp.ge.s32.totalorder %s14_s19, 5   ;;  %s1366_s16 = smov %s1258_s23 }
 0x221   : > { %s1367_s17 = smov %s1191_s18  ;;  %s1368_s18 = smov %s1370_s20 }
 0x222   :  { %13 = sbr.rel (!%p11_p11) target bundleno = 3 (0x3), region = 115 }

// kernel: vqvae_forward.30
= control target key start
LH: loop header
LB: loop body
LE: loop exit
PB: predicated region body
PF: predicated region fallthrough
CT: control target
= control target key end

     0   :  { %s860_s0 = inlined_call_operand.vmem [shape: f32[32,128], index: 0, kind: input, shape index: {}]   ;;  %s861_s1 = inlined_call_operand.vmem [shape: f32[128,128], index: 1, kind: input, shape index: {}]   ;;  %s862_s2 = inlined_call_operand.vmem [shape: f32[128,128], index: 2, kind: input, shape index: {}]   ;;  %s863_s3 = inlined_call_operand.vmem [shape: f32[1,128], index: 3, kind: input, shape index: {}]   ;;  %s864_s4 = inlined_call_operand.vmem [shape: f32[32,128], index: 4, kind: output, shape index: {0}]   ;;  %s865_s5 = inlined_call_operand.hbm [shape: f32[1,1], index: 5, kind: output, shape index: {1}]  }
   0x1   :  { %v36_v0 = vld [vmem:[%s861_s1] sm:$0xff]  ;;  %v37_v1 = vld [vmem:[%s861_s1 + $0x8] sm:$0xff]  ;;  %v38_v2 = vld [vmem:[%s861_s1 + $0x10] sm:$0xff] }
   0x2   :  { %v554_v3 = vpack.c.bf16 %v37_v1, %v36_v0  ;;  %v39_v4 = vld [vmem:[%s861_s1 + $0x18] sm:$0xff]  ;;  %v40_v6 = vld [vmem:[%s861_s1 + $0x20] sm:$0xff]  ;;  %v41_v7 = vld [vmem:[%s861_s1 + $0x28] sm:$0xff] }
   0x3   :  { %v558_v5 = vpack.c.bf16 %v39_v4, %v38_v2  ;;  %v562_v8 = vpack.c.bf16 %v41_v7, %v40_v6  ;;  %v701_v9 = vld [vmem:[%s860_s0] sm:$0xff]  ;;  %v42_v10 = vld [vmem:[%s861_s1 + $0x30] sm:$0xff]  ;;  %v43_v11 = vld [vmem:[%s861_s1 + $0x38] sm:$0xff] }
   0x4   :  { %555 = vmatprep.subr.bf16.mxu0 %v554_v3  ;;  %510 = vmatprep.mubr.f32.mxu0 %v701_v9  ;;  %v713_v12 = vld [vmem:[%s860_s0 + $0x10] sm:$0xff]  ;;  %v24_v13 = vmul.f32 %v701_v9, %v701_v9  ;;  %v720_v14 = vld [vmem:[%s860_s0 + $0x8] sm:$0xff] }
   0x5   :  { %557 = vmatpush3.bf16.msra.mxu0 %v554_v3  ;;  %v26_v15 = vmul.f32 %v713_v12, %v713_v12 }
   0x6   :  { %559 = vmatprep.subr.bf16.mxu0 %v558_v5 }
   0x7   :  { %11 = vsyncpa [#allocation3], 0  ;;  %v727_v16 = vld [vmem:[%s860_s0 + $0x18] sm:$0xff]  ;;  %28 = vadd.xlane.f32.xlu0 %v24_v13  ;;  %v25_v17 = vmul.f32 %v720_v14, %v720_v14  ;;  %v566_v18 = vpack.c.bf16 %v43_v11, %v42_v10  ;;  %32 = vadd.xlane.f32.xlu1 %v26_v15  ;;  %v44_v20 = vld [vmem:[%s861_s1 + $0x40] sm:$0xff]  ;;  %v156_v34 = vlaneseq  ;;  %vm403_vm13 = vcmask 0   ;;  %s649_s18 = smov [#allocation2]  }
   0x8   :  { %v27_v19 = vmul.f32 %v727_v16, %v727_v16  ;;  %v45_v21 = vld [vmem:[%s861_s1 + $0x48] sm:$0xff]  ;;  %v46_v23 = vld [vmem:[%s861_s1 + $0x50] sm:$0xff]  ;;  %v47_v24 = vld [vmem:[%s861_s1 + $0x58] sm:$0xff]  ;;  %s419_s19 = sshll.u32 %s649_s18, 4  ;;  %s420_s19 = int_to_ptr.vmem [resolvable:$true] %s419_s19 }
   0x9   :  { %561 = vmatpush3.bf16.msra.mxu0 %v558_v5  ;;  %v570_v22 = vpack.c.bf16 %v45_v21, %v44_v20  ;;  %v574_v25 = vpack.c.bf16 %v47_v24, %v46_v23  ;;  %v48_v26 = vld [vmem:[%s861_s1 + $0x60] sm:$0xff]  ;;  %v49_v27 = vld [vmem:[%s861_s1 + $0x68] sm:$0xff]  ;;  %v50_v29 = vld [vmem:[%s861_s1 + $0x70] sm:$0xff]  ;;  %v763_v37 = vand.u32 127, %v156_v34  ;;  %s623_s20 = scalar_lea.vmem %s420_s19, 16  ;;  %s627_s0 = scalar_lea.vmem %s420_s19, 32 }
   0xa   :  { %563 = vmatprep.subr.bf16.mxu0 %v562_v8  ;;  %v578_v28 = vpack.c.bf16 %v49_v27, %v48_v26  ;;  %v51_v30 = vld [vmem:[%s861_s1 + $0x78] sm:$0xff]  ;;  %v429_v36 = vld [vmem:[%s863_s3] ss:$0 sm:$0xff]  ;;  %v248_v15 = vld [vmem:[%s862_s2 + $0x8] sm:$0xff]  ;;  %p624_p0 = scmp.ne.s32.totalorder %s420_s19, %s623_s20  ;;  %p628_p1 = scmp.lt.s32.totalorder %s420_s19, %s420_s19 }
   0xb   :  { %30 = vadd.xlane.f32.xlu0 %v25_v17  ;;  %34 = vadd.xlane.f32.xlu1 %v27_v19  ;;  %v582_v31 = vpack.c.bf16 %v51_v30, %v50_v29  ;;  %vm158_vm0 = vcmp.lt.s32.totalorder %v763_v37, 16  ;;  %v247_v13 = vld [vmem:[%s862_s2] sm:$0xff]  ;;  %v249_v17 = vld [vmem:[%s862_s2 + $0x10] sm:$0xff]  ;;  %v250_v19 = vld [vmem:[%s862_s2 + $0x18] sm:$0xff]  ;;  %p629_p2 = scmp.lt.s32.totalorder %s627_s0, %s623_s20 }
   0xc   :  { %v590_v20 = vpack.c.bf16 %v250_v19, %v249_v17  ;;  %v251_v21 = vld [vmem:[%s862_s2 + $0x20] sm:$0xff]  ;;  %v253_v24 = vld [vmem:[%s862_s2 + $0x30] sm:$0xff]  ;;  %v260_v34 = vld [vmem:[%s862_s2 + $0x68] sm:$0xff] }
   0xd   :  { %565 = vmatpush3.bf16.msra.mxu0 %v562_v8  ;;  %v255_v27 = vld [vmem:[%s862_s2 + $0x40] sm:$0xff]  ;;  %v257_v30 = vld [vmem:[%s862_s2 + $0x50] sm:$0xff]  ;;  %p630_p3 = por %p629_p2, %p628_p1 }
   0xe   :  { %567 = vmatprep.subr.bf16.mxu0 %v566_v18 }
   0xf   :  { %p631_p4 = pnand %p630_p3, %p624_p0 }
  0x11   :  { %569 = vmatpush3.bf16.msra.mxu0 %v566_v18  ;;  %v586_v18 = vpack.c.bf16 %v248_v15, %v247_v13  ;;  %v647_v13 = vmov 1.0  }
  0x12   :  { %571 = vmatprep.subr.bf16.mxu0 %v570_v22 }
  0x13   :  { %587 = vmatprep.subr.bf16.mxu1 %v586_v18 }
  0x14   :  { %589 = vmatpush3.bf16.msra.mxu1 %v586_v18 }
  0x15   :  { %573 = vmatpush3.bf16.msra.mxu0 %v570_v22  ;;  %v252_v22 = vld [vmem:[%s862_s2 + $0x28] sm:$0xff]  ;;  %591 = vmatprep.subr.bf16.mxu1 %v590_v20 }
  0x16   :  { %575 = vmatprep.subr.bf16.mxu0 %v574_v25  ;;  %v594_v23 = vpack.c.bf16 %v252_v22, %v251_v21 }
  0x18   :  { %593 = vmatpush3.bf16.msra.mxu1 %v590_v20 }
  0x19   :  { %577 = vmatpush3.bf16.msra.mxu0 %v574_v25  ;;  %v254_v25 = vld [vmem:[%s862_s2 + $0x38] sm:$0xff]  ;;  %595 = vmatprep.subr.bf16.mxu1 %v594_v23 }
  0x1a   :  { %579 = vmatprep.subr.bf16.mxu0 %v578_v28  ;;  %v598_v26 = vpack.c.bf16 %v254_v25, %v253_v24 }
  0x1c   :  { %597 = vmatpush3.bf16.msra.mxu1 %v594_v23 }
  0x1d   :  { %581 = vmatpush3.bf16.msra.mxu0 %v578_v28  ;;  %v256_v28 = vld [vmem:[%s862_s2 + $0x48] sm:$0xff]  ;;  %599 = vmatprep.subr.bf16.mxu1 %v598_v26 }
  0x1e   :  { %583 = vmatprep.subr.bf16.mxu0 %v582_v31  ;;  %v602_v29 = vpack.c.bf16 %v256_v28, %v255_v27 }
  0x20   :  { %601 = vmatpush3.bf16.msra.mxu1 %v598_v26 }
  0x21   :  { %585 = vmatpush3.bf16.msra.mxu0 %v582_v31  ;;  %v258_v31 = vld [vmem:[%s862_s2 + $0x58] sm:$0xff]  ;;  %603 = vmatprep.subr.bf16.mxu1 %v602_v29 }
  0x24   :  { %511 = vmatmul.mubr.f32.vlgmr.msra.gmra.mrb[0].mxu0 %v720_v14  ;;  %605 = vmatpush3.bf16.msra.mxu1 %v602_v29  ;;  %v648_v29 = vmov 0.0  }
  0x25   :  { %513 = vmatprep.mubr.f32.mxu0 %v713_v12  ;;  %404 = vst.msk [vmem:[#allocation2] sm:$0x1] %vm403_vm13, %v648_v29 }
  0x28   :  { %514 = vmatmul.mubr.f32.gmra.mrb[2].mxu0 %v727_v16 }
  0x94   :  { %v29_v32 = vpop.xlane.xlu0 %28  ;;  %v33_v33 = vpop.xlane.xlu1 %32 }
  0x95   :  { %v144_v43 = vadd.f32 %v429_v36, %v29_v32  ;;  %v146_v52 = vadd.f32 %v429_v36, %v33_v33  ;;  %v606_v32 = vpack.c.bf16 %v258_v31, %v257_v30  ;;  %v259_v33 = vld [vmem:[%s862_s2 + $0x60] sm:$0xff] }
  0x97   :  { %607 = vmatprep.subr.bf16.mxu1 %v606_v32 }
  0x98   :  { %v31_v35 = vpop.xlane.xlu0 %30  ;;  %v35_v40 = vpop.xlane.xlu1 %34  ;;  %609 = vmatpush3.bf16.msra.mxu1 %v606_v32 }
  0x99   :  { %v145_v38 = vadd.f32 %v429_v36, %v31_v35  ;;  %v147_v45 = vadd.f32 %v429_v36, %v35_v40  ;;  %v610_v35 = vpack.c.bf16 %v260_v34, %v259_v33 }
  0x9b   :  { %611 = vmatprep.subr.bf16.mxu1 %v610_v35 }
  0x9c   :  { %613 = vmatpush3.bf16.msra.mxu1 %v610_v35 }
  0xf7   :  { %v512_v39 = vpop.f32.mrb[0].mxu0 }
  0xf8   :  { %v149_v41 = vmul.f32 2.0, %v512_v39  ;;  %v118_v42 = vpop.f32.mrb[1].mxu0 }
  0xf9   :  { %v148_v44 = vmul.f32 2.0, %v118_v42 }
  0xfa   :  { %v153_v46 = vsub.f32 %v145_v38, %v149_v41 }
  0xfb   :  { %v515_v47 = vpop.f32.mrb[2].mxu0  ;;  %v152_v48 = vsub.f32 %v144_v43, %v148_v44 }
  0xfc   :  { %v151_v49 = vmul.f32 2.0, %v515_v47  ;;  %v128_v50 = vpop.f32.mrb[3].mxu0  ;;  %v160_v51 = vsel %vm158_vm0, %v153_v46, 3.4028235e+38 }
  0xfd   :  { %v150_v53 = vmul.f32 2.0, %v128_v50  ;;  %165 = vmin.xlane.f32.xlu1 %v160_v51  ;;  %v159_v54 = vsel %vm158_vm0, %v152_v48, 3.4028235e+38 }
  0xfe   :  { %163 = vmin.xlane.f32.xlu0 %v159_v54  ;;  %v155_v55 = vsub.f32 %v147_v45, %v151_v49 }
  0xff   :  { %v154_v56 = vsub.f32 %v146_v52, %v150_v53  ;;  %v261_v53 = vld [vmem:[%s862_s2 + $0x70] sm:$0xff] }
 0x100   :  { %v162_v57 = vsel %vm158_vm0, %v155_v55, 3.4028235e+38 }
 0x101   :  { %169 = vmin.xlane.f32.xlu1 %v162_v57  ;;  %v161_v58 = vsel %vm158_vm0, %v154_v56, 3.4028235e+38 }
 0x102   :  { %167 = vmin.xlane.f32.xlu0 %v161_v58 }
 0x18a   :  { %v166_v59 = vpop.xlane.xlu1 %165 }
 0x18b   :  { %vm172_vm1 = vcmp.le.f32.partialorder %v160_v51, %v166_v59  ;;  %v164_v60 = vpop.xlane.xlu0 %163 }
 0x18c   :  { %v176_v61 = vsel %vm172_vm1, %v763_v37, 128  ;;  %vm171_vm2 = vcmp.le.f32.partialorder %v159_v54, %v164_v60  ;;  %v262_v54 = vld [vmem:[%s862_s2 + $0x78] sm:$0xff] }
 0x18d   :  { %v175_v62 = vsel %vm171_vm2, %v763_v37, 128  ;;  %v194_v63 = vshra.s32 %v176_v61, 16  ;;  %v193_v36 = vand.u32 65535, %v176_v61  ;;  %v614_v55 = vpack.c.bf16 %v262_v54, %v261_v53 }
 0x18e   :  { %v170_v0 = vpop.xlane.xlu1 %169  ;;  %v180_v1 = vshra.s32 %v175_v62, 16  ;;  %v179_v38 = vand.u32 65535, %v175_v62 }
 0x18f   :  { %vm174_vm3 = vcmp.le.f32.partialorder %v162_v57, %v170_v0  ;;  %v168_v2 = vpop.xlane.xlu0 %167  ;;  %v196_v3 = vcvt.s32.f32 %v194_v63  ;;  %v195_v41 = vcvt.s32.f32 %v193_v36  ;;  %615 = vmatprep.subr.bf16.mxu1 %v614_v55  ;;  %v405_v36 = vld [vmem:[#allocation2] sm:$0x1] }
 0x190   :  { %v178_v4 = vsel %vm174_vm3, %v763_v37, 128  ;;  %vm173_vm4 = vcmp.le.f32.partialorder %v161_v58, %v168_v2  ;;  %v182_v5 = vcvt.s32.f32 %v180_v1  ;;  %v181_v44 = vcvt.s32.f32 %v179_v38  ;;  %617 = vmatpush3.bf16.msra.mxu1 %v614_v55 }
 0x191   :  { %v177_v6 = vsel %vm173_vm4, %v763_v37, 128  ;;  %197 = vmin.xlane.f32.xlu1 %v196_v3  ;;  %v222_v7 = vshra.s32 %v178_v4, 16  ;;  %v221_v39 = vand.u32 65535, %v178_v4 }
 0x192   :  { %183 = vmin.xlane.f32.xlu0 %v182_v5  ;;  %v208_v8 = vshra.s32 %v177_v6, 16  ;;  %v207_v42 = vand.u32 65535, %v177_v6 }
 0x193   :  { %v224_v10 = vcvt.s32.f32 %v222_v7  ;;  %v223_v48 = vcvt.s32.f32 %v221_v39 }
 0x194   :  { %v210_v11 = vcvt.s32.f32 %v208_v8  ;;  %v209_v50 = vcvt.s32.f32 %v207_v42 }
 0x195   :  { %225 = vmin.xlane.f32.xlu1 %v224_v10 }
 0x196   :  { %211 = vmin.xlane.f32.xlu0 %v210_v11 }
 0x21e   :  { %v198_v40 = vpop.xlane.xlu1 %197 }
 0x21f   :  { %v184_v43 = vpop.xlane.xlu0 %183  ;;  %vm199_vm5 = vcmp.eq.f32.partialorder %v196_v3, %v198_v40  ;;  %v204_v56 = vcvt.f32.s32 %v198_v40 }
 0x220   :  { %v200_v45 = vsel %vm199_vm5, %v195_v41, inf  ;;  %vm185_vm6 = vcmp.eq.f32.partialorder %v182_v5, %v184_v43  ;;  %v190_v57 = vcvt.f32.s32 %v184_v43 }
 0x221   :  { %201 = vmin.xlane.f32.xlu1 %v200_v45  ;;  %v186_v46 = vsel %vm185_vm6, %v181_v44, inf  ;;  %v205_v59 = vshll.u32 %v204_v56, 16 }
 0x222   :  { %v226_v47 = vpop.xlane.xlu1 %225  ;;  %187 = vmin.xlane.f32.xlu0 %v186_v46  ;;  %v191_v63 = vshll.u32 %v190_v57, 16 }
 0x223   :  { %v212_v49 = vpop.xlane.xlu0 %211  ;;  %vm227_vm7 = vcmp.eq.f32.partialorder %v224_v10, %v226_v47  ;;  %v232_v60 = vcvt.f32.s32 %v226_v47 }
 0x224   :  { %v228_v51 = vsel %vm227_vm7, %v223_v48, inf  ;;  %vm213_vm8 = vcmp.eq.f32.partialorder %v210_v11, %v212_v49  ;;  %v218_v0 = vcvt.f32.s32 %v212_v49 }
 0x225   :  { %229 = vmin.xlane.f32.xlu1 %v228_v51  ;;  %v214_v52 = vsel %vm213_vm8, %v209_v50, inf  ;;  %v233_v5 = vshll.u32 %v232_v60, 16 }
 0x226   :  { %215 = vmin.xlane.f32.xlu0 %v214_v52  ;;  %v219_v8 = vshll.u32 %v218_v0, 16 }
 0x2ae   :  { %v202_v58 = vpop.xlane.xlu1 %201 }
 0x2af   :  { %v203_v61 = vcvt.f32.s32 %v202_v58  ;;  %v188_v62 = vpop.xlane.xlu0 %187 }
 0x2b0   :  { %v189_v1 = vcvt.f32.s32 %v188_v62 }
 0x2b1   :  { %v206_v2 = vadd.s32 %v205_v59, %v203_v61 }
 0x2b2   :  { %v230_v3 = vpop.xlane.xlu1 %229  ;;  %v192_v4 = vadd.s32 %v191_v63, %v189_v1 }
 0x2b3   :  { %v231_v6 = vcvt.f32.s32 %v230_v3  ;;  %v216_v7 = vpop.xlane.xlu0 %215  ;;  %vm236_vm10 = vcmp.eq.s32.totalorder %v763_v37, %v206_v2 }
 0x2b4   :  { %v217_v10 = vcvt.f32.s32 %v216_v7  ;;  %vm235_vm9 = vcmp.eq.s32.totalorder %v763_v37, %v192_v4 }
 0x2b5   :  { %v234_v11 = vadd.s32 %v233_v5, %v231_v6  ;;  %548 = vmatprep.mubr.msk.f32.mxu1 %vm235_vm9, %v647_v13 }
 0x2b6   :  { %v220_v15 = vadd.s32 %v219_v8, %v217_v10  ;;  %549 = vmatmul.mubr.msk.f32.vlgmr.msra.gmra.mrb[0].mxu1 %vm236_vm10, %v647_v13 }
 0x2b7   :  { %vm238_vm12 = vcmp.eq.s32.totalorder %v763_v37, %v234_v11 }
 0x2b8   :  { %vm237_vm11 = vcmp.eq.s32.totalorder %v763_v37, %v220_v15 }
 0x2b9   :  { %551 = vmatprep.mubr.msk.f32.mxu1 %vm237_vm11, %v647_v13 }
 0x2ba   :  { %552 = vmatmul.mubr.msk.f32.gmra.mrb[2].mxu1 %vm238_vm12, %v647_v13 }
 0x389   :  { %v550_v17 = vpop.f32.mrb[0].mxu1 }
 0x38a   :  { %349 = vst [vmem:[%s864_s4 + $0x8] sm:$0xff] %v550_v17  ;;  %v376_v18 = vsub.f32 %v550_v17, %v720_v14  ;;  %v329_v19 = vpop.f32.mrb[1].mxu1 }
 0x38b   :  { %348 = vst [vmem:[%s864_s4] sm:$0xff] %v329_v19  ;;  %v375_v20 = vsub.f32 %v329_v19, %v701_v9 }
 0x38c   :  { %v384_v21 = vmul.f32 %v376_v18, %v376_v18 }
 0x38d   :  { %v383_v22 = vmul.f32 %v375_v20, %v375_v20  ;;  %v553_v23 = vpop.f32.mrb[2].mxu1 }
 0x38e   :  { %351 = vst [vmem:[%s864_s4 + $0x18] sm:$0xff] %v553_v23  ;;  %v339_v37 = vpop.f32.mrb[3].mxu1  ;;  %v378_v25 = vsub.f32 %v553_v23, %v727_v16 }
 0x38f   :  { %v387_v24 = vadd.f32 %v384_v21, %v383_v22  ;;  %350 = vst [vmem:[%s864_s4 + $0x10] sm:$0xff] %v339_v37  ;;  %v377_v14 = vsub.f32 %v339_v37, %v713_v12 }
 0x390   :  { %v386_v27 = vmul.f32 %v378_v25, %v378_v25 }
 0x391   :  { %v385_v26 = vmul.f32 %v377_v14, %v377_v14 }
 0x393   :  { %v388_v9 = vadd.f32 %v387_v24, %v385_v26 }
 0x395   :  { %v389_v28 = vadd.f32 %v388_v9, %v386_v27 }
 0x397   :  { %390 = vadd.xlane.f32.xlu0 %v389_v28 }
 0x424   :  { %v391_v30 = vpop.xlane.xlu0 %390 }
 0x425   :  { %v392_v31 = vrot.slane %v391_v30, 4 }
 0x427   :  { %v393_v32 = vadd.f32 %v392_v31, %v391_v30 }
 0x429   :  { %v394_v33 = vrot.slane %v393_v32, 2 }
 0x42b   :  { %v395_v16 = vadd.f32 %v394_v33, %v393_v32 }
 0x42d   :  { %v396_v34 = vrot.slane %v395_v16, 1 }
 0x42f   :  { %v397_v35 = vadd.f32 %v396_v34, %v395_v16 }
 0x431   :  { %618 = vpush %v397_v35 }
 0x462   :  { %s619_s4 = spop %618 }
 0x463   :  { %v406_v12 = vstv %s619_s4 }
 0x464   :  { %v407_v38 = vmul.f32 0.0048828125, %v406_v12 }
 0x466   :  { %v408_v39 = vadd.f32 %v407_v38, %v405_v36 }
 0x468   :  { %410 = vst.msk [vmem:[#allocation2] sm:$0x1] %vm403_vm13, %v408_v39 }
 0x469   :  { %634 = shalt.err (!%p631_p4)
}
 0x46a   :  { %s635_s23 = scalar_lea.hbm %s865_s5, 16 }
 0x46b   :  { %p636_p5 = scmp.ne.s32.totalorder %s865_s5, %s635_s23  ;;  %p639_p6 = scmp.lt.u32.totalorder %s635_s23, %s865_s5 }
 0x46d   :  { %p641_p7 = pnand %p639_p6, %p636_p5 }
 0x46f   :  { %644 = shalt.err (!%p641_p7)
}
 0x470   :  { %422 = dma.vmem_to_hbm [thread:$0]  %s420_s19, 16, %s865_s5, [#allocation3]  }
 0x471   :  { %645 = dma.done.wait [#allocation3], 16  }
 0x472   :  { %646 = vsyncadd [#allocation3], 4294967280 }
 0x473   :  { %428 = vsyncpa [#allocation3], 1 }

// kernel: vqvae_forward.38
= control target key start
LH: loop header
LB: loop body
LE: loop exit
PB: predicated region body
PF: predicated region fallthrough
CT: control target
= control target key end

     0   :  { %s2571_s1 = inlined_call_operand.vmem [shape: bf16[512,512], index: 1, kind: input, shape index: {}]   ;;  %s2572_s0 = inlined_call_operand.vmem [shape: bf16[64,512], index: 0, kind: input, shape index: {}]   ;;  %s2573_s2 = inlined_call_operand.vmem [shape: f32[1,512], index: 2, kind: input, shape index: {}]   ;;  %s2574_s3 = inlined_call_operand.vmem [shape: bf16[64,512], index: 3, kind: output, shape index: {}]  }
   0x1   :  { %v1811_v0 = vld [vmem:[%s2571_s1 + $0x4] ss:$16 sps:$4 sm:$0xff]   ;;  %v1813_v1 = vld [vmem:[%s2571_s1 + $0xc] ss:$16 sps:$4 sm:$0xff]   ;;  %v1815_v2 = vld [vmem:[%s2571_s1] ss:$16 sps:$4 sm:$0xff]  }
   0x2   :  { %946 = vmatprep.subr.bf16.mxu0 %v1811_v0  ;;  %v1816_v3 = vld [vmem:[%s2571_s1 + $0x8] ss:$16 sps:$4 sm:$0xff]   ;;  %1092 = vmatprep.subr.bf16.mxu1 %v1813_v1  ;;  %v1817_v4 = vld [vmem:[%s2571_s1 + $0x24] ss:$16 sps:$4 sm:$0xff]   ;;  %v1819_v5 = vld [vmem:[%s2571_s1 + $0x2c] ss:$16 sps:$4 sm:$0xff]  }
   0x3   :  { %947 = vmatpush1.bf16.msra.mxu0 %v1815_v2  ;;  %1093 = vmatpush1.bf16.msra.mxu1 %v1816_v3  ;;  %v1821_v6 = vld [vmem:[%s2571_s1 + $0x20] ss:$16 sps:$4 sm:$0xff]   ;;  %v1822_v7 = vld [vmem:[%s2571_s1 + $0x28] ss:$16 sps:$4 sm:$0xff]   ;;  %v1823_v8 = vld [vmem:[%s2571_s1 + $0x44] ss:$16 sps:$4 sm:$0xff]  }
   0x4   :  { %948 = vmatprep.subr.bf16.mxu0 %v1817_v4  ;;  %1094 = vmatprep.subr.bf16.mxu1 %v1819_v5  ;;  %v1825_v9 = vld [vmem:[%s2571_s1 + $0x4c] ss:$16 sps:$4 sm:$0xff]   ;;  %v1827_v10 = vld [vmem:[%s2571_s1 + $0x40] ss:$16 sps:$4 sm:$0xff]   ;;  %v1828_v11 = vld [vmem:[%s2571_s1 + $0x48] ss:$16 sps:$4 sm:$0xff]  }
   0x5   :  { %v1829_v12 = vld [vmem:[%s2571_s1 + $0x64] ss:$16 sps:$4 sm:$0xff]   ;;  %v1831_v13 = vld [vmem:[%s2571_s1 + $0x6c] ss:$16 sps:$4 sm:$0xff]   ;;  %v1833_v14 = vld [vmem:[%s2571_s1 + $0x60] ss:$16 sps:$4 sm:$0xff]  }
   0x6   :  { %v1834_v15 = vld [vmem:[%s2571_s1 + $0x68] ss:$16 sps:$4 sm:$0xff]   ;;  %v1835_v16 = vld [vmem:[%s2571_s1 + $0x84] ss:$16 sps:$4 sm:$0xff]   ;;  %v1837_v17 = vld [vmem:[%s2571_s1 + $0x8c] ss:$16 sps:$4 sm:$0xff]  }
   0x7   :  { %949 = vmatpush1.bf16.msra.mxu0 %v1821_v6  ;;  %1095 = vmatpush1.bf16.msra.mxu1 %v1822_v7  ;;  %v1839_v18 = vld [vmem:[%s2571_s1 + $0x80] ss:$16 sps:$4 sm:$0xff]   ;;  %v1840_v19 = vld [vmem:[%s2571_s1 + $0x88] ss:$16 sps:$4 sm:$0xff]   ;;  %v1841_v20 = vld [vmem:[%s2571_s1 + $0xa4] ss:$16 sps:$4 sm:$0xff]  }
   0x8   :  { %950 = vmatprep.subr.bf16.mxu0 %v1823_v8  ;;  %1096 = vmatprep.subr.bf16.mxu1 %v1825_v9  ;;  %v1843_v21 = vld [vmem:[%s2571_s1 + $0xac] ss:$16 sps:$4 sm:$0xff]   ;;  %v1845_v22 = vld [vmem:[%s2571_s1 + $0xa0] ss:$16 sps:$4 sm:$0xff]   ;;  %v1846_v23 = vld [vmem:[%s2571_s1 + $0xa8] ss:$16 sps:$4 sm:$0xff]  }
   0x9   :  { %v1847_v24 = vld [vmem:[%s2571_s1 + $0xc4] ss:$16 sps:$4 sm:$0xff]   ;;  %v1849_v25 = vld [vmem:[%s2571_s1 + $0xcc] ss:$16 sps:$4 sm:$0xff]   ;;  %v1851_v26 = vld [vmem:[%s2571_s1 + $0xc0] ss:$16 sps:$4 sm:$0xff]  }
   0xa   :  { %v1852_v27 = vld [vmem:[%s2571_s1 + $0xc8] ss:$16 sps:$4 sm:$0xff]   ;;  %v1853_v28 = vld [vmem:[%s2571_s1 + $0xe4] ss:$16 sps:$4 sm:$0xff]   ;;  %v1855_v29 = vld [vmem:[%s2571_s1 + $0xec] ss:$16 sps:$4 sm:$0xff]  }
   0xb   :  { %951 = vmatpush1.bf16.msra.mxu0 %v1827_v10  ;;  %1097 = vmatpush1.bf16.msra.mxu1 %v1828_v11  ;;  %v1857_v30 = vld [vmem:[%s2571_s1 + $0xe0] ss:$16 sps:$4 sm:$0xff]   ;;  %v1858_v31 = vld [vmem:[%s2571_s1 + $0xe8] ss:$16 sps:$4 sm:$0xff]   ;;  %v1859_v32 = vld [vmem:[%s2571_s1 + $0x104] ss:$16 sps:$4 sm:$0xff]  }
   0xc   :  { %952 = vmatprep.subr.bf16.mxu0 %v1829_v12  ;;  %1098 = vmatprep.subr.bf16.mxu1 %v1831_v13  ;;  %v1861_v33 = vld [vmem:[%s2571_s1 + $0x10c] ss:$16 sps:$4 sm:$0xff]   ;;  %v1863_v34 = vld [vmem:[%s2571_s1 + $0x100] ss:$16 sps:$4 sm:$0xff]   ;;  %v1864_v35 = vld [vmem:[%s2571_s1 + $0x108] ss:$16 sps:$4 sm:$0xff]  }
   0xd   :  { %v1865_v36 = vld [vmem:[%s2571_s1 + $0x124] ss:$16 sps:$4 sm:$0xff]   ;;  %v1867_v37 = vld [vmem:[%s2571_s1 + $0x12c] ss:$16 sps:$4 sm:$0xff]   ;;  %v1869_v38 = vld [vmem:[%s2571_s1 + $0x120] ss:$16 sps:$4 sm:$0xff]  }
   0xe   :  { %v1870_v39 = vld [vmem:[%s2571_s1 + $0x128] ss:$16 sps:$4 sm:$0xff]   ;;  %v1871_v40 = vld [vmem:[%s2571_s1 + $0x144] ss:$16 sps:$4 sm:$0xff]   ;;  %v1873_v41 = vld [vmem:[%s2571_s1 + $0x14c] ss:$16 sps:$4 sm:$0xff]  }
   0xf   :  { %953 = vmatpush1.bf16.msra.mxu0 %v1833_v14  ;;  %1099 = vmatpush1.bf16.msra.mxu1 %v1834_v15  ;;  %v1875_v42 = vld [vmem:[%s2571_s1 + $0x140] ss:$16 sps:$4 sm:$0xff]   ;;  %v1876_v43 = vld [vmem:[%s2571_s1 + $0x148] ss:$16 sps:$4 sm:$0xff]   ;;  %v1877_v44 = vld [vmem:[%s2571_s1 + $0x164] ss:$16 sps:$4 sm:$0xff]  }
  0x10   :  { %954 = vmatprep.subr.bf16.mxu0 %v1835_v16  ;;  %1100 = vmatprep.subr.bf16.mxu1 %v1837_v17  ;;  %v1879_v45 = vld [vmem:[%s2571_s1 + $0x16c] ss:$16 sps:$4 sm:$0xff]   ;;  %v1881_v46 = vld [vmem:[%s2571_s1 + $0x160] ss:$16 sps:$4 sm:$0xff]   ;;  %v1882_v47 = vld [vmem:[%s2571_s1 + $0x168] ss:$16 sps:$4 sm:$0xff]  }
  0x11   :  { %v1909_v48 = vld [vmem:[%s2572_s0 + $0x4] ss:$16 sps:$4 sm:$0xff]   ;;  %v1885_v50 = vld [vmem:[%s2571_s1 + $0x18c] ss:$16 sps:$4 sm:$0xff]   ;;  %v1887_v51 = vld [vmem:[%s2571_s1 + $0x180] ss:$16 sps:$4 sm:$0xff]  }
  0x12   :  { %v1883_v49 = vld [vmem:[%s2571_s1 + $0x184] ss:$16 sps:$4 sm:$0xff]   ;;  %978 = vmatprep.mubr.bf16.mxu0 %v1909_v48  ;;  %1124 = vmatprep.mubr.bf16.mxu1 %v1909_v48  ;;  %v1888_v52 = vld [vmem:[%s2571_s1 + $0x188] ss:$16 sps:$4 sm:$0xff]   ;;  %v1891_v54 = vld [vmem:[%s2571_s1 + $0x1ac] ss:$16 sps:$4 sm:$0xff]  }
  0x13   :  { %955 = vmatpush1.bf16.msra.mxu0 %v1839_v18  ;;  %1101 = vmatpush1.bf16.msra.mxu1 %v1840_v19  ;;  %v1889_v53 = vld [vmem:[%s2571_s1 + $0x1a4] ss:$16 sps:$4 sm:$0xff]   ;;  %v1893_v55 = vld [vmem:[%s2571_s1 + $0x1a0] ss:$16 sps:$4 sm:$0xff]   ;;  %v1894_v56 = vld [vmem:[%s2571_s1 + $0x1a8] ss:$16 sps:$4 sm:$0xff]  }
  0x14   :  { %956 = vmatprep.subr.bf16.mxu0 %v1841_v20  ;;  %1102 = vmatprep.subr.bf16.mxu1 %v1843_v21  ;;  %v1895_v57 = vld [vmem:[%s2571_s1 + $0x1c4] ss:$16 sps:$4 sm:$0xff]   ;;  %v1897_v58 = vld [vmem:[%s2571_s1 + $0x1cc] ss:$16 sps:$4 sm:$0xff]   ;;  %v1899_v59 = vld [vmem:[%s2571_s1 + $0x1c0] ss:$16 sps:$4 sm:$0xff]  }
  0x15   :  { %v1900_v60 = vld [vmem:[%s2571_s1 + $0x1c8] ss:$16 sps:$4 sm:$0xff]   ;;  %v1901_v61 = vld [vmem:[%s2571_s1 + $0x1e4] ss:$16 sps:$4 sm:$0xff]   ;;  %v1903_v62 = vld [vmem:[%s2571_s1 + $0x1ec] ss:$16 sps:$4 sm:$0xff]  }
  0x16   :  { %v1905_v63 = vld [vmem:[%s2571_s1 + $0x1e0] ss:$16 sps:$4 sm:$0xff]   ;;  %v1906_v0 = vld [vmem:[%s2571_s1 + $0x1e8] ss:$16 sps:$4 sm:$0xff]   ;;  %v1912_v1 = vld [vmem:[%s2571_s1 + $0x204] ss:$16 sps:$4 sm:$0xff]  }
  0x17   :  { %957 = vmatpush1.bf16.msra.mxu0 %v1845_v22  ;;  %1103 = vmatpush1.bf16.msra.mxu1 %v1846_v23  ;;  %v1915_v2 = vld [vmem:[%s2571_s1 + $0x20c] ss:$16 sps:$4 sm:$0xff]   ;;  %v1907_v3 = vld [vmem:[%s2572_s0] ss:$16 sps:$4 sm:$0xff]   ;;  %v1913_v5 = vld [vmem:[%s2571_s1 + $0x208] ss:$16 sps:$4 sm:$0xff]  }
  0x18   :  { %958 = vmatprep.subr.bf16.mxu0 %v1847_v24  ;;  %1104 = vmatprep.subr.bf16.mxu1 %v1849_v25  ;;  %v1910_v4 = vld [vmem:[%s2571_s1 + $0x200] ss:$16 sps:$4 sm:$0xff]   ;;  %v1918_v6 = vld [vmem:[%s2571_s1 + $0x224] ss:$16 sps:$4 sm:$0xff]   ;;  %v1921_v7 = vld [vmem:[%s2571_s1 + $0x22c] ss:$16 sps:$4 sm:$0xff]  }
  0x19   :  { %v1916_v8 = vld [vmem:[%s2571_s1 + $0x220] ss:$16 sps:$4 sm:$0xff]   ;;  %v1919_v9 = vld [vmem:[%s2571_s1 + $0x228] ss:$16 sps:$4 sm:$0xff]   ;;  %v1924_v10 = vld [vmem:[%s2571_s1 + $0x244] ss:$16 sps:$4 sm:$0xff]  }
  0x1a   :  { %v1927_v11 = vld [vmem:[%s2571_s1 + $0x24c] ss:$16 sps:$4 sm:$0xff]   ;;  %v1922_v12 = vld [vmem:[%s2571_s1 + $0x240] ss:$16 sps:$4 sm:$0xff]   ;;  %v1925_v13 = vld [vmem:[%s2571_s1 + $0x248] ss:$16 sps:$4 sm:$0xff]  }
  0x1b   :  { %959 = vmatpush1.bf16.msra.mxu0 %v1851_v26  ;;  %1105 = vmatpush1.bf16.msra.mxu1 %v1852_v27  ;;  %v1970_v14 = vld [vmem:[%s2572_s0 + $0x24] ss:$16 sps:$4 sm:$0xff]   ;;  %v1972_v15 = vld [vmem:[%s2572_s0 + $0x20] ss:$16 sps:$4 sm:$0xff]   ;;  %v1933_v17 = vld [vmem:[%s2571_s1 + $0x26c] ss:$16 sps:$4 sm:$0xff]  }
  0x1c   :  { %960 = vmatprep.subr.bf16.mxu0 %v1853_v28  ;;  %1106 = vmatprep.subr.bf16.mxu1 %v1855_v29  ;;  %v1930_v16 = vld [vmem:[%s2571_s1 + $0x264] ss:$16 sps:$4 sm:$0xff]   ;;  %v1928_v18 = vld [vmem:[%s2571_s1 + $0x260] ss:$16 sps:$4 sm:$0xff]   ;;  %v1931_v19 = vld [vmem:[%s2571_s1 + $0x268] ss:$16 sps:$4 sm:$0xff]  }
  0x1d   :  { %v1936_v20 = vld [vmem:[%s2571_s1 + $0x284] ss:$16 sps:$4 sm:$0xff]   ;;  %v1939_v21 = vld [vmem:[%s2571_s1 + $0x28c] ss:$16 sps:$4 sm:$0xff]   ;;  %v1934_v22 = vld [vmem:[%s2571_s1 + $0x280] ss:$16 sps:$4 sm:$0xff]  }
  0x1e   :  { %v1985_v23 = vld [vmem:[%s2572_s0 + $0x44] ss:$16 sps:$4 sm:$0xff]   ;;  %v1937_v24 = vld [vmem:[%s2571_s1 + $0x288] ss:$16 sps:$4 sm:$0xff]   ;;  %v1987_v25 = vld [vmem:[%s2572_s0 + $0x40] ss:$16 sps:$4 sm:$0xff]  }
  0x1f   :  { %961 = vmatpush1.bf16.msra.mxu0 %v1857_v30  ;;  %1107 = vmatpush1.bf16.msra.mxu1 %v1858_v31  ;;  %v1942_v26 = vld [vmem:[%s2571_s1 + $0x2a4] ss:$16 sps:$4 sm:$0xff]   ;;  %v1945_v27 = vld [vmem:[%s2571_s1 + $0x2ac] ss:$16 sps:$4 sm:$0xff]   ;;  %v1940_v28 = vld [vmem:[%s2571_s1 + $0x2a0] ss:$16 sps:$4 sm:$0xff]  }
  0x20   :  { %962 = vmatprep.subr.bf16.mxu0 %v1859_v32  ;;  %1108 = vmatprep.subr.bf16.mxu1 %v1861_v33  ;;  %v1943_v29 = vld [vmem:[%s2571_s1 + $0x2a8] ss:$16 sps:$4 sm:$0xff]   ;;  %v1948_v30 = vld [vmem:[%s2571_s1 + $0x2c4] ss:$16 sps:$4 sm:$0xff]   ;;  %v1951_v32 = vld [vmem:[%s2571_s1 + $0x2cc] ss:$16 sps:$4 sm:$0xff]  }
  0x21   :  { %v2000_v31 = vld [vmem:[%s2572_s0 + $0x64] ss:$16 sps:$4 sm:$0xff]   ;;  %v1946_v33 = vld [vmem:[%s2571_s1 + $0x2c0] ss:$16 sps:$4 sm:$0xff]   ;;  %v1967_v48 = vld [vmem:[%s2571_s1 + $0x328] ss:$16 sps:$4 sm:$0xff]  }
  0x23   :  { %963 = vmatpush1.bf16.msra.mxu0 %v1863_v34  ;;  %1109 = vmatpush1.bf16.msra.mxu1 %v1864_v35  ;;  %v1949_v34 = vld [vmem:[%s2571_s1 + $0x2c8] ss:$16 sps:$4 sm:$0xff]   ;;  %v2002_v35 = vld [vmem:[%s2572_s0 + $0x60] ss:$16 sps:$4 sm:$0xff]  }
  0x24   :  { %964 = vmatprep.subr.bf16.mxu0 %v1865_v36  ;;  %1110 = vmatprep.subr.bf16.mxu1 %v1867_v37  ;;  %v1954_v36 = vld [vmem:[%s2571_s1 + $0x2e4] ss:$16 sps:$4 sm:$0xff]   ;;  %v1957_v37 = vld [vmem:[%s2571_s1 + $0x2ec] ss:$16 sps:$4 sm:$0xff]  }
  0x27   :  { %965 = vmatpush1.bf16.msra.mxu0 %v1869_v38  ;;  %1111 = vmatpush1.bf16.msra.mxu1 %v1870_v39  ;;  %v1952_v38 = vld [vmem:[%s2571_s1 + $0x2e0] ss:$16 sps:$4 sm:$0xff]   ;;  %v1955_v39 = vld [vmem:[%s2571_s1 + $0x2e8] ss:$16 sps:$4 sm:$0xff]  }
  0x28   :  { %966 = vmatprep.subr.bf16.mxu0 %v1871_v40  ;;  %1112 = vmatprep.subr.bf16.mxu1 %v1873_v41  ;;  %v2017_v40 = vld [vmem:[%s2572_s0 + $0xc] ss:$16 sps:$4 sm:$0xff]   ;;  %v1960_v41 = vld [vmem:[%s2571_s1 + $0x304] ss:$16 sps:$4 sm:$0xff]  }
  0x2b   :  { %967 = vmatpush1.bf16.msra.mxu0 %v1875_v42  ;;  %1113 = vmatpush1.bf16.msra.mxu1 %v1876_v43  ;;  %v1963_v42 = vld [vmem:[%s2571_s1 + $0x30c] ss:$16 sps:$4 sm:$0xff]   ;;  %v1958_v43 = vld [vmem:[%s2571_s1 + $0x300] ss:$16 sps:$4 sm:$0xff]  }
  0x2c   :  { %968 = vmatprep.subr.bf16.mxu0 %v1877_v44  ;;  %1114 = vmatprep.subr.bf16.mxu1 %v1879_v45  ;;  %v1961_v44 = vld [vmem:[%s2571_s1 + $0x308] ss:$16 sps:$4 sm:$0xff]   ;;  %v1966_v45 = vld [vmem:[%s2571_s1 + $0x324] ss:$16 sps:$4 sm:$0xff]  }
  0x2f   :  { %969 = vmatpush1.bf16.msra.mxu0 %v1881_v46  ;;  %1115 = vmatpush1.bf16.msra.mxu1 %v1882_v47  ;;  %v1969_v46 = vld [vmem:[%s2571_s1 + $0x32c] ss:$16 sps:$4 sm:$0xff]   ;;  %v1964_v47 = vld [vmem:[%s2571_s1 + $0x320] ss:$16 sps:$4 sm:$0xff]  }
  0x30   :  { %970 = vmatprep.subr.bf16.mxu0 %v1883_v49  ;;  %1116 = vmatprep.subr.bf16.mxu1 %v1885_v50  ;;  %v1975_v49 = vld [vmem:[%s2571_s1 + $0x344] ss:$16 sps:$4 sm:$0xff]   ;;  %v1978_v50 = vld [vmem:[%s2571_s1 + $0x34c] ss:$16 sps:$4 sm:$0xff]  }
  0x33   :  { %971 = vmatpush1.bf16.msra.mxu0 %v1887_v51  ;;  %1117 = vmatpush1.bf16.msra.mxu1 %v1888_v52  ;;  %v1973_v51 = vld [vmem:[%s2571_s1 + $0x340] ss:$16 sps:$4 sm:$0xff]   ;;  %v1976_v52 = vld [vmem:[%s2571_s1 + $0x348] ss:$16 sps:$4 sm:$0xff]  }
  0x34   :  { %972 = vmatprep.subr.bf16.mxu0 %v1889_v53  ;;  %1118 = vmatprep.subr.bf16.mxu1 %v1891_v54  ;;  %v1981_v53 = vld [vmem:[%s2571_s1 + $0x364] ss:$16 sps:$4 sm:$0xff]   ;;  %v1984_v54 = vld [vmem:[%s2571_s1 + $0x36c] ss:$16 sps:$4 sm:$0xff]  }
  0x37   :  { %973 = vmatpush1.bf16.msra.mxu0 %v1893_v55  ;;  %1119 = vmatpush1.bf16.msra.mxu1 %v1894_v56  ;;  %v1979_v55 = vld [vmem:[%s2571_s1 + $0x360] ss:$16 sps:$4 sm:$0xff]   ;;  %v1982_v56 = vld [vmem:[%s2571_s1 + $0x368] ss:$16 sps:$4 sm:$0xff]  }
  0x38   :  { %974 = vmatprep.subr.bf16.mxu0 %v1895_v57  ;;  %1120 = vmatprep.subr.bf16.mxu1 %v1897_v58  ;;  %v1990_v57 = vld [vmem:[%s2571_s1 + $0x384] ss:$16 sps:$4 sm:$0xff]   ;;  %v1993_v58 = vld [vmem:[%s2571_s1 + $0x38c] ss:$16 sps:$4 sm:$0xff]  }
  0x3b   :  { %975 = vmatpush1.bf16.msra.mxu0 %v1899_v59  ;;  %1121 = vmatpush1.bf16.msra.mxu1 %v1900_v60  ;;  %v1988_v59 = vld [vmem:[%s2571_s1 + $0x380] ss:$16 sps:$4 sm:$0xff]   ;;  %v1991_v60 = vld [vmem:[%s2571_s1 + $0x388] ss:$16 sps:$4 sm:$0xff]  }
  0x3c   :  { %976 = vmatprep.subr.bf16.mxu0 %v1901_v61  ;;  %1122 = vmatprep.subr.bf16.mxu1 %v1903_v62  ;;  %v1996_v61 = vld [vmem:[%s2571_s1 + $0x3a4] ss:$16 sps:$4 sm:$0xff]   ;;  %v1999_v62 = vld [vmem:[%s2571_s1 + $0x3ac] ss:$16 sps:$4 sm:$0xff]  }
  0x3f   :  { %977 = vmatpush1.bf16.msra.mxu0 %v1905_v63  ;;  %1123 = vmatpush1.bf16.msra.mxu1 %v1906_v0  ;;  %v1994_v63 = vld [vmem:[%s2571_s1 + $0x3a0] ss:$16 sps:$4 sm:$0xff]   ;;  %v1997_v0 = vld [vmem:[%s2571_s1 + $0x3a8] ss:$16 sps:$4 sm:$0xff]  }
  0x40   :  { %1019 = vmatprep.subr.bf16.mxu0 %v1912_v1  ;;  %1165 = vmatprep.subr.bf16.mxu1 %v1915_v2  ;;  %v2005_v1 = vld [vmem:[%s2571_s1 + $0x3c4] ss:$16 sps:$4 sm:$0xff]   ;;  %v2008_v2 = vld [vmem:[%s2571_s1 + $0x3cc] ss:$16 sps:$4 sm:$0xff]  }
  0x42   :  { %979 = vmatmul.mubr.bf16.vlgmr.msra.gmra.mrb[0].mxu0 %v1907_v3  ;;  %1125 = vmatmul.mubr.bf16.vlgmr.msra.gmra.mrb[0].mxu1 %v1907_v3  ;;  %v2003_v3 = vld [vmem:[%s2571_s1 + $0x3c0] ss:$16 sps:$4 sm:$0xff]  }
  0x43   :  { %1020 = vmatpush1.bf16.msra.mxu0 %v1910_v4  ;;  %1166 = vmatpush1.bf16.msra.mxu1 %v1913_v5  ;;  %v2006_v4 = vld [vmem:[%s2571_s1 + $0x3c8] ss:$16 sps:$4 sm:$0xff]   ;;  %v2011_v5 = vld [vmem:[%s2571_s1 + $0x3e4] ss:$16 sps:$4 sm:$0xff]  }
  0x44   :  { %1021 = vmatprep.subr.bf16.mxu0 %v1918_v6  ;;  %1167 = vmatprep.subr.bf16.mxu1 %v1921_v7  ;;  %v2014_v6 = vld [vmem:[%s2571_s1 + $0x3ec] ss:$16 sps:$4 sm:$0xff]   ;;  %v2009_v7 = vld [vmem:[%s2571_s1 + $0x3e0] ss:$16 sps:$4 sm:$0xff]  }
  0x45   :  { %988 = vmatprep.mubr.bf16.mxu0 %v1970_v14  ;;  %1134 = vmatprep.mubr.bf16.mxu1 %v1970_v14  ;;  %v2024_v14 = vld [vmem:[%s2572_s0 + $0x6c] ss:$16 sps:$4 sm:$0xff]  }
  0x47   :  { %1022 = vmatpush1.bf16.msra.mxu0 %v1916_v8  ;;  %1168 = vmatpush1.bf16.msra.mxu1 %v1919_v9  ;;  %v2012_v8 = vld [vmem:[%s2571_s1 + $0x3e8] ss:$16 sps:$4 sm:$0xff]  }
  0x48   :  { %1023 = vmatprep.subr.bf16.mxu0 %v1924_v10  ;;  %1169 = vmatprep.subr.bf16.mxu1 %v1927_v11  ;;  %v2015_v9 = vld [vmem:[%s2572_s0 + $0x8] ss:$16 sps:$4 sm:$0xff]   ;;  %v2018_v10 = vld [vmem:[%s2572_s0 + $0x2c] ss:$16 sps:$4 sm:$0xff]  }
  0x49   :  { %v2020_v11 = vld [vmem:[%s2572_s0 + $0x28] ss:$16 sps:$4 sm:$0xff]  }
  0x4a   :  { %989 = vmatmul.mubr.bf16.gmra.mrb[4].mxu0 %v1972_v15  ;;  %1135 = vmatmul.mubr.bf16.gmra.mrb[4].mxu1 %v1972_v15  ;;  %v2026_v15 = vld [vmem:[%s2572_s0 + $0x68] ss:$16 sps:$4 sm:$0xff]  }
  0x4b   :  { %1024 = vmatpush1.bf16.msra.mxu0 %v1922_v12  ;;  %1170 = vmatpush1.bf16.msra.mxu1 %v1925_v13  ;;  %v2021_v12 = vld [vmem:[%s2572_s0 + $0x4c] ss:$16 sps:$4 sm:$0xff]   ;;  %v2023_v13 = vld [vmem:[%s2572_s0 + $0x48] ss:$16 sps:$4 sm:$0xff]  }
  0x4c   :  { %1025 = vmatprep.subr.bf16.mxu0 %v1930_v16  ;;  %1171 = vmatprep.subr.bf16.mxu1 %v1933_v17  ;;  %v1339_v16 = vlaneseq }
  0x4d   :  { %998 = vmatprep.mubr.bf16.mxu0 %v1985_v23  ;;  %1144 = vmatprep.mubr.bf16.mxu1 %v1985_v23 }
  0x4e   :  { %v1340_v17 = vshrl.u32 %v1339_v16, 7 }
  0x4f   :  { %1026 = vmatpush1.bf16.msra.mxu0 %v1928_v18  ;;  %1172 = vmatpush1.bf16.msra.mxu1 %v1931_v19 }
  0x50   :  { %1027 = vmatprep.subr.bf16.mxu0 %v1936_v20  ;;  %1173 = vmatprep.subr.bf16.mxu1 %v1939_v21  ;;  %v1341_v18 = vsub.s32 0, %v1340_v17  ;;  %v1349_v19 = vsub.s32 2, %v1340_v17  ;;  %v1337_v20 = vld [vmem:[%s2573_s2] sm:$0xf]  ;;  %v1345_v21 = vsub.s32 1, %v1340_v17 }
  0x52   :  { %999 = vmatmul.mubr.bf16.gmra.mrb[8].mxu0 %v1987_v25  ;;  %1145 = vmatmul.mubr.bf16.gmra.mrb[8].mxu1 %v1987_v25  ;;  %v2482_v23 = vrot.slane %v1337_v20, %v1341_v18  ;;  %v2486_v25 = vrot.slane %v1337_v20, %v1345_v21 }
  0x53   :  { %1028 = vmatpush1.bf16.msra.mxu0 %v1934_v22  ;;  %1174 = vmatpush1.bf16.msra.mxu1 %v1937_v24  ;;  %v1353_v22 = vsub.s32 3, %v1340_v17  ;;  %v2484_v24 = vrot.slane %v1337_v20, %v1349_v19 }
  0x54   :  { %1029 = vmatprep.subr.bf16.mxu0 %v1942_v26  ;;  %1175 = vmatprep.subr.bf16.mxu1 %v1945_v27 }
  0x55   :  { %1008 = vmatprep.mubr.bf16.mxu0 %v2000_v31  ;;  %1154 = vmatprep.mubr.bf16.mxu1 %v2000_v31  ;;  %v2488_v26 = vrot.slane %v1337_v20, %v1353_v22 }
  0x57   :  { %1030 = vmatpush1.bf16.msra.mxu0 %v1940_v28  ;;  %1176 = vmatpush1.bf16.msra.mxu1 %v1943_v29 }
  0x58   :  { %1031 = vmatprep.subr.bf16.mxu0 %v1948_v30  ;;  %1177 = vmatprep.subr.bf16.mxu1 %v1951_v32 }
  0x5a   :  { %1009 = vmatmul.mubr.bf16.gmra.mrb[12].mxu0 %v2002_v35  ;;  %1155 = vmatmul.mubr.bf16.gmra.mrb[12].mxu1 %v2002_v35 }
  0x5b   :  { %1032 = vmatpush1.bf16.msra.mxu0 %v1946_v33  ;;  %1178 = vmatpush1.bf16.msra.mxu1 %v1949_v34 }
  0x5c   :  { %1033 = vmatprep.subr.bf16.mxu0 %v1954_v36  ;;  %1179 = vmatprep.subr.bf16.mxu1 %v1957_v37 }
  0x5d   :  { %1051 = vmatprep.mubr.bf16.mxu0 %v2017_v40  ;;  %1197 = vmatprep.mubr.bf16.mxu1 %v2017_v40 }
  0x5f   :  { %1034 = vmatpush1.bf16.msra.mxu0 %v1952_v38  ;;  %1180 = vmatpush1.bf16.msra.mxu1 %v1955_v39 }
  0x60   :  { %1035 = vmatprep.subr.bf16.mxu0 %v1960_v41  ;;  %1181 = vmatprep.subr.bf16.mxu1 %v1963_v42 }
  0x63   :  { %1036 = vmatpush1.bf16.msra.mxu0 %v1958_v43  ;;  %1182 = vmatpush1.bf16.msra.mxu1 %v1961_v44 }
  0x64   :  { %1037 = vmatprep.subr.bf16.mxu0 %v1966_v45  ;;  %1183 = vmatprep.subr.bf16.mxu1 %v1969_v46 }
  0x67   :  { %1038 = vmatpush1.bf16.msra.mxu0 %v1964_v47  ;;  %1184 = vmatpush1.bf16.msra.mxu1 %v1967_v48 }
  0x68   :  { %1039 = vmatprep.subr.bf16.mxu0 %v1975_v49  ;;  %1185 = vmatprep.subr.bf16.mxu1 %v1978_v50 }
  0x6b   :  { %1040 = vmatpush1.bf16.msra.mxu0 %v1973_v51  ;;  %1186 = vmatpush1.bf16.msra.mxu1 %v1976_v52 }
  0x6c   :  { %1041 = vmatprep.subr.bf16.mxu0 %v1981_v53  ;;  %1187 = vmatprep.subr.bf16.mxu1 %v1984_v54 }
  0x6f   :  { %1042 = vmatpush1.bf16.msra.mxu0 %v1979_v55  ;;  %1188 = vmatpush1.bf16.msra.mxu1 %v1982_v56 }
  0x70   :  { %1043 = vmatprep.subr.bf16.mxu0 %v1990_v57  ;;  %1189 = vmatprep.subr.bf16.mxu1 %v1993_v58 }
  0x73   :  { %1044 = vmatpush1.bf16.msra.mxu0 %v1988_v59  ;;  %1190 = vmatpush1.bf16.msra.mxu1 %v1991_v60 }
  0x74   :  { %1045 = vmatprep.subr.bf16.mxu0 %v1996_v61  ;;  %1191 = vmatprep.subr.bf16.mxu1 %v1999_v62 }
  0x77   :  { %1046 = vmatpush1.bf16.msra.mxu0 %v1994_v63  ;;  %1192 = vmatpush1.bf16.msra.mxu1 %v1997_v0 }
  0x78   :  { %1047 = vmatprep.subr.bf16.mxu0 %v2005_v1  ;;  %1193 = vmatprep.subr.bf16.mxu1 %v2008_v2 }
  0x7b   :  { %1048 = vmatpush1.bf16.msra.mxu0 %v2003_v3  ;;  %1194 = vmatpush1.bf16.msra.mxu1 %v2006_v4 }
  0x7c   :  { %1049 = vmatprep.subr.bf16.mxu0 %v2011_v5  ;;  %1195 = vmatprep.subr.bf16.mxu1 %v2014_v6 }
  0x7f   :  { %1050 = vmatpush1.bf16.msra.mxu0 %v2009_v7  ;;  %1196 = vmatpush1.bf16.msra.mxu1 %v2012_v8 }
  0x82   :  { %1052 = vmatmul.mubr.bf16.vlgmr.msra.gmra.mrb[0].mxu0 %v2015_v9  ;;  %1198 = vmatmul.mubr.bf16.vlgmr.msra.gmra.mrb[0].mxu1 %v2015_v9 }
  0x83   :  { %1061 = vmatprep.mubr.bf16.mxu0 %v2018_v10  ;;  %1207 = vmatprep.mubr.bf16.mxu1 %v2018_v10 }
  0x8a   :  { %1062 = vmatmul.mubr.bf16.gmra.mrb[4].mxu0 %v2020_v11  ;;  %1208 = vmatmul.mubr.bf16.gmra.mrb[4].mxu1 %v2020_v11 }
  0x8b   :  { %1071 = vmatprep.mubr.bf16.mxu0 %v2021_v12  ;;  %1217 = vmatprep.mubr.bf16.mxu1 %v2021_v12 }
  0x92   :  { %1072 = vmatmul.mubr.bf16.gmra.mrb[8].mxu0 %v2023_v13  ;;  %1218 = vmatmul.mubr.bf16.gmra.mrb[8].mxu1 %v2023_v13 }
  0x93   :  { %1081 = vmatprep.mubr.bf16.mxu0 %v2024_v14  ;;  %1227 = vmatprep.mubr.bf16.mxu1 %v2024_v14 }
  0x9a   :  { %1082 = vmatmul.mubr.bf16.gmra.mrb[12].mxu0 %v2026_v15  ;;  %1228 = vmatmul.mubr.bf16.gmra.mrb[12].mxu1 %v2026_v15 }
 0x155   :  { %v1053_v27 = vpop.f32.mrb[0].mxu0  ;;  %v1199_v28 = vpop.f32.mrb[0].mxu1 }
 0x156   :  { %v1359_v29 = vadd.f32 %v2482_v23, %v1053_v27  ;;  %v1361_v30 = vadd.f32 %v2484_v24, %v1199_v28  ;;  %v1055_v31 = vpop.f32.mrb[1].mxu0  ;;  %v1201_v32 = vpop.f32.mrb[1].mxu1 }
 0x157   :  { %v1360_v33 = vadd.f32 %v2486_v25, %v1055_v31  ;;  %v1362_v34 = vadd.f32 %v2488_v26, %v1201_v32  ;;  %v1057_v35 = vpop.f32.mrb[2].mxu0  ;;  %v1203_v36 = vpop.f32.mrb[2].mxu1 }
 0x158   :  { %vm1391_vm0 = vcmp.ge.f32.partialorder %v1359_v29, 0.0  ;;  %v1423_v37 = vmul.f32 0.01, %v1359_v29  ;;  %vm1393_vm1 = vcmp.ge.f32.partialorder %v1361_v30, 0.0  ;;  %v1425_v38 = vmul.f32 0.01, %v1361_v30 }
 0x159   :  { %vm1392_vm2 = vcmp.ge.f32.partialorder %v1360_v33, 0.0  ;;  %v1424_v39 = vmul.f32 0.01, %v1360_v33  ;;  %vm1394_vm3 = vcmp.ge.f32.partialorder %v1362_v34, 0.0  ;;  %v1426_v40 = vmul.f32 0.01, %v1362_v34 }
 0x15a   :  { %v1455_v41 = vsel %vm1391_vm0, %v1359_v29, %v1423_v37  ;;  %v1457_v42 = vsel %vm1393_vm1, %v1361_v30, %v1425_v38  ;;  %v1363_v43 = vadd.f32 %v2482_v23, %v1057_v35  ;;  %v1365_v44 = vadd.f32 %v2484_v24, %v1203_v36  ;;  %v1059_v45 = vpop.f32.mrb[3].mxu0  ;;  %v1205_v46 = vpop.f32.mrb[3].mxu1 }
 0x15b   :  { %v1456_v47 = vsel %vm1392_vm2, %v1360_v33, %v1424_v39  ;;  %v1458_v48 = vsel %vm1394_vm3, %v1362_v34, %v1426_v40  ;;  %v1364_v49 = vadd.f32 %v2486_v25, %v1059_v45  ;;  %v1366_v50 = vadd.f32 %v2488_v26, %v1205_v46 }
 0x15c   :  { %v1763_v51 = vpack.c.bf16 %v1456_v47, %v1455_v41  ;;  %v1764_v52 = vpack.c.bf16 %v1458_v48, %v1457_v42  ;;  %vm1395_vm4 = vcmp.ge.f32.partialorder %v1363_v43, 0.0  ;;  %v1427_v53 = vmul.f32 0.01, %v1363_v43 }
 0x15d   :  { %vm1397_vm5 = vcmp.ge.f32.partialorder %v1365_v44, 0.0  ;;  %v1429_v54 = vmul.f32 0.01, %v1365_v44  ;;  %vm1396_vm6 = vcmp.ge.f32.partialorder %v1364_v49, 0.0  ;;  %v1428_v55 = vmul.f32 0.01, %v1364_v49 }
 0x15e   :  { %1583 = vst [vmem:[%s2574_s3] sm:$0xff] %v1763_v51  ;;  %1584 = vst [vmem:[%s2574_s3 + $0x8] sm:$0xff] %v1764_v52  ;;  %v1459_v56 = vsel %vm1395_vm4, %v1363_v43, %v1427_v53  ;;  %vm1398_vm7 = vcmp.ge.f32.partialorder %v1366_v50, 0.0  ;;  %v1430_v57 = vmul.f32 0.01, %v1366_v50  ;;  %v1063_v58 = vpop.f32.mrb[4].mxu0  ;;  %v1209_v59 = vpop.f32.mrb[4].mxu1 }
 0x15f   :  { %v1461_v60 = vsel %vm1397_vm5, %v1365_v44, %v1429_v54  ;;  %v1460_v61 = vsel %vm1396_vm6, %v1364_v49, %v1428_v55  ;;  %v1367_v62 = vadd.f32 %v2482_v23, %v1063_v58  ;;  %v1369_v63 = vadd.f32 %v2484_v24, %v1209_v59  ;;  %v1065_v0 = vpop.f32.mrb[5].mxu0  ;;  %v1211_v1 = vpop.f32.mrb[5].mxu1 }
 0x160   :  { %v1765_v2 = vpack.c.bf16 %v1460_v61, %v1459_v56  ;;  %v1462_v3 = vsel %vm1398_vm7, %v1366_v50, %v1430_v57  ;;  %v1368_v4 = vadd.f32 %v2486_v25, %v1065_v0  ;;  %v1370_v5 = vadd.f32 %v2488_v26, %v1211_v1  ;;  %v1067_v6 = vpop.f32.mrb[6].mxu0  ;;  %v1213_v7 = vpop.f32.mrb[6].mxu1 }
 0x161   :  { %v1766_v8 = vpack.c.bf16 %v1462_v3, %v1461_v60  ;;  %vm1399_vm8 = vcmp.ge.f32.partialorder %v1367_v62, 0.0  ;;  %v1431_v9 = vmul.f32 0.01, %v1367_v62  ;;  %vm1401_vm9 = vcmp.ge.f32.partialorder %v1369_v63, 0.0  ;;  %v1069_v10 = vpop.f32.mrb[7].mxu0  ;;  %v1215_v11 = vpop.f32.mrb[7].mxu1 }
 0x162   :  { %1585 = vst [vmem:[%s2574_s3 + $0x10] sm:$0xff] %v1765_v2  ;;  %v1433_v12 = vmul.f32 0.01, %v1369_v63  ;;  %vm1400_vm10 = vcmp.ge.f32.partialorder %v1368_v4, 0.0  ;;  %v1432_v13 = vmul.f32 0.01, %v1368_v4  ;;  %v1371_v16 = vadd.f32 %v2482_v23, %v1067_v6 }
 0x163   :  { %vm1402_vm11 = vcmp.ge.f32.partialorder %v1370_v5, 0.0  ;;  %1586 = vst [vmem:[%s2574_s3 + $0x18] sm:$0xff] %v1766_v8  ;;  %v1463_v14 = vsel %vm1399_vm8, %v1367_v62, %v1431_v9  ;;  %v1434_v15 = vmul.f32 0.01, %v1370_v5  ;;  %v1373_v17 = vadd.f32 %v2484_v24, %v1213_v7 }
 0x164   :  { %v1465_v18 = vsel %vm1401_vm9, %v1369_v63, %v1433_v12  ;;  %v1464_v19 = vsel %vm1400_vm10, %v1368_v4, %v1432_v13  ;;  %v1372_v20 = vadd.f32 %v2486_v25, %v1069_v10  ;;  %v1374_v21 = vadd.f32 %v2488_v26, %v1215_v11 }
 0x165   :  { %v1767_v22 = vpack.c.bf16 %v1464_v19, %v1463_v14  ;;  %v1466_v27 = vsel %vm1402_vm11, %v1370_v5, %v1434_v15  ;;  %vm1403_vm12 = vcmp.ge.f32.partialorder %v1371_v16, 0.0  ;;  %v1435_v28 = vmul.f32 0.01, %v1371_v16  ;;  %v1073_v29 = vpop.f32.mrb[8].mxu0  ;;  %v1219_v30 = vpop.f32.mrb[8].mxu1 }
 0x166   :  { %v1768_v31 = vpack.c.bf16 %v1466_v27, %v1465_v18  ;;  %vm1405_vm13 = vcmp.ge.f32.partialorder %v1373_v17, 0.0  ;;  %v1437_v32 = vmul.f32 0.01, %v1373_v17  ;;  %vm1404_vm14 = vcmp.ge.f32.partialorder %v1372_v20, 0.0  ;;  %v1075_v33 = vpop.f32.mrb[9].mxu0  ;;  %v1221_v34 = vpop.f32.mrb[9].mxu1 }
 0x167   :  { %1587 = vst [vmem:[%s2574_s3 + $0x20] sm:$0xff] %v1767_v22  ;;  %v1467_v35 = vsel %vm1403_vm12, %v1371_v16, %v1435_v28  ;;  %v1436_v36 = vmul.f32 0.01, %v1372_v20  ;;  %vm1406_vm15 = vcmp.ge.f32.partialorder %v1374_v21, 0.0  ;;  %v1438_v37 = vmul.f32 0.01, %v1374_v21 }
 0x168   :  { %v1077_v38 = vpop.f32.mrb[10].mxu0  ;;  %1588 = vst [vmem:[%s2574_s3 + $0x28] sm:$0xff] %v1768_v31  ;;  %v1469_v39 = vsel %vm1405_vm13, %v1373_v17, %v1437_v32  ;;  %v1375_v40 = vadd.f32 %v2482_v23, %v1073_v29  ;;  %v1377_v41 = vadd.f32 %v2484_v24, %v1219_v30  ;;  %v1376_v42 = vadd.f32 %v2486_v25, %v1075_v33  ;;  %v1223_v43 = vpop.f32.mrb[10].mxu1 }
 0x169   :  { %v1079_v44 = vpop.f32.mrb[11].mxu0  ;;  %v1468_v45 = vsel %vm1404_vm14, %v1372_v20, %v1436_v36  ;;  %v1470_v46 = vsel %vm1406_vm15, %v1374_v21, %v1438_v37  ;;  %v1378_v47 = vadd.f32 %v2488_v26, %v1221_v34  ;;  %v1379_v48 = vadd.f32 %v2482_v23, %v1077_v38  ;;  %v1225_v49 = vpop.f32.mrb[11].mxu1 }
 0x16a   :  { %v1769_v50 = vpack.c.bf16 %v1468_v45, %v1467_v35  ;;  %v1770_v51 = vpack.c.bf16 %v1470_v46, %v1469_v39  ;;  %vm1407_vm0 = vcmp.ge.f32.partialorder %v1375_v40, 0.0  ;;  %v1439_v52 = vmul.f32 0.01, %v1375_v40 }
 0x16b   :  { %vm1409_vm1 = vcmp.ge.f32.partialorder %v1377_v41, 0.0  ;;  %v1441_v53 = vmul.f32 0.01, %v1377_v41  ;;  %vm1408_vm2 = vcmp.ge.f32.partialorder %v1376_v42, 0.0  ;;  %v1440_v54 = vmul.f32 0.01, %v1376_v42 }
 0x16c   :  { %1589 = vst [vmem:[%s2574_s3 + $0x30] sm:$0xff] %v1769_v50  ;;  %1590 = vst [vmem:[%s2574_s3 + $0x38] sm:$0xff] %v1770_v51  ;;  %v1471_v55 = vsel %vm1407_vm0, %v1375_v40, %v1439_v52  ;;  %vm1410_vm3 = vcmp.ge.f32.partialorder %v1378_v47, 0.0  ;;  %v1442_v56 = vmul.f32 0.01, %v1378_v47  ;;  %vm1411_vm4 = vcmp.ge.f32.partialorder %v1379_v48, 0.0 }
 0x16d   :  { %v1473_v57 = vsel %vm1409_vm1, %v1377_v41, %v1441_v53  ;;  %v1472_v58 = vsel %vm1408_vm2, %v1376_v42, %v1440_v54  ;;  %v1443_v59 = vmul.f32 0.01, %v1379_v48  ;;  %v1381_v60 = vadd.f32 %v2484_v24, %v1223_v43  ;;  %v1083_v61 = vpop.f32.mrb[12].mxu0  ;;  %v1229_v62 = vpop.f32.mrb[12].mxu1 }
 0x16e   :  { %v1771_v63 = vpack.c.bf16 %v1472_v58, %v1471_v55  ;;  %v1474_v0 = vsel %vm1410_vm3, %v1378_v47, %v1442_v56  ;;  %v1380_v1 = vadd.f32 %v2486_v25, %v1079_v44  ;;  %v1382_v2 = vadd.f32 %v2488_v26, %v1225_v49  ;;  %v1085_v3 = vpop.f32.mrb[13].mxu0  ;;  %v1231_v4 = vpop.f32.mrb[13].mxu1 }
 0x16f   :  { %v1772_v5 = vpack.c.bf16 %v1474_v0, %v1473_v57  ;;  %v1475_v6 = vsel %vm1411_vm4, %v1379_v48, %v1443_v59  ;;  %vm1413_vm5 = vcmp.ge.f32.partialorder %v1381_v60, 0.0  ;;  %v1445_v7 = vmul.f32 0.01, %v1381_v60  ;;  %v1087_v8 = vpop.f32.mrb[14].mxu0  ;;  %v1233_v9 = vpop.f32.mrb[14].mxu1 }
 0x170   :  { %1591 = vst [vmem:[%s2574_s3 + $0x40] sm:$0xff] %v1771_v63  ;;  %vm1412_vm6 = vcmp.ge.f32.partialorder %v1380_v1, 0.0  ;;  %v1444_v10 = vmul.f32 0.01, %v1380_v1  ;;  %vm1414_vm7 = vcmp.ge.f32.partialorder %v1382_v2, 0.0  ;;  %v1383_v13 = vadd.f32 %v2482_v23, %v1083_v61  ;;  %v1089_v16 = vpop.f32.mrb[15].mxu0 }
 0x171   :  { %v1446_v11 = vmul.f32 0.01, %v1382_v2  ;;  %1592 = vst [vmem:[%s2574_s3 + $0x48] sm:$0xff] %v1772_v5  ;;  %v1477_v12 = vsel %vm1413_vm5, %v1381_v60, %v1445_v7  ;;  %v1385_v14 = vadd.f32 %v2484_v24, %v1229_v62  ;;  %v1384_v15 = vadd.f32 %v2486_v25, %v1085_v3  ;;  %v1235_v17 = vpop.f32.mrb[15].mxu1 }
 0x172   :  { %v1476_v18 = vsel %vm1412_vm6, %v1380_v1, %v1444_v10  ;;  %v1386_v20 = vadd.f32 %v2488_v26, %v1231_v4  ;;  %v1387_v21 = vadd.f32 %v2482_v23, %v1087_v8  ;;  %vm1415_vm8 = vcmp.ge.f32.partialorder %v1383_v13, 0.0 }
 0x173   :  { %v1478_v19 = vsel %vm1414_vm7, %v1382_v2, %v1446_v11  ;;  %v1773_v22 = vpack.c.bf16 %v1476_v18, %v1475_v6  ;;  %v1447_v28 = vmul.f32 0.01, %v1383_v13  ;;  %vm1417_vm9 = vcmp.ge.f32.partialorder %v1385_v14, 0.0 }
 0x174   :  { %v1774_v27 = vpack.c.bf16 %v1478_v19, %v1477_v12  ;;  %v1449_v29 = vmul.f32 0.01, %v1385_v14  ;;  %vm1416_vm10 = vcmp.ge.f32.partialorder %v1384_v15, 0.0  ;;  %v1448_v30 = vmul.f32 0.01, %v1384_v15 }
 0x175   :  { %1593 = vst [vmem:[%s2574_s3 + $0x50] sm:$0xff] %v1773_v22  ;;  %v1479_v31 = vsel %vm1415_vm8, %v1383_v13, %v1447_v28  ;;  %vm1418_vm11 = vcmp.ge.f32.partialorder %v1386_v20, 0.0  ;;  %v1450_v32 = vmul.f32 0.01, %v1386_v20  ;;  %vm1419_vm12 = vcmp.ge.f32.partialorder %v1387_v21, 0.0 }
 0x176   :  { %1594 = vst [vmem:[%s2574_s3 + $0x58] sm:$0xff] %v1774_v27  ;;  %v1481_v23 = vsel %vm1417_vm9, %v1385_v14, %v1449_v29  ;;  %v1480_v33 = vsel %vm1416_vm10, %v1384_v15, %v1448_v30  ;;  %v1451_v34 = vmul.f32 0.01, %v1387_v21  ;;  %v1389_v35 = vadd.f32 %v2484_v24, %v1233_v9 }
 0x177   :  { %v1775_v36 = vpack.c.bf16 %v1480_v33, %v1479_v31  ;;  %v1482_v37 = vsel %vm1418_vm11, %v1386_v20, %v1450_v32  ;;  %v1388_v38 = vadd.f32 %v2486_v25, %v1089_v16  ;;  %v1390_v39 = vadd.f32 %v2488_v26, %v1235_v17 }
 0x178   :  { %v1776_v40 = vpack.c.bf16 %v1482_v37, %v1481_v23  ;;  %v1483_v41 = vsel %vm1419_vm12, %v1387_v21, %v1451_v34  ;;  %vm1421_vm13 = vcmp.ge.f32.partialorder %v1389_v35, 0.0  ;;  %v1453_v42 = vmul.f32 0.01, %v1389_v35 }
 0x179   :  { %1595 = vst [vmem:[%s2574_s3 + $0x60] sm:$0xff] %v1775_v36  ;;  %vm1420_vm14 = vcmp.ge.f32.partialorder %v1388_v38, 0.0  ;;  %v1452_v43 = vmul.f32 0.01, %v1388_v38  ;;  %vm1422_vm15 = vcmp.ge.f32.partialorder %v1390_v39, 0.0 }
 0x17a   :  { %v1454_v44 = vmul.f32 0.01, %v1390_v39  ;;  %1596 = vst [vmem:[%s2574_s3 + $0x68] sm:$0xff] %v1776_v40  ;;  %v1485_v24 = vsel %vm1421_vm13, %v1389_v35, %v1453_v42 }
 0x17b   :  { %v1484_v25 = vsel %vm1420_vm14, %v1388_v38, %v1452_v43 }
 0x17c   :  { %v1486_v45 = vsel %vm1422_vm15, %v1390_v39, %v1454_v44  ;;  %v1777_v26 = vpack.c.bf16 %v1484_v25, %v1483_v41 }
 0x17d   :  { %v1778_v46 = vpack.c.bf16 %v1486_v45, %v1485_v24 }
 0x17e   :  { %1597 = vst [vmem:[%s2574_s3 + $0x70] sm:$0xff] %v1777_v26 }
 0x17f   :  { %1598 = vst [vmem:[%s2574_s3 + $0x78] sm:$0xff] %v1778_v46 }

// kernel: vqvae_forward.39
= control target key start
LH: loop header
LB: loop body
LE: loop exit
PB: predicated region body
PF: predicated region fallthrough
CT: control target
= control target key end

     0   :  { %s2750_s12 = smov 0   ;;  %s2752_s13 = smov 0   ;;  %s3288_s0 = inlined_call_operand.vmem [shape: bf16[192,512], index: 0, kind: input, shape index: {}]   ;;  %s3289_s1 = inlined_call_operand.vmem [shape: bf16[512,512], index: 1, kind: input, shape index: {}]   ;;  %s3290_s2 = inlined_call_operand.vmem [shape: f32[1,512], index: 2, kind: input, shape index: {}]   ;;  %s3291_s3 = inlined_call_operand.vmem [shape: bf16[192,512], index: 3, kind: output, shape index: {}]  }
   0x1   :  { %s2754_s14 = smov 0  }
   0x2 LB: > { %s25_s15 = sadd.s32 1, %s2724_s13  ;;  %p2101_p0 = scmp.ge.s32.totalorder %s2728_s14, 1  ;;  %s2728_s14 = sphi %s2754_s14, %s13_s14   ;;  %s2724_s13 = sphi %s2752_s13, %s3293_s13   ;;  %s2720_s12 = sphi %s2750_s12, %s3292_s12  }
   0x3   : > { %p27_p1 = scmp.ge.s32.totalorder %s25_s15, 2  ;;  %p158_p2 = scmp.lt.s32.totalorder %s2728_s14, 3 }
   0x5   : > { %s3295_s15 = smov (%p27_p1, %s25_s15), 0  ;;  %p159_p3 = pnand %p2101_p0, %p158_p2 }
   0x6   : > { %v2382_v0 = vld [vmem:[%s3289_s1 + $0x4] ss:$16 sps:$4 sm:$0xff] (!%p159_p3)   ;;  %v2384_v1 = vld [vmem:[%s3289_s1 + $0xc] ss:$16 sps:$4 sm:$0xff] (!%p159_p3)   ;;  %v2386_v2 = vld [vmem:[%s3289_s1] ss:$16 sps:$4 sm:$0xff] (!%p159_p3)  }
   0x7   : > { %162 = sbr.rel (%p159_p3) target bundleno = 413 (0x19d), region = 32  ;;  %1219 = vmatprep.subr.bf16.mxu0 (!%p159_p3), %v2382_v0  ;;  %v2387_v3 = vld [vmem:[%s3289_s1 + $0x8] ss:$16 sps:$4 sm:$0xff] (!%p159_p3)   ;;  %1405 = vmatprep.subr.bf16.mxu1 (!%p159_p3), %v2384_v1  ;;  %v2388_v4 = vld [vmem:[%s3289_s1 + $0x24] ss:$16 sps:$4 sm:$0xff] (!%p159_p3)  }
   0x8   : > { %1220 = vmatpush1.bf16.msra.mxu0 (!%p159_p3), %v2386_v2  ;;  %1406 = vmatpush1.bf16.msra.mxu1 (!%p159_p3), %v2387_v3  ;;  %v2390_v5 = vld [vmem:[%s3289_s1 + $0x2c] ss:$16 sps:$4 sm:$0xff] (!%p159_p3)   ;;  %v2392_v6 = vld [vmem:[%s3289_s1 + $0x20] ss:$16 sps:$4 sm:$0xff] (!%p159_p3)   ;;  %v2393_v7 = vld [vmem:[%s3289_s1 + $0x28] ss:$16 sps:$4 sm:$0xff] (!%p159_p3)  }
   0x9   : > { %1221 = vmatprep.subr.bf16.mxu0 (!%p159_p3), %v2388_v4  ;;  %1407 = vmatprep.subr.bf16.mxu1 (!%p159_p3), %v2390_v5  ;;  %v2394_v8 = vld [vmem:[%s3289_s1 + $0x44] ss:$16 sps:$4 sm:$0xff] (!%p159_p3)   ;;  %v2396_v9 = vld [vmem:[%s3289_s1 + $0x4c] ss:$16 sps:$4 sm:$0xff] (!%p159_p3)   ;;  %v2398_v10 = vld [vmem:[%s3289_s1 + $0x40] ss:$16 sps:$4 sm:$0xff] (!%p159_p3)  }
   0xa   : > { %v2399_v11 = vld [vmem:[%s3289_s1 + $0x48] ss:$16 sps:$4 sm:$0xff] (!%p159_p3)   ;;  %v2400_v12 = vld [vmem:[%s3289_s1 + $0x64] ss:$16 sps:$4 sm:$0xff] (!%p159_p3)   ;;  %v2402_v13 = vld [vmem:[%s3289_s1 + $0x6c] ss:$16 sps:$4 sm:$0xff] (!%p159_p3)  }
   0xb   : > { %v2404_v14 = vld [vmem:[%s3289_s1 + $0x60] ss:$16 sps:$4 sm:$0xff] (!%p159_p3)   ;;  %v2405_v15 = vld [vmem:[%s3289_s1 + $0x68] ss:$16 sps:$4 sm:$0xff] (!%p159_p3)   ;;  %v2406_v16 = vld [vmem:[%s3289_s1 + $0x84] ss:$16 sps:$4 sm:$0xff] (!%p159_p3)  }
   0xc   : > { %1222 = vmatpush1.bf16.msra.mxu0 (!%p159_p3), %v2392_v6  ;;  %1408 = vmatpush1.bf16.msra.mxu1 (!%p159_p3), %v2393_v7  ;;  %v2408_v17 = vld [vmem:[%s3289_s1 + $0x8c] ss:$16 sps:$4 sm:$0xff] (!%p159_p3)   ;;  %v2410_v18 = vld [vmem:[%s3289_s1 + $0x80] ss:$16 sps:$4 sm:$0xff] (!%p159_p3)   ;;  %v2411_v19 = vld [vmem:[%s3289_s1 + $0x88] ss:$16 sps:$4 sm:$0xff] (!%p159_p3)  }
   0xd   : > { %1223 = vmatprep.subr.bf16.mxu0 (!%p159_p3), %v2394_v8  ;;  %1409 = vmatprep.subr.bf16.mxu1 (!%p159_p3), %v2396_v9  ;;  %v2412_v20 = vld [vmem:[%s3289_s1 + $0xa4] ss:$16 sps:$4 sm:$0xff] (!%p159_p3)   ;;  %v2414_v21 = vld [vmem:[%s3289_s1 + $0xac] ss:$16 sps:$4 sm:$0xff] (!%p159_p3)   ;;  %v2416_v22 = vld [vmem:[%s3289_s1 + $0xa0] ss:$16 sps:$4 sm:$0xff] (!%p159_p3)  }
   0xe   : > { %v2417_v23 = vld [vmem:[%s3289_s1 + $0xa8] ss:$16 sps:$4 sm:$0xff]   ;;  %v2418_v24 = vld [vmem:[%s3289_s1 + $0xc4] ss:$16 sps:$4 sm:$0xff]   ;;  %v2420_v25 = vld [vmem:[%s3289_s1 + $0xcc] ss:$16 sps:$4 sm:$0xff]  }
   0xf   : > { %v2422_v26 = vld [vmem:[%s3289_s1 + $0xc0] ss:$16 sps:$4 sm:$0xff]   ;;  %v2423_v27 = vld [vmem:[%s3289_s1 + $0xc8] ss:$16 sps:$4 sm:$0xff]   ;;  %v2424_v28 = vld [vmem:[%s3289_s1 + $0xe4] ss:$16 sps:$4 sm:$0xff]  }
  0x10   : > { %1224 = vmatpush1.bf16.msra.mxu0 %v2398_v10  ;;  %1410 = vmatpush1.bf16.msra.mxu1 %v2399_v11  ;;  %v2426_v29 = vld [vmem:[%s3289_s1 + $0xec] ss:$16 sps:$4 sm:$0xff]   ;;  %s188_s30 = smul.u32 12, %s2720_s12  ;;  %v2428_v30 = vld [vmem:[%s3289_s1 + $0xe0] ss:$16 sps:$4 sm:$0xff]  }
  0x11   : > { %1225 = vmatprep.subr.bf16.mxu0 %v2400_v12  ;;  %1411 = vmatprep.subr.bf16.mxu1 %v2402_v13  ;;  %v2429_v31 = vld [vmem:[%s3289_s1 + $0xe8] ss:$16 sps:$4 sm:$0xff]   ;;  %v2430_v32 = vld [vmem:[%s3289_s1 + $0x104] ss:$16 sps:$4 sm:$0xff]   ;;  %v2432_v33 = vld [vmem:[%s3289_s1 + $0x10c] ss:$16 sps:$4 sm:$0xff]  }
  0x12   : > { %p190_p4 = scmp.lt.s32.totalorder %s188_s30, 23  ;;  %v2434_v34 = vld [vmem:[%s3289_s1 + $0x100] ss:$16 sps:$4 sm:$0xff]   ;;  %v2435_v35 = vld [vmem:[%s3289_s1 + $0x108] ss:$16 sps:$4 sm:$0xff]  }
  0x13   : > { %v2436_v36 = vld [vmem:[%s3289_s1 + $0x124] ss:$16 sps:$4 sm:$0xff]   ;;  %v2438_v37 = vld [vmem:[%s3289_s1 + $0x12c] ss:$16 sps:$4 sm:$0xff]   ;;  %v2440_v38 = vld [vmem:[%s3289_s1 + $0x120] ss:$16 sps:$4 sm:$0xff]  }
  0x14   : > { %1226 = vmatpush1.bf16.msra.mxu0 %v2404_v14  ;;  %1412 = vmatpush1.bf16.msra.mxu1 %v2405_v15  ;;  %s3297_s30 = smov (!%p190_p4, %s188_s30), 23  ;;  %v2441_v39 = vld [vmem:[%s3289_s1 + $0x128] ss:$16 sps:$4 sm:$0xff]   ;;  %v2442_v40 = vld [vmem:[%s3289_s1 + $0x144] ss:$16 sps:$4 sm:$0xff]  }
  0x15   : > { %1227 = vmatprep.subr.bf16.mxu0 %v2406_v16  ;;  %1413 = vmatprep.subr.bf16.mxu1 %v2408_v17  ;;  %v2444_v41 = vld [vmem:[%s3289_s1 + $0x14c] ss:$16 sps:$4 sm:$0xff]   ;;  %s2284_s5 = sshll.u32 %s3297_s30, 4  ;;  %v2446_v42 = vld [vmem:[%s3289_s1 + $0x140] ss:$16 sps:$4 sm:$0xff]  }
  0x16   : > { %v2447_v43 = vld [vmem:[%s3289_s1 + $0x148] ss:$16 sps:$4 sm:$0xff]   ;;  %v2448_v44 = vld [vmem:[%s3289_s1 + $0x164] ss:$16 sps:$4 sm:$0xff]   ;;  %s2914_s17 = scalar_lea.vmem %s3288_s0, %s2284_s5  ;;  %v2450_v45 = vld [vmem:[%s3289_s1 + $0x16c] ss:$16 sps:$4 sm:$0xff]   ;;  %s3221_s19 = scalar_lea.vmem %s3291_s3, %s2284_s5 }
  0x17   : > { %v2452_v46 = vld [vmem:[%s3289_s1 + $0x160] ss:$16 sps:$4 sm:$0xff]   ;;  %v2453_v47 = vld [vmem:[%s3289_s1 + $0x168] ss:$16 sps:$4 sm:$0xff]   ;;  %v2480_v48 = vld [vmem:[%s2914_s17 + $0x4] ss:$16 sps:$4 sm:$0xff]  }
  0x18   : > { %1228 = vmatpush1.bf16.msra.mxu0 %v2410_v18  ;;  %1414 = vmatpush1.bf16.msra.mxu1 %v2411_v19  ;;  %v2454_v49 = vld [vmem:[%s3289_s1 + $0x184] ss:$16 sps:$4 sm:$0xff]   ;;  %v2456_v50 = vld [vmem:[%s3289_s1 + $0x18c] ss:$16 sps:$4 sm:$0xff]   ;;  %v2458_v51 = vld [vmem:[%s3289_s1 + $0x180] ss:$16 sps:$4 sm:$0xff]  }
  0x19   : > { %1229 = vmatprep.subr.bf16.mxu0 %v2412_v20  ;;  %1415 = vmatprep.subr.bf16.mxu1 %v2414_v21  ;;  %v2459_v52 = vld [vmem:[%s3289_s1 + $0x188] ss:$16 sps:$4 sm:$0xff]   ;;  %v2460_v53 = vld [vmem:[%s3289_s1 + $0x1a4] ss:$16 sps:$4 sm:$0xff]   ;;  %v2462_v54 = vld [vmem:[%s3289_s1 + $0x1ac] ss:$16 sps:$4 sm:$0xff]  }
  0x1a   : > { %1251 = vmatprep.mubr.bf16.mxu0 %v2480_v48  ;;  %1437 = vmatprep.mubr.bf16.mxu1 %v2480_v48  ;;  %v2464_v55 = vld [vmem:[%s3289_s1 + $0x1a0] ss:$16 sps:$4 sm:$0xff]   ;;  %v2465_v56 = vld [vmem:[%s3289_s1 + $0x1a8] ss:$16 sps:$4 sm:$0xff]   ;;  %v2466_v57 = vld [vmem:[%s3289_s1 + $0x1c4] ss:$16 sps:$4 sm:$0xff]  }
  0x1b   : > { %v2468_v58 = vld [vmem:[%s3289_s1 + $0x1cc] ss:$16 sps:$4 sm:$0xff]   ;;  %v2470_v59 = vld [vmem:[%s3289_s1 + $0x1c0] ss:$16 sps:$4 sm:$0xff]   ;;  %v2471_v60 = vld [vmem:[%s3289_s1 + $0x1c8] ss:$16 sps:$4 sm:$0xff]  }
  0x1c   : > { %1230 = vmatpush1.bf16.msra.mxu0 %v2416_v22  ;;  %1416 = vmatpush1.bf16.msra.mxu1 %v2417_v23  ;;  %v2472_v61 = vld [vmem:[%s3289_s1 + $0x1e4] ss:$16 sps:$4 sm:$0xff]   ;;  %v2474_v62 = vld [vmem:[%s3289_s1 + $0x1ec] ss:$16 sps:$4 sm:$0xff]   ;;  %v2476_v63 = vld [vmem:[%s3289_s1 + $0x1e0] ss:$16 sps:$4 sm:$0xff]  }
  0x1d   : > { %1231 = vmatprep.subr.bf16.mxu0 %v2418_v24  ;;  %1417 = vmatprep.subr.bf16.mxu1 %v2420_v25  ;;  %v2477_v0 = vld [vmem:[%s3289_s1 + $0x1e8] ss:$16 sps:$4 sm:$0xff]   ;;  %v2483_v1 = vld [vmem:[%s3289_s1 + $0x204] ss:$16 sps:$4 sm:$0xff]   ;;  %v2486_v2 = vld [vmem:[%s3289_s1 + $0x20c] ss:$16 sps:$4 sm:$0xff]  }
  0x1e   : > { %v2478_v3 = vld [vmem:[%s2914_s17] ss:$16 sps:$4 sm:$0xff]   ;;  %v2484_v5 = vld [vmem:[%s3289_s1 + $0x208] ss:$16 sps:$4 sm:$0xff]   ;;  %v2489_v6 = vld [vmem:[%s3289_s1 + $0x224] ss:$16 sps:$4 sm:$0xff]  }
  0x1f   : > { %v2481_v4 = vld [vmem:[%s3289_s1 + $0x200] ss:$16 sps:$4 sm:$0xff]   ;;  %v2492_v7 = vld [vmem:[%s3289_s1 + $0x22c] ss:$16 sps:$4 sm:$0xff]   ;;  %v2517_v8 = vld [vmem:[%s2914_s17 + $0x24] ss:$16 sps:$4 sm:$0xff]  }
  0x20   : > { %1232 = vmatpush1.bf16.msra.mxu0 %v2422_v26  ;;  %1418 = vmatpush1.bf16.msra.mxu1 %v2423_v27  ;;  %v2487_v9 = vld [vmem:[%s3289_s1 + $0x220] ss:$16 sps:$4 sm:$0xff]   ;;  %v2490_v10 = vld [vmem:[%s3289_s1 + $0x228] ss:$16 sps:$4 sm:$0xff]   ;;  %v2495_v11 = vld [vmem:[%s3289_s1 + $0x244] ss:$16 sps:$4 sm:$0xff]  }
  0x21   : > { %1233 = vmatprep.subr.bf16.mxu0 %v2424_v28  ;;  %1419 = vmatprep.subr.bf16.mxu1 %v2426_v29  ;;  %v2498_v12 = vld [vmem:[%s3289_s1 + $0x24c] ss:$16 sps:$4 sm:$0xff]   ;;  %v2493_v13 = vld [vmem:[%s3289_s1 + $0x240] ss:$16 sps:$4 sm:$0xff]   ;;  %v2496_v14 = vld [vmem:[%s3289_s1 + $0x248] ss:$16 sps:$4 sm:$0xff]  }
  0x22   : > { %v2519_v15 = vld [vmem:[%s2914_s17 + $0x20] ss:$16 sps:$4 sm:$0xff]   ;;  %v2501_v16 = vld [vmem:[%s3289_s1 + $0x264] ss:$16 sps:$4 sm:$0xff]   ;;  %v2504_v17 = vld [vmem:[%s3289_s1 + $0x26c] ss:$16 sps:$4 sm:$0xff]  }
  0x23   : > { %v2532_v18 = vld [vmem:[%s2914_s17 + $0x44] ss:$16 sps:$4 sm:$0xff]   ;;  %v2499_v19 = vld [vmem:[%s3289_s1 + $0x260] ss:$16 sps:$4 sm:$0xff]   ;;  %v2502_v20 = vld [vmem:[%s3289_s1 + $0x268] ss:$16 sps:$4 sm:$0xff]  }
  0x24   : > { %1234 = vmatpush1.bf16.msra.mxu0 %v2428_v30  ;;  %1420 = vmatpush1.bf16.msra.mxu1 %v2429_v31  ;;  %v2507_v21 = vld [vmem:[%s3289_s1 + $0x284] ss:$16 sps:$4 sm:$0xff]   ;;  %v2510_v22 = vld [vmem:[%s3289_s1 + $0x28c] ss:$16 sps:$4 sm:$0xff]   ;;  %v2505_v23 = vld [vmem:[%s3289_s1 + $0x280] ss:$16 sps:$4 sm:$0xff]  }
  0x25   : > { %1235 = vmatprep.subr.bf16.mxu0 %v2430_v32  ;;  %1421 = vmatprep.subr.bf16.mxu1 %v2432_v33  ;;  %v2508_v24 = vld [vmem:[%s3289_s1 + $0x288] ss:$16 sps:$4 sm:$0xff]   ;;  %v2534_v25 = vld [vmem:[%s2914_s17 + $0x40] ss:$16 sps:$4 sm:$0xff]   ;;  %v2513_v26 = vld [vmem:[%s3289_s1 + $0x2a4] ss:$16 sps:$4 sm:$0xff]  }
  0x26   : > { %v2516_v27 = vld [vmem:[%s3289_s1 + $0x2ac] ss:$16 sps:$4 sm:$0xff]   ;;  %v2547_v28 = vld [vmem:[%s2914_s17 + $0x64] ss:$16 sps:$4 sm:$0xff]   ;;  %v2511_v29 = vld [vmem:[%s3289_s1 + $0x2a0] ss:$16 sps:$4 sm:$0xff]  }
  0x27   : > { %v2514_v30 = vld [vmem:[%s3289_s1 + $0x2a8] ss:$16 sps:$4 sm:$0xff]   ;;  %v2522_v31 = vld [vmem:[%s3289_s1 + $0x2c4] ss:$16 sps:$4 sm:$0xff]   ;;  %v2525_v32 = vld [vmem:[%s3289_s1 + $0x2cc] ss:$16 sps:$4 sm:$0xff]  }
  0x28   : > { %1236 = vmatpush1.bf16.msra.mxu0 %v2434_v34  ;;  %1422 = vmatpush1.bf16.msra.mxu1 %v2435_v35  ;;  %v2520_v33 = vld [vmem:[%s3289_s1 + $0x2c0] ss:$16 sps:$4 sm:$0xff]   ;;  %v2523_v34 = vld [vmem:[%s3289_s1 + $0x2c8] ss:$16 sps:$4 sm:$0xff]   ;;  %v2577_v48 = vld [vmem:[%s2914_s17 + $0xa4] ss:$16 sps:$4 sm:$0xff]  }
  0x29   : > { %1237 = vmatprep.subr.bf16.mxu0 %v2436_v36  ;;  %1423 = vmatprep.subr.bf16.mxu1 %v2438_v37  ;;  %v2549_v35 = vld [vmem:[%s2914_s17 + $0x60] ss:$16 sps:$4 sm:$0xff]   ;;  %v2528_v36 = vld [vmem:[%s3289_s1 + $0x2e4] ss:$16 sps:$4 sm:$0xff]   ;;  %v2531_v37 = vld [vmem:[%s3289_s1 + $0x2ec] ss:$16 sps:$4 sm:$0xff]  }
  0x2c   : > { %1238 = vmatpush1.bf16.msra.mxu0 %v2440_v38  ;;  %1424 = vmatpush1.bf16.msra.mxu1 %v2441_v39  ;;  %v2562_v38 = vld [vmem:[%s2914_s17 + $0x84] ss:$16 sps:$4 sm:$0xff]   ;;  %v2526_v39 = vld [vmem:[%s3289_s1 + $0x2e0] ss:$16 sps:$4 sm:$0xff]  }
  0x2d   : > { %1239 = vmatprep.subr.bf16.mxu0 %v2442_v40  ;;  %1425 = vmatprep.subr.bf16.mxu1 %v2444_v41  ;;  %v2529_v40 = vld [vmem:[%s3289_s1 + $0x2e8] ss:$16 sps:$4 sm:$0xff]   ;;  %v2537_v41 = vld [vmem:[%s3289_s1 + $0x304] ss:$16 sps:$4 sm:$0xff]  }
  0x30   : > { %1240 = vmatpush1.bf16.msra.mxu0 %v2446_v42  ;;  %1426 = vmatpush1.bf16.msra.mxu1 %v2447_v43  ;;  %v2540_v42 = vld [vmem:[%s3289_s1 + $0x30c] ss:$16 sps:$4 sm:$0xff]   ;;  %v2535_v43 = vld [vmem:[%s3289_s1 + $0x300] ss:$16 sps:$4 sm:$0xff]  }
  0x31   : > { %1241 = vmatprep.subr.bf16.mxu0 %v2448_v44  ;;  %1427 = vmatprep.subr.bf16.mxu1 %v2450_v45  ;;  %v2538_v44 = vld [vmem:[%s3289_s1 + $0x308] ss:$16 sps:$4 sm:$0xff]   ;;  %v2564_v45 = vld [vmem:[%s2914_s17 + $0x80] ss:$16 sps:$4 sm:$0xff]  }
  0x34   : > { %1242 = vmatpush1.bf16.msra.mxu0 %v2452_v46  ;;  %1428 = vmatpush1.bf16.msra.mxu1 %v2453_v47  ;;  %v2543_v46 = vld [vmem:[%s3289_s1 + $0x324] ss:$16 sps:$4 sm:$0xff]   ;;  %v2546_v47 = vld [vmem:[%s3289_s1 + $0x32c] ss:$16 sps:$4 sm:$0xff]  }
  0x35   : > { %1243 = vmatprep.subr.bf16.mxu0 %v2454_v49  ;;  %1429 = vmatprep.subr.bf16.mxu1 %v2456_v50  ;;  %v2541_v49 = vld [vmem:[%s3289_s1 + $0x320] ss:$16 sps:$4 sm:$0xff]   ;;  %v2544_v50 = vld [vmem:[%s3289_s1 + $0x328] ss:$16 sps:$4 sm:$0xff]  }
  0x38   : > { %1244 = vmatpush1.bf16.msra.mxu0 %v2458_v51  ;;  %1430 = vmatpush1.bf16.msra.mxu1 %v2459_v52  ;;  %v2552_v51 = vld [vmem:[%s3289_s1 + $0x344] ss:$16 sps:$4 sm:$0xff]   ;;  %v2555_v52 = vld [vmem:[%s3289_s1 + $0x34c] ss:$16 sps:$4 sm:$0xff]  }
  0x39   : > { %1245 = vmatprep.subr.bf16.mxu0 %v2460_v53  ;;  %1431 = vmatprep.subr.bf16.mxu1 %v2462_v54  ;;  %v2579_v53 = vld [vmem:[%s2914_s17 + $0xa0] ss:$16 sps:$4 sm:$0xff]  }
  0x3a   : > { %v2550_v54 = vld [vmem:[%s3289_s1 + $0x340] ss:$16 sps:$4 sm:$0xff]  }
  0x3c   : > { %1246 = vmatpush1.bf16.msra.mxu0 %v2464_v55  ;;  %1432 = vmatpush1.bf16.msra.mxu1 %v2465_v56  ;;  %v2553_v55 = vld [vmem:[%s3289_s1 + $0x348] ss:$16 sps:$4 sm:$0xff]   ;;  %v2558_v56 = vld [vmem:[%s3289_s1 + $0x364] ss:$16 sps:$4 sm:$0xff]  }
  0x3d   : > { %1247 = vmatprep.subr.bf16.mxu0 %v2466_v57  ;;  %1433 = vmatprep.subr.bf16.mxu1 %v2468_v58  ;;  %v2561_v57 = vld [vmem:[%s3289_s1 + $0x36c] ss:$16 sps:$4 sm:$0xff]  }
  0x3e   : > { %v2594_v58 = vld [vmem:[%s2914_s17 + $0xc] ss:$16 sps:$4 sm:$0xff]  }
  0x40   : > { %1248 = vmatpush1.bf16.msra.mxu0 %v2470_v59  ;;  %1434 = vmatpush1.bf16.msra.mxu1 %v2471_v60  ;;  %v2556_v59 = vld [vmem:[%s3289_s1 + $0x360] ss:$16 sps:$4 sm:$0xff]   ;;  %v2559_v60 = vld [vmem:[%s3289_s1 + $0x368] ss:$16 sps:$4 sm:$0xff]  }
  0x41   : > { %1249 = vmatprep.subr.bf16.mxu0 %v2472_v61  ;;  %1435 = vmatprep.subr.bf16.mxu1 %v2474_v62  ;;  %v2567_v61 = vld [vmem:[%s3289_s1 + $0x384] ss:$16 sps:$4 sm:$0xff]   ;;  %v2570_v62 = vld [vmem:[%s3289_s1 + $0x38c] ss:$16 sps:$4 sm:$0xff]  }
  0x44   : > { %1250 = vmatpush1.bf16.msra.mxu0 %v2476_v63  ;;  %1436 = vmatpush1.bf16.msra.mxu1 %v2477_v0  ;;  %v2565_v63 = vld [vmem:[%s3289_s1 + $0x380] ss:$16 sps:$4 sm:$0xff]   ;;  %v2568_v0 = vld [vmem:[%s3289_s1 + $0x388] ss:$16 sps:$4 sm:$0xff]  }
  0x45   : > { %1312 = vmatprep.subr.bf16.mxu0 %v2483_v1  ;;  %1498 = vmatprep.subr.bf16.mxu1 %v2486_v2  ;;  %v2573_v1 = vld [vmem:[%s3289_s1 + $0x3a4] ss:$16 sps:$4 sm:$0xff]   ;;  %v2576_v2 = vld [vmem:[%s3289_s1 + $0x3ac] ss:$16 sps:$4 sm:$0xff]  }
  0x47   : > { %1252 = vmatmul.mubr.bf16.vlgmr.msra.gmra.mrb[0].mxu0 %v2478_v3  ;;  %1438 = vmatmul.mubr.bf16.vlgmr.msra.gmra.mrb[0].mxu1 %v2478_v3  ;;  %v2571_v3 = vld [vmem:[%s3289_s1 + $0x3a0] ss:$16 sps:$4 sm:$0xff]  }
  0x48   : > { %1313 = vmatpush1.bf16.msra.mxu0 %v2481_v4  ;;  %1499 = vmatpush1.bf16.msra.mxu1 %v2484_v5  ;;  %v2574_v4 = vld [vmem:[%s3289_s1 + $0x3a8] ss:$16 sps:$4 sm:$0xff]   ;;  %v2582_v5 = vld [vmem:[%s3289_s1 + $0x3c4] ss:$16 sps:$4 sm:$0xff]  }
  0x49   : > { %1314 = vmatprep.subr.bf16.mxu0 %v2489_v6  ;;  %1500 = vmatprep.subr.bf16.mxu1 %v2492_v7  ;;  %v2585_v6 = vld [vmem:[%s3289_s1 + $0x3cc] ss:$16 sps:$4 sm:$0xff]   ;;  %v2580_v7 = vld [vmem:[%s3289_s1 + $0x3c0] ss:$16 sps:$4 sm:$0xff]  }
  0x4a   : > { %1261 = vmatprep.mubr.bf16.mxu0 %v2517_v8  ;;  %1447 = vmatprep.mubr.bf16.mxu1 %v2517_v8  ;;  %v2583_v8 = vld [vmem:[%s3289_s1 + $0x3c8] ss:$16 sps:$4 sm:$0xff]  }
  0x4c   : > { %1315 = vmatpush1.bf16.msra.mxu0 %v2487_v9  ;;  %1501 = vmatpush1.bf16.msra.mxu1 %v2490_v10  ;;  %v2588_v9 = vld [vmem:[%s3289_s1 + $0x3e4] ss:$16 sps:$4 sm:$0xff]   ;;  %v2591_v10 = vld [vmem:[%s3289_s1 + $0x3ec] ss:$16 sps:$4 sm:$0xff]  }
  0x4d   : > { %1316 = vmatprep.subr.bf16.mxu0 %v2495_v11  ;;  %1502 = vmatprep.subr.bf16.mxu1 %v2498_v12  ;;  %v2586_v11 = vld [vmem:[%s3289_s1 + $0x3e0] ss:$16 sps:$4 sm:$0xff]   ;;  %v2589_v12 = vld [vmem:[%s3289_s1 + $0x3e8] ss:$16 sps:$4 sm:$0xff]  }
  0x4f   : > { %1262 = vmatmul.mubr.bf16.gmra.mrb[4].mxu0 %v2519_v15  ;;  %1448 = vmatmul.mubr.bf16.gmra.mrb[4].mxu1 %v2519_v15  ;;  %v2597_v15 = vld [vmem:[%s2914_s17 + $0x28] ss:$16 sps:$4 sm:$0xff]  }
  0x50   : > { %1317 = vmatpush1.bf16.msra.mxu0 %v2493_v13  ;;  %1503 = vmatpush1.bf16.msra.mxu1 %v2496_v14  ;;  %v2592_v13 = vld [vmem:[%s2914_s17 + $0x8] ss:$16 sps:$4 sm:$0xff]   ;;  %v2595_v14 = vld [vmem:[%s2914_s17 + $0x2c] ss:$16 sps:$4 sm:$0xff]  }
  0x51   : > { %1318 = vmatprep.subr.bf16.mxu0 %v2501_v16  ;;  %1504 = vmatprep.subr.bf16.mxu1 %v2504_v17  ;;  %v2598_v16 = vld [vmem:[%s2914_s17 + $0x4c] ss:$16 sps:$4 sm:$0xff]   ;;  %v2600_v17 = vld [vmem:[%s2914_s17 + $0x48] ss:$16 sps:$4 sm:$0xff]  }
  0x52   : > { %1271 = vmatprep.mubr.bf16.mxu0 %v2532_v18  ;;  %1457 = vmatprep.mubr.bf16.mxu1 %v2532_v18  ;;  %v2601_v18 = vld [vmem:[%s2914_s17 + $0x6c] ss:$16 sps:$4 sm:$0xff]  }
  0x54   : > { %1319 = vmatpush1.bf16.msra.mxu0 %v2499_v19  ;;  %1505 = vmatpush1.bf16.msra.mxu1 %v2502_v20  ;;  %v2603_v19 = vld [vmem:[%s2914_s17 + $0x68] ss:$16 sps:$4 sm:$0xff]   ;;  %v2604_v20 = vld [vmem:[%s2914_s17 + $0x8c] ss:$16 sps:$4 sm:$0xff]  }
  0x55   : > { %1320 = vmatprep.subr.bf16.mxu0 %v2507_v21  ;;  %1506 = vmatprep.subr.bf16.mxu1 %v2510_v22  ;;  %v2606_v21 = vld [vmem:[%s2914_s17 + $0x88] ss:$16 sps:$4 sm:$0xff]   ;;  %v2607_v22 = vld [vmem:[%s2914_s17 + $0xac] ss:$16 sps:$4 sm:$0xff]  }
  0x57   : > { %1272 = vmatmul.mubr.bf16.gmra.mrb[8].mxu0 %v2534_v25  ;;  %1458 = vmatmul.mubr.bf16.gmra.mrb[8].mxu1 %v2534_v25 }
  0x58   : > { %1321 = vmatpush1.bf16.msra.mxu0 %v2505_v23  ;;  %1507 = vmatpush1.bf16.msra.mxu1 %v2508_v24  ;;  %v2609_v23 = vld [vmem:[%s2914_s17 + $0xa8] ss:$16 sps:$4 sm:$0xff]   ;;  %v1740_v24 = vlaneseq }
  0x59   : > { %1322 = vmatprep.subr.bf16.mxu0 %v2513_v26  ;;  %1508 = vmatprep.subr.bf16.mxu1 %v2516_v27 }
  0x5a   : > { %1281 = vmatprep.mubr.bf16.mxu0 %v2547_v28  ;;  %1467 = vmatprep.mubr.bf16.mxu1 %v2547_v28  ;;  %v1741_v25 = vshrl.u32 %v1740_v24, 7  ;;  %v1738_v28 = vld [vmem:[%s3290_s2] sm:$0xf] }
  0x5c   : > { %1323 = vmatpush1.bf16.msra.mxu0 %v2511_v29  ;;  %1509 = vmatpush1.bf16.msra.mxu1 %v2514_v30  ;;  %v1742_v26 = vsub.s32 0, %v1741_v25  ;;  %v1750_v27 = vsub.s32 2, %v1741_v25  ;;  %v1746_v29 = vsub.s32 1, %v1741_v25  ;;  %v1754_v30 = vsub.s32 3, %v1741_v25 }
  0x5d   : > { %1324 = vmatprep.subr.bf16.mxu0 %v2522_v31  ;;  %1510 = vmatprep.subr.bf16.mxu1 %v2525_v32 }
  0x5e   : > { %v3192_v31 = vrot.slane %v1738_v28, %v1742_v26  ;;  %v3194_v32 = vrot.slane %v1738_v28, %v1750_v27 }
  0x5f   : > { %1282 = vmatmul.mubr.bf16.gmra.mrb[12].mxu0 %v2549_v35  ;;  %1468 = vmatmul.mubr.bf16.gmra.mrb[12].mxu1 %v2549_v35 }
  0x60   : > { %1325 = vmatpush1.bf16.msra.mxu0 %v2520_v33  ;;  %1511 = vmatpush1.bf16.msra.mxu1 %v2523_v34  ;;  %v3196_v33 = vrot.slane %v1738_v28, %v1746_v29  ;;  %v3198_v34 = vrot.slane %v1738_v28, %v1754_v30 }
  0x61   : > { %1326 = vmatprep.subr.bf16.mxu0 %v2528_v36  ;;  %1512 = vmatprep.subr.bf16.mxu1 %v2531_v37 }
  0x62   : > { %1291 = vmatprep.mubr.bf16.mxu0 %v2562_v38  ;;  %1477 = vmatprep.mubr.bf16.mxu1 %v2562_v38 }
  0x64   : > { %1327 = vmatpush1.bf16.msra.mxu0 %v2526_v39  ;;  %1513 = vmatpush1.bf16.msra.mxu1 %v2529_v40 }
  0x65   : > { %1328 = vmatprep.subr.bf16.mxu0 %v2537_v41  ;;  %1514 = vmatprep.subr.bf16.mxu1 %v2540_v42 }
  0x67   : > { %1292 = vmatmul.mubr.bf16.gmra.mrb[16].mxu0 %v2564_v45  ;;  %1478 = vmatmul.mubr.bf16.gmra.mrb[16].mxu1 %v2564_v45 }
  0x68   : > { %1329 = vmatpush1.bf16.msra.mxu0 %v2535_v43  ;;  %1515 = vmatpush1.bf16.msra.mxu1 %v2538_v44 }
  0x69   : > { %1330 = vmatprep.subr.bf16.mxu0 %v2543_v46  ;;  %1516 = vmatprep.subr.bf16.mxu1 %v2546_v47 }
  0x6a   : > { %1301 = vmatprep.mubr.bf16.mxu0 %v2577_v48  ;;  %1487 = vmatprep.mubr.bf16.mxu1 %v2577_v48 }
  0x6c   : > { %1331 = vmatpush1.bf16.msra.mxu0 %v2541_v49  ;;  %1517 = vmatpush1.bf16.msra.mxu1 %v2544_v50 }
  0x6d   : > { %1332 = vmatprep.subr.bf16.mxu0 %v2552_v51  ;;  %1518 = vmatprep.subr.bf16.mxu1 %v2555_v52 }
  0x6f   : > { %1302 = vmatmul.mubr.bf16.gmra.mrb[20].mxu0 %v2579_v53  ;;  %1488 = vmatmul.mubr.bf16.gmra.mrb[20].mxu1 %v2579_v53 }
  0x70   : > { %1333 = vmatpush1.bf16.msra.mxu0 %v2550_v54  ;;  %1519 = vmatpush1.bf16.msra.mxu1 %v2553_v55 }
  0x71   : > { %1334 = vmatprep.subr.bf16.mxu0 %v2558_v56  ;;  %1520 = vmatprep.subr.bf16.mxu1 %v2561_v57 }
  0x72   : > { %1344 = vmatprep.mubr.bf16.mxu0 %v2594_v58  ;;  %1530 = vmatprep.mubr.bf16.mxu1 %v2594_v58 }
  0x74   : > { %1335 = vmatpush1.bf16.msra.mxu0 %v2556_v59  ;;  %1521 = vmatpush1.bf16.msra.mxu1 %v2559_v60 }
  0x75   : > { %1336 = vmatprep.subr.bf16.mxu0 %v2567_v61  ;;  %1522 = vmatprep.subr.bf16.mxu1 %v2570_v62 }
  0x78   : > { %1337 = vmatpush1.bf16.msra.mxu0 %v2565_v63  ;;  %1523 = vmatpush1.bf16.msra.mxu1 %v2568_v0 }
  0x79   : > { %1338 = vmatprep.subr.bf16.mxu0 %v2573_v1  ;;  %1524 = vmatprep.subr.bf16.mxu1 %v2576_v2 }
  0x7c   : > { %1339 = vmatpush1.bf16.msra.mxu0 %v2571_v3  ;;  %1525 = vmatpush1.bf16.msra.mxu1 %v2574_v4 }
  0x7d   : > { %1340 = vmatprep.subr.bf16.mxu0 %v2582_v5  ;;  %1526 = vmatprep.subr.bf16.mxu1 %v2585_v6 }
  0x80   : > { %1341 = vmatpush1.bf16.msra.mxu0 %v2580_v7  ;;  %1527 = vmatpush1.bf16.msra.mxu1 %v2583_v8 }
  0x81   : > { %1342 = vmatprep.subr.bf16.mxu0 %v2588_v9  ;;  %1528 = vmatprep.subr.bf16.mxu1 %v2591_v10 }
  0x84   : > { %1343 = vmatpush1.bf16.msra.mxu0 %v2586_v11  ;;  %1529 = vmatpush1.bf16.msra.mxu1 %v2589_v12 }
  0x87   : > { %1345 = vmatmul.mubr.bf16.vlgmr.msra.gmra.mrb[0].mxu0 %v2592_v13  ;;  %1531 = vmatmul.mubr.bf16.vlgmr.msra.gmra.mrb[0].mxu1 %v2592_v13 }
  0x88   : > { %1354 = vmatprep.mubr.bf16.mxu0 %v2595_v14  ;;  %1540 = vmatprep.mubr.bf16.mxu1 %v2595_v14 }
  0x8f   : > { %1355 = vmatmul.mubr.bf16.gmra.mrb[4].mxu0 %v2597_v15  ;;  %1541 = vmatmul.mubr.bf16.gmra.mrb[4].mxu1 %v2597_v15 }
  0x90   : > { %1364 = vmatprep.mubr.bf16.mxu0 %v2598_v16  ;;  %1550 = vmatprep.mubr.bf16.mxu1 %v2598_v16 }
  0x97   : > { %1365 = vmatmul.mubr.bf16.gmra.mrb[8].mxu0 %v2600_v17  ;;  %1551 = vmatmul.mubr.bf16.gmra.mrb[8].mxu1 %v2600_v17 }
  0x98   : > { %1374 = vmatprep.mubr.bf16.mxu0 %v2601_v18  ;;  %1560 = vmatprep.mubr.bf16.mxu1 %v2601_v18 }
  0x9f   : > { %1375 = vmatmul.mubr.bf16.gmra.mrb[12].mxu0 %v2603_v19  ;;  %1561 = vmatmul.mubr.bf16.gmra.mrb[12].mxu1 %v2603_v19 }
  0xa0   : > { %1384 = vmatprep.mubr.bf16.mxu0 %v2604_v20  ;;  %1570 = vmatprep.mubr.bf16.mxu1 %v2604_v20 }
  0xa7   : > { %1385 = vmatmul.mubr.bf16.gmra.mrb[16].mxu0 %v2606_v21  ;;  %1571 = vmatmul.mubr.bf16.gmra.mrb[16].mxu1 %v2606_v21 }
  0xa8   : > { %1394 = vmatprep.mubr.bf16.mxu0 %v2607_v22  ;;  %1580 = vmatprep.mubr.bf16.mxu1 %v2607_v22 }
  0xaf   : > { %1395 = vmatmul.mubr.bf16.gmra.mrb[20].mxu0 %v2609_v23  ;;  %1581 = vmatmul.mubr.bf16.gmra.mrb[20].mxu1 %v2609_v23 }
 0x15a   : > { %v1346_v35 = vpop.f32.mrb[0].mxu0  ;;  %v1532_v36 = vpop.f32.mrb[0].mxu1 }
 0x15b   : > { %v1760_v37 = vadd.f32 %v3192_v31, %v1346_v35  ;;  %v1762_v38 = vadd.f32 %v3194_v32, %v1532_v36  ;;  %v1348_v39 = vpop.f32.mrb[1].mxu0  ;;  %v1534_v40 = vpop.f32.mrb[1].mxu1 }
 0x15c   : > { %v1761_v41 = vadd.f32 %v3196_v33, %v1348_v39  ;;  %v1763_v42 = vadd.f32 %v3198_v34, %v1534_v40  ;;  %v1350_v43 = vpop.f32.mrb[2].mxu0  ;;  %v1536_v44 = vpop.f32.mrb[2].mxu1 }
 0x15d   : > { %2610 = vtanh.f32 %v1760_v37  ;;  %v1764_v45 = vadd.f32 %v3192_v31, %v1350_v43  ;;  %v1352_v46 = vpop.f32.mrb[3].mxu0  ;;  %v1538_v47 = vpop.f32.mrb[3].mxu1  ;;  %v1766_v48 = vadd.f32 %v3194_v32, %v1536_v44 }
 0x15e   : > { %2612 = vtanh.f32 %v1762_v38  ;;  %v1765_v49 = vadd.f32 %v3196_v33, %v1352_v46  ;;  %v1767_v50 = vadd.f32 %v3198_v34, %v1538_v47 }
 0x15f   : > { %2614 = vtanh.f32 %v1761_v41 }
 0x160   : > { %2616 = vtanh.f32 %v1763_v42 }
 0x161   : > { %2618 = vtanh.f32 %v1764_v45 }
 0x162   : > { %2620 = vtanh.f32 %v1766_v48  ;;  %v1356_v51 = vpop.f32.mrb[4].mxu0  ;;  %v1542_v52 = vpop.f32.mrb[4].mxu1 }
 0x163   : > { %2622 = vtanh.f32 %v1765_v49  ;;  %v1768_v53 = vadd.f32 %v3192_v31, %v1356_v51  ;;  %v1770_v54 = vadd.f32 %v3194_v32, %v1542_v52  ;;  %v1358_v55 = vpop.f32.mrb[5].mxu0  ;;  %v1544_v56 = vpop.f32.mrb[5].mxu1 }
 0x164   : > { %2624 = vtanh.f32 %v1767_v50  ;;  %v1769_v57 = vadd.f32 %v3196_v33, %v1358_v55  ;;  %v1771_v58 = vadd.f32 %v3198_v34, %v1544_v56  ;;  %v1360_v59 = vpop.f32.mrb[6].mxu0  ;;  %v1546_v60 = vpop.f32.mrb[6].mxu1 }
 0x165   : > { %2626 = vtanh.f32 %v1768_v53  ;;  %v1772_v61 = vadd.f32 %v3192_v31, %v1360_v59  ;;  %v1362_v62 = vpop.f32.mrb[7].mxu0  ;;  %v1548_v63 = vpop.f32.mrb[7].mxu1  ;;  %v1774_v0 = vadd.f32 %v3194_v32, %v1546_v60 }
 0x166   : > { %2628 = vtanh.f32 %v1770_v54  ;;  %v1773_v2 = vadd.f32 %v3196_v33, %v1362_v62  ;;  %v1775_v4 = vadd.f32 %v3198_v34, %v1548_v63 }
 0x167   : > { %v2611_v1 = vpop.eup %2610  ;;  %2630 = vtanh.f32 %v1769_v57 }
 0x168   : > { %v2613_v3 = vpop.eup %2612  ;;  %2632 = vtanh.f32 %v1771_v58 }
 0x169   : > { %v2615_v5 = vpop.eup %2614  ;;  %2634 = vtanh.f32 %v1772_v61 }
 0x16a   : > { %v2617_v6 = vpop.eup %2616  ;;  %v2286_v7 = vpack.c.bf16 %v2615_v5, %v2611_v1  ;;  %2636 = vtanh.f32 %v1774_v0  ;;  %v1366_v8 = vpop.f32.mrb[8].mxu0 }
 0x16b   : > { %v1552_v9 = vpop.f32.mrb[8].mxu1  ;;  %v2619_v10 = vpop.eup %2618  ;;  %v2287_v11 = vpack.c.bf16 %v2617_v6, %v2613_v3  ;;  %2638 = vtanh.f32 %v1773_v2  ;;  %v1776_v12 = vadd.f32 %v3192_v31, %v1366_v8 }
 0x16c   : > { %v1778_v13 = vadd.f32 %v3194_v32, %v1552_v9  ;;  %v1368_v14 = vpop.f32.mrb[9].mxu0  ;;  %v1554_v15 = vpop.f32.mrb[9].mxu1  ;;  %2000 = vst [vmem:[%s3221_s19] sm:$0xff] %v2286_v7  ;;  %2640 = vtanh.f32 %v1775_v4 }
 0x16d   : > { %v2621_v16 = vpop.eup %2620  ;;  %v1777_v17 = vadd.f32 %v3196_v33, %v1368_v14  ;;  %v1779_v18 = vadd.f32 %v3198_v34, %v1554_v15  ;;  %v1370_v19 = vpop.f32.mrb[10].mxu0  ;;  %2001 = vst [vmem:[%s3221_s19 + $0x8] sm:$0xff] %v2287_v11  ;;  %2642 = vtanh.f32 %v1776_v12 }
 0x16e   : > { %v1556_v20 = vpop.f32.mrb[10].mxu1  ;;  %v2623_v21 = vpop.eup %2622  ;;  %v1780_v22 = vadd.f32 %v3192_v31, %v1370_v19  ;;  %2644 = vtanh.f32 %v1778_v13 }
 0x16f   : > { %v1372_v23 = vpop.f32.mrb[11].mxu0  ;;  %v1558_v24 = vpop.f32.mrb[11].mxu1  ;;  %v2288_v26 = vpack.c.bf16 %v2623_v21, %v2619_v10  ;;  %v1782_v27 = vadd.f32 %v3194_v32, %v1556_v20  ;;  %2646 = vtanh.f32 %v1777_v17 }
 0x170   : > { %v2625_v25 = vpop.eup %2624  ;;  %v1781_v30 = vadd.f32 %v3196_v33, %v1372_v23  ;;  %2648 = vtanh.f32 %v1779_v18  ;;  %v1783_v36 = vadd.f32 %v3198_v34, %v1558_v24 }
 0x171   : > { %v2627_v28 = vpop.eup %2626  ;;  %v2289_v29 = vpack.c.bf16 %v2625_v25, %v2621_v16  ;;  %2002 = vst [vmem:[%s3221_s19 + $0x10] sm:$0xff] %v2288_v26  ;;  %2650 = vtanh.f32 %v1780_v22 }
 0x172   : > { %v2629_v35 = vpop.eup %2628  ;;  %2652 = vtanh.f32 %v1782_v27  ;;  %v1376_v40 = vpop.f32.mrb[12].mxu0 }
 0x173   : > { %v2631_v37 = vpop.eup %2630  ;;  %2003 = vst [vmem:[%s3221_s19 + $0x18] sm:$0xff] %v2289_v29  ;;  %v1562_v41 = vpop.f32.mrb[12].mxu1  ;;  %2654 = vtanh.f32 %v1781_v30  ;;  %v1784_v44 = vadd.f32 %v3192_v31, %v1376_v40 }
 0x174   : > { %v2633_v38 = vpop.eup %2632  ;;  %v2290_v39 = vpack.c.bf16 %v2631_v37, %v2627_v28  ;;  %v1786_v45 = vadd.f32 %v3194_v32, %v1562_v41  ;;  %v1378_v46 = vpop.f32.mrb[13].mxu0  ;;  %2656 = vtanh.f32 %v1783_v36 }
 0x175   : > { %v2635_v42 = vpop.eup %2634  ;;  %v2291_v43 = vpack.c.bf16 %v2633_v38, %v2629_v35  ;;  %v1564_v47 = vpop.f32.mrb[13].mxu1  ;;  %v1785_v49 = vadd.f32 %v3196_v33, %v1378_v46  ;;  %2658 = vtanh.f32 %v1784_v44 }
 0x176   : > { %v2637_v48 = vpop.eup %2636  ;;  %2004 = vst [vmem:[%s3221_s19 + $0x20] sm:$0xff] %v2290_v39  ;;  %v1787_v50 = vadd.f32 %v3198_v34, %v1564_v47  ;;  %v1380_v51 = vpop.f32.mrb[14].mxu0  ;;  %2660 = vtanh.f32 %v1786_v45 }
 0x177   : > { %v1566_v52 = vpop.f32.mrb[14].mxu1  ;;  %v2639_v53 = vpop.eup %2638  ;;  %2005 = vst [vmem:[%s3221_s19 + $0x28] sm:$0xff] %v2291_v43  ;;  %v1788_v54 = vadd.f32 %v3192_v31, %v1380_v51  ;;  %2662 = vtanh.f32 %v1785_v49 }
 0x178   : > { %v1382_v55 = vpop.f32.mrb[15].mxu0  ;;  %v1568_v56 = vpop.f32.mrb[15].mxu1  ;;  %v2292_v58 = vpack.c.bf16 %v2639_v53, %v2635_v42  ;;  %v1790_v59 = vadd.f32 %v3194_v32, %v1566_v52  ;;  %2664 = vtanh.f32 %v1787_v50 }
 0x179   : > { %v2641_v57 = vpop.eup %2640  ;;  %v1789_v62 = vadd.f32 %v3196_v33, %v1382_v55  ;;  %v1791_v0 = vadd.f32 %v3198_v34, %v1568_v56  ;;  %2666 = vtanh.f32 %v1788_v54 }
 0x17a   : > { %v2643_v60 = vpop.eup %2642  ;;  %v2293_v61 = vpack.c.bf16 %v2641_v57, %v2637_v48  ;;  %2006 = vst [vmem:[%s3221_s19 + $0x30] sm:$0xff] %v2292_v58  ;;  %2668 = vtanh.f32 %v1790_v59  ;;  %v1386_v4 = vpop.f32.mrb[16].mxu0 }
 0x17b   : > { %v2645_v63 = vpop.eup %2644  ;;  %v1572_v5 = vpop.f32.mrb[16].mxu1  ;;  %2670 = vtanh.f32 %v1789_v62  ;;  %v1792_v8 = vadd.f32 %v3192_v31, %v1386_v4 }
 0x17c   : > { %v2647_v1 = vpop.eup %2646  ;;  %2007 = vst [vmem:[%s3221_s19 + $0x38] sm:$0xff] %v2293_v61  ;;  %v1794_v9 = vadd.f32 %v3194_v32, %v1572_v5  ;;  %v1388_v10 = vpop.f32.mrb[17].mxu0  ;;  %2672 = vtanh.f32 %v1791_v0 }
 0x17d   : > { %v2649_v2 = vpop.eup %2648  ;;  %v2294_v3 = vpack.c.bf16 %v2647_v1, %v2643_v60  ;;  %v1574_v11 = vpop.f32.mrb[17].mxu1  ;;  %v1793_v13 = vadd.f32 %v3196_v33, %v1388_v10  ;;  %2674 = vtanh.f32 %v1792_v8 }
 0x17e   : > { %v2651_v6 = vpop.eup %2650  ;;  %v2295_v7 = vpack.c.bf16 %v2649_v2, %v2645_v63  ;;  %v1795_v14 = vadd.f32 %v3198_v34, %v1574_v11  ;;  %v1390_v15 = vpop.f32.mrb[18].mxu0  ;;  %2676 = vtanh.f32 %v1794_v9 }
 0x17f   : > { %v2653_v12 = vpop.eup %2652  ;;  %2008 = vst [vmem:[%s3221_s19 + $0x40] sm:$0xff] %v2294_v3  ;;  %v1576_v16 = vpop.f32.mrb[18].mxu1  ;;  %v1796_v18 = vadd.f32 %v3192_v31, %v1390_v15  ;;  %2678 = vtanh.f32 %v1793_v13 }
 0x180   : > { %v2655_v17 = vpop.eup %2654  ;;  %2009 = vst [vmem:[%s3221_s19 + $0x48] sm:$0xff] %v2295_v7  ;;  %v1392_v19 = vpop.f32.mrb[19].mxu0  ;;  %v1798_v23 = vadd.f32 %v3194_v32, %v1576_v16  ;;  %2680 = vtanh.f32 %v1795_v14 }
 0x181   : > { %v1578_v20 = vpop.f32.mrb[19].mxu1  ;;  %v2657_v21 = vpop.eup %2656  ;;  %v2296_v22 = vpack.c.bf16 %v2655_v17, %v2651_v6  ;;  %v1797_v26 = vadd.f32 %v3196_v33, %v1392_v19  ;;  %2682 = vtanh.f32 %v1796_v18 }
 0x182   : > { %v2659_v24 = vpop.eup %2658  ;;  %v2297_v25 = vpack.c.bf16 %v2657_v21, %v2653_v12  ;;  %v1799_v28 = vadd.f32 %v3198_v34, %v1578_v20  ;;  %2684 = vtanh.f32 %v1798_v23  ;;  %v1396_v36 = vpop.f32.mrb[20].mxu0 }
 0x183   : > { %v2661_v27 = vpop.eup %2660  ;;  %2010 = vst [vmem:[%s3221_s19 + $0x50] sm:$0xff] %v2296_v22  ;;  %v1582_v37 = vpop.f32.mrb[20].mxu1  ;;  %2686 = vtanh.f32 %v1797_v26  ;;  %v1800_v40 = vadd.f32 %v3192_v31, %v1396_v36 }
 0x184   : > { %v2663_v29 = vpop.eup %2662  ;;  %2011 = vst [vmem:[%s3221_s19 + $0x58] sm:$0xff] %v2297_v25  ;;  %v1802_v41 = vadd.f32 %v3194_v32, %v1582_v37  ;;  %v1398_v42 = vpop.f32.mrb[21].mxu0  ;;  %2688 = vtanh.f32 %v1799_v28 }
 0x185   : > { %v2665_v30 = vpop.eup %2664  ;;  %v2298_v35 = vpack.c.bf16 %v2663_v29, %v2659_v24  ;;  %v1584_v43 = vpop.f32.mrb[21].mxu1  ;;  %v1801_v45 = vadd.f32 %v3196_v33, %v1398_v42  ;;  %2690 = vtanh.f32 %v1800_v40 }
 0x186   : > { %v2667_v38 = vpop.eup %2666  ;;  %v2299_v39 = vpack.c.bf16 %v2665_v30, %v2661_v27  ;;  %v1803_v46 = vadd.f32 %v3198_v34, %v1584_v43  ;;  %v1400_v47 = vpop.f32.mrb[22].mxu0  ;;  %2692 = vtanh.f32 %v1802_v41 }
 0x187   : > { %v2669_v44 = vpop.eup %2668  ;;  %2012 = vst [vmem:[%s3221_s19 + $0x60] sm:$0xff] %v2298_v35  ;;  %v1586_v48 = vpop.f32.mrb[22].mxu1  ;;  %v1804_v50 = vadd.f32 %v3192_v31, %v1400_v47  ;;  %2694 = vtanh.f32 %v1801_v45 }
 0x188   : > { %v2671_v49 = vpop.eup %2670  ;;  %2013 = vst [vmem:[%s3221_s19 + $0x68] sm:$0xff] %v2299_v39  ;;  %v1402_v51 = vpop.f32.mrb[23].mxu0  ;;  %v1806_v55 = vadd.f32 %v3194_v32, %v1586_v48  ;;  %2696 = vtanh.f32 %v1803_v46 }
 0x189   : > { %v1588_v52 = vpop.f32.mrb[23].mxu1  ;;  %v2673_v53 = vpop.eup %2672  ;;  %v2300_v54 = vpack.c.bf16 %v2671_v49, %v2667_v38  ;;  %v1805_v58 = vadd.f32 %v3196_v33, %v1402_v51  ;;  %2698 = vtanh.f32 %v1804_v50 }
 0x18a   : > { %v2675_v56 = vpop.eup %2674  ;;  %v2301_v57 = vpack.c.bf16 %v2673_v53, %v2669_v44  ;;  %v1807_v31 = vadd.f32 %v3198_v34, %v1588_v52  ;;  %2700 = vtanh.f32 %v1806_v55 }
 0x18b   : > { %v2677_v59 = vpop.eup %2676  ;;  %2014 = vst [vmem:[%s3221_s19 + $0x70] sm:$0xff] %v2300_v54  ;;  %2702 = vtanh.f32 %v1805_v58 }
 0x18c   : > { %v2679_v60 = vpop.eup %2678  ;;  %2015 = vst [vmem:[%s3221_s19 + $0x78] sm:$0xff] %v2301_v57  ;;  %2704 = vtanh.f32 %v1807_v31 }
 0x18d   : > { %v2681_v61 = vpop.eup %2680  ;;  %v2302_v62 = vpack.c.bf16 %v2679_v60, %v2675_v56 }
 0x18e   : > { %v2683_v32 = vpop.eup %2682  ;;  %v2303_v63 = vpack.c.bf16 %v2681_v61, %v2677_v59 }
 0x18f   : > { %v2685_v0 = vpop.eup %2684  ;;  %2016 = vst [vmem:[%s3221_s19 + $0x80] sm:$0xff] %v2302_v62 }
 0x190   : > { %v2687_v33 = vpop.eup %2686  ;;  %2017 = vst [vmem:[%s3221_s19 + $0x88] sm:$0xff] %v2303_v63 }
 0x191   : > { %v2689_v1 = vpop.eup %2688  ;;  %v2304_v34 = vpack.c.bf16 %v2687_v33, %v2683_v32 }
 0x192   : > { %v2691_v2 = vpop.eup %2690  ;;  %v2305_v3 = vpack.c.bf16 %v2689_v1, %v2685_v0 }
 0x193   : > { %v2693_v4 = vpop.eup %2692  ;;  %2018 = vst [vmem:[%s3221_s19 + $0x90] sm:$0xff] %v2304_v34 }
 0x194   : > { %v2695_v5 = vpop.eup %2694  ;;  %2019 = vst [vmem:[%s3221_s19 + $0x98] sm:$0xff] %v2305_v3 }
 0x195   : > { %v2697_v6 = vpop.eup %2696  ;;  %v2306_v7 = vpack.c.bf16 %v2695_v5, %v2691_v2 }
 0x196   : > { %v2699_v8 = vpop.eup %2698  ;;  %v2307_v9 = vpack.c.bf16 %v2697_v6, %v2693_v4 }
 0x197   : > { %v2701_v10 = vpop.eup %2700  ;;  %2020 = vst [vmem:[%s3221_s19 + $0xa0] sm:$0xff] %v2306_v7 }
 0x198   : > { %v2703_v11 = vpop.eup %2702  ;;  %2021 = vst [vmem:[%s3221_s19 + $0xa8] sm:$0xff] %v2307_v9 }
 0x199   : > { %v2705_v12 = vpop.eup %2704  ;;  %v2308_v13 = vpack.c.bf16 %v2703_v11, %v2699_v8 }
 0x19a   : > { %v2309_v14 = vpack.c.bf16 %v2705_v12, %v2701_v10 }
 0x19b   : > { %2022 = vst [vmem:[%s3221_s19 + $0xb0] sm:$0xff] %v2308_v13 }
 0x19c   : > { %2023 = vst [vmem:[%s3221_s19 + $0xb8] sm:$0xff] %v2309_v14 }
 0x19d PF: > { %s13_s14 = sadd.s32 1, %s2728_s14   ;;  %s3292_s12 = smov %s2724_s13 }
 0x19e   : > { %p10_p5 = scmp.ge.s32.totalorder %s13_s14, 4   ;;  %s3293_s13 = smov %s3295_s15 }
 0x1a0   :  { %12 = sbr.rel (!%p10_p5) target bundleno = 2 (0x2), region = 70 }

</bundles_post_ra>
